<compile_context>
chip_gen: v5e
topology: v5e:2x2
jax: 0.10.0
libtpu: 0.0.40
codegen_flags: <defaults>
</compile_context>

<pallas_src>
import functools
import math

import jax
import jax.numpy as jnp
from jax import lax
from jax.experimental import pallas as pl
from jax.experimental.pallas import tpu as pltpu

SELF_LN_EPS = 1e-5     # nn.LayerNorm default
OTHER_LN_EPS = 1e-12   # eps passed to encoder_attn / final layer norms
_INV_SQRT2 = 1.0 / math.sqrt(2.0)


# ----------------------------------------------------------------------------
# Hardware probes (run once, cached)
# ----------------------------------------------------------------------------
_VMEM_CAPACITY = None
_SINGLE_BUFFER_OK = None


def _vmem_capacity_bytes():
    """Physical VMEM per TensorCore (128 MiB v5e/v6e, 64 MiB v7x)."""
    global _VMEM_CAPACITY
    if _VMEM_CAPACITY is None:
        try:
            _VMEM_CAPACITY = int(pltpu.get_tpu_info().vmem_capacity_bytes)
        except Exception:
            _VMEM_CAPACITY = 64 * 1024 * 1024   # conservative: legal everywhere
    return _VMEM_CAPACITY


def _probe_single_buffer():
    """Check (once, on-device) whether pipeline_mode=pl.Buffered(1) is accepted
    for block-invariant inputs of a pallas_call."""
    try:
        def _copy(x_ref, o_ref):
            o_ref[...] = x_ref[...] + 1.0

        fn = pl.pallas_call(
            _copy,
            out_shape=jax.ShapeDtypeStruct((32, 128), jnp.float32),
            grid=(4,),
            in_specs=[pl.BlockSpec((8, 128), lambda i: (0, 0),
                                   pipeline_mode=pl.Buffered(1))],
            out_specs=pl.BlockSpec((8, 128), lambda i: (i, 0)),
        )
        out = jax.block_until_ready(fn(jnp.ones((8, 128), jnp.float32)))
        return bool(jnp.allclose(out, 2.0))
    except Exception:   # older JAX: fall back to default (double) buffering
        return False


def _single_buffer_ok():
    global _SINGLE_BUFFER_OK
    if _SINGLE_BUFFER_OK is None:
        _SINGLE_BUFFER_OK = _probe_single_buffer()
    return _SINGLE_BUFFER_OK


def _weight_pipeline_kwargs():
    return {"pipeline_mode": pl.Buffered(1)} if _single_buffer_ok() else {}


def _const_spec(block_shape):
    """Block-invariant operand (weights / biases / LN params): stays resident
    in VMEM across the whole grid; single-buffered when supported."""
    zeros = (0,) * len(block_shape)
    return pl.BlockSpec(block_shape, lambda *_: zeros, **_weight_pipeline_kwargs())


def _vmem_budget(resident_bytes, streamed_bytes):
    """Generation-aware scoped-VMEM budget: resident weights (x1 if single-
    buffered, x2 otherwise) + double-buffered streamed tiles, 2x headroom for
    intermediates, clamped to physical capacity minus 12 MiB compiler headroom."""
    cap = _vmem_capacity_bytes()
    wbufs = 1 if _single_buffer_ok() else 2
    need = 2 * (wbufs * resident_bytes + 2 * streamed_bytes)
    hi = max(cap - 12 * 1024 * 1024, 32 * 1024 * 1024)
    return int(min(max(need, 8 * 1024 * 1024), hi))


def _row_tile_cap():
    # 512 rows on 128-MiB parts (v5e/v6e), 256 on v7x (64 MiB VMEM).
    return 512 if _vmem_capacity_bytes() >= 96 * 1024 * 1024 else 256


def _pick_tm(m, cap=None):
    """Largest legal row tile <= cap, preferring MXU-aligned multiples of 128."""
    cap = _row_tile_cap() if cap is None else cap
    if m <= cap:
        return m                           # full dim is always legal
    for t in range(cap - cap % 128, 127, -128):
        if m % t == 0:
            return t
    for t in range(cap - cap % 8, 7, -8):  # sublane-aligned fallback
        if m % t == 0:
            return t
    return m  # TODO(synk): pad ragged row counts instead of one oversized tile


def _pick_tf(f, cap=1024):
    """Hidden-dim chunk for the FFN: multiple of 128 (lane-dense weight slabs)."""
    if f <= cap:
        return f
    for t in range(cap - cap % 128, 127, -128):
        if f % t == 0:
            return t
    return f


# ----------------------------------------------------------------------------
# Math helpers
# ----------------------------------------------------------------------------
def _erf(z):
    """Abramowitz & Stegun 7.1.26 erf approximation (|err| < 1.5e-7), built
    only from ops that lower on the TPU VPU/EUP (abs/where/exp/mul/add)."""
    a1, a2, a3, a4, a5 = (0.254829592, -0.284496736, 1.421413741,
                          -1.453152027, 1.061405429)
    p = 0.3275911
    az = jnp.abs(z)
    t = 1.0 / (1.0 + p * az)
    poly = ((((a5 * t + a4) * t + a3) * t + a2) * t + a1) * t
    y = 1.0 - poly * jnp.exp(-az * az)
    return jnp.where(z < 0.0, -y, y)


def _gelu_exact(x):
    """Exact (erf-based) GELU, matching torch.nn.GELU() default."""
    return x * (0.5 * (1.0 + _erf(x * _INV_SQRT2)))


def _layer_norm_f32(y, gamma, beta, eps):
    mu = jnp.mean(y, axis=-1, keepdims=True)
    d = y - mu
    var = jnp.mean(d * d, axis=-1, keepdims=True)
    return d * jax.lax.rsqrt(var + eps) * gamma + beta


def _mask_to_bias(mask, shape):
    """PyTorch semantics: additive bias = finfo(f32).min where (1 - mask) != 0,
    else (1 - mask) (== 0 for a binary mask).
    TODO(synk): only 2-D (q_len, k_len) masks (broadcast over batch & heads)
    are plumbed through the attention kernel's BlockSpec."""
    if mask is None:
        return jnp.zeros(shape, jnp.float32)
    mask = jnp.asarray(mask, jnp.float32)
    assert mask.shape == shape, "only 2-D (q_len, k_len) masks are supported"
    inv = 1.0 - mask
    return jnp.where(inv != 0.0, jnp.finfo(jnp.float32).min, inv)


# ----------------------------------------------------------------------------
# Kernels
# ----------------------------------------------------------------------------
def _linear_kernel(x_ref, w_ref, b_ref, o_ref):
    y = jnp.dot(x_ref[...].astype(w_ref.dtype), w_ref[...],
                preferred_element_type=jnp.float32)
    o_ref[...] = (y + b_ref[...]).astype(o_ref.dtype)


def _mha_heads(q, k, v, bias, o_ref, w_ref, *, scale, num_heads, compute_dtype):
    """q: (Sq, d) f32; k/v: (Sk, d) f32; bias: (Sq, Sk) f32.
    Per-head scores -> softmax -> context; the context is written lane-dense
    as (Sq, d) (heads concatenated along lanes)."""
    d = q.shape[-1]
    dk = d // num_heads
    ctx = []
    for h in range(num_heads):
        lo = h * dk
        qh = q[:, lo:lo + dk].astype(compute_dtype)
        kh = k[:, lo:lo + dk].astype(compute_dtype)
        vh = v[:, lo:lo + dk].astype(compute_dtype)
        s = lax.dot_general(qh, kh, (((1,), (1,)), ((), ())),
                            preferred_element_type=jnp.float32)
        s = s * scale + bias
        m = jnp.max(s, axis=-1, keepdims=True)
        e = jnp.exp(s - m)
        p = e * pl.reciprocal(jnp.sum(e, axis=-1, keepdims=True), approx=True)
        # TODO(synk): attention dropout is identity (eval mode).
        if w_ref is not None:
            w_ref[0, h] = p.astype(w_ref.dtype)
        ctx.append(jnp.dot(p.astype(compute_dtype), vh,
                           preferred_element_type=jnp.float32))
    o_ref[0] = jnp.concatenate(ctx, axis=-1).astype(o_ref.dtype)


def _self_attention_kernel(qkv_ref, bias_ref, o_ref, w_ref=None, *,
                           scale, num_heads, d_model, compute_dtype):
    qkv = qkv_ref[0]                            # (Sq, 3*d) f32
    q = qkv[:, :d_model]
    k = qkv[:, d_model:2 * d_model]
    v = qkv[:, 2 * d_model:]
    _mha_heads(q, k, v, bias_ref[...], o_ref, w_ref, scale=scale,
               num_heads=num_heads, compute_dtype=compute_dtype)


def _cross_attention_kernel(q_ref, kv_ref, bias_ref, o_ref, w_ref=None, *,
                            scale, num_heads, d_model, compute_dtype):
    kv = kv_ref[0]                              # (Sk, 2*d) f32
    _mha_heads(q_ref[0], kv[:, :d_model], kv[:, d_model:], bias_ref[...],
               o_ref, w_ref, scale=scale, num_heads=num_heads,
               compute_dtype=compute_dtype)


def _proj_add_ln_kernel(x_ref, r_ref, w_ref, b_ref, gamma_ref, beta_ref, o_ref,
                        *, eps):
    y = jnp.dot(x_ref[...].astype(w_ref.dtype), w_ref[...],
                preferred_element_type=jnp.float32)
    y = y + b_ref[...] + r_ref[...].astype(jnp.float32)
    o_ref[...] = _layer_norm_f32(y, gamma_ref[...], beta_ref[...],
                                 eps).astype(o_ref.dtype)


def _ffn_add_ln_kernel(x_ref, w1_ref, b1_ref, w2_ref, b2_ref, gamma_ref,
                       beta_ref, o_ref, acc_ref, *, eps):
    j = pl.program_id(1)

    @pl.when(j == 0)
    def _init():
        acc_ref[...] = jnp.zeros_like(acc_ref)

    x = x_ref[...]
    h = jnp.dot(x.astype(w1_ref.dtype), w1_ref[...],
                preferred_element_type=jnp.float32) + b1_ref[...]
    g = _gelu_exact(h)                                  # f32 elementwise math
    acc_ref[...] += jnp.dot(g.astype(w2_ref.dtype), w2_ref[...],
                            preferred_element_type=jnp.float32)

    @pl.when(j == pl.num_programs(1) - 1)
    def _finalize():
        y = acc_ref[...] + b2_ref[...] + x.astype(jnp.float32)   # residual
        o_ref[...] = _layer_norm_f32(y, gamma_ref[...], beta_ref[...],
                                     eps).astype(o_ref.dtype)


# ----------------------------------------------------------------------------
# pallas_call wrappers
# ----------------------------------------------------------------------------
def linear(x2d, w, b):
    m, d_in = x2d.shape
    d_out = w.shape[1]
    tm = _pick_tm(m)
    wbytes = w.dtype.itemsize
    flops = 2 * m * d_in * d_out
    bytes_acc = 4 * m * (d_in + d_out) + wbytes * d_in * d_out + 4 * d_out
    vmem = _vmem_budget(wbytes * d_in * d_out + 4 * d_out,
                        4 * tm * (d_in + d_out))
    return pl.pallas_call(
        _linear_kernel,
        out_shape=jax.ShapeDtypeStruct((m, d_out), x2d.dtype),
        grid=(m // tm,),
        in_specs=[
            pl.BlockSpec((tm, d_in), lambda i: (i, 0)),
            _const_spec((d_in, d_out)),
            _const_spec((1, d_out)),
        ],
        out_specs=pl.BlockSpec((tm, d_out), lambda i: (i, 0)),
        compiler_params=pltpu.CompilerParams(
            dimension_semantics=("parallel",), vmem_limit_bytes=vmem),
        cost_estimate=pl.CostEstimate(flops=flops, transcendentals=0,
                                      bytes_accessed=bytes_acc),
    )(x2d, w, b)


def self_attention_mha(qkv3, bias, num_heads, *, compute_dtype,
                       return_weights=True):
    """qkv3: (B, Sq, 3*d) fused projections; bias: (Sq, Sq) additive mask."""
    B, Sq, d3 = qkv3.shape
    d = d3 // 3
    dk = d // num_heads
    Sk = Sq
    scale = 1.0 / math.sqrt(dk)
    kernel = functools.partial(_self_attention_kernel, scale=scale,
                               num_heads=num_heads, d_model=d,
                               compute_dtype=compute_dtype)
    out_shape = [jax.ShapeDtypeStruct((B, Sq, d), jnp.float32)]
    out_specs = [pl.BlockSpec((1, Sq, d), lambda b: (b, 0, 0))]
    if return_weights:
        out_shape.append(jax.ShapeDtypeStruct((B, num_heads, Sq, Sk),
                                              jnp.float32))
        out_specs.append(pl.BlockSpec((1, num_heads, Sq, Sk),
                                      lambda b: (b, 0, 0, 0)))
    w_bytes = 4 * num_heads * Sq * Sk if return_weights else 0
    flops = B * (4 * Sq * Sk * d + 6 * num_heads * Sq * Sk)
    bytes_acc = 4 * B * Sq * (d3 + d) + B * w_bytes + 4 * Sq * Sk
    vmem = _vmem_budget(4 * Sq * Sk,
                        4 * Sq * (d3 + d) + w_bytes + 8 * Sq * Sk)
    res = pl.pallas_call(
        kernel,
        out_shape=tuple(out_shape),
        grid=(B,),
        in_specs=[pl.BlockSpec((1, Sq, d3), lambda b: (b, 0, 0)),
                  _const_spec((Sq, Sk))],
        out_specs=tuple(out_specs),
        compiler_params=pltpu.CompilerParams(
            dimension_semantics=("parallel",), vmem_limit_bytes=vmem),
        cost_estimate=pl.CostEstimate(flops=flops,
                                      transcendentals=B * num_heads * Sq * Sk,
                                      bytes_accessed=bytes_acc),
    )(qkv3, bias)
    if return_weights:
        return res
    (ctx,) = res if isinstance(res, (tuple, list)) else (res,)
    return ctx, None


def cross_attention_mha(q3, kv3, bias, num_heads, *, compute_dtype,
                        return_weights=True):
    """q3: (B, Sq, d); kv3: (B, Sk, 2*d) fused K/V; bias: (Sq, Sk)."""
    B, Sq, d = q3.shape
    Sk = kv3.shape[1]
    dk = d // num_heads
    scale = 1.0 / math.sqrt(dk)
    kernel = functools.partial(_cross_attention_kernel, scale=scale,
                               num_heads=num_heads, d_model=d,
                               compute_dtype=compute_dtype)
    out_shape = [jax.ShapeDtypeStruct((B, Sq, d), jnp.float32)]
    out_specs = [pl.BlockSpec((1, Sq, d), lambda b: (b, 0, 0))]
    if return_weights:
        out_shape.append(jax.ShapeDtypeStruct((B, num_heads, Sq, Sk),
                                              jnp.float32))
        out_specs.append(pl.BlockSpec((1, num_heads, Sq, Sk),
                                      lambda b: (b, 0, 0, 0)))
    w_bytes = 4 * num_heads * Sq * Sk if return_weights else 0
    flops = B * (4 * Sq * Sk * d + 6 * num_heads * Sq * Sk)
    bytes_acc = 4 * B * (Sq * d + Sk * 2 * d + Sq * d) + B * w_bytes + 4 * Sq * Sk
    vmem = _vmem_budget(4 * Sq * Sk,
                        4 * (2 * Sq * d + 2 * Sk * d) + w_bytes + 8 * Sq * Sk)
    res = pl.pallas_call(
        kernel,
        out_shape=tuple(out_shape),
        grid=(B,),
        in_specs=[pl.BlockSpec((1, Sq, d), lambda b: (b, 0, 0)),
                  pl.BlockSpec((1, Sk, 2 * d), lambda b: (b, 0, 0)),
                  _const_spec((Sq, Sk))],
        out_specs=tuple(out_specs),
        compiler_params=pltpu.CompilerParams(
            dimension_semantics=("parallel",), vmem_limit_bytes=vmem),
        cost_estimate=pl.CostEstimate(flops=flops,
                                      transcendentals=B * num_heads * Sq * Sk,
                                      bytes_accessed=bytes_acc),
    )(q3, kv3, bias)
    if return_weights:
        return res
    (ctx,) = res if isinstance(res, (tuple, list)) else (res,)
    return ctx, None


def proj_add_ln(x2d, residual2d, w, b, gamma, beta, *, eps):
    m, d = x2d.shape
    tm = _pick_tm(m)
    wbytes = w.dtype.itemsize
    flops = 2 * m * d * d + 12 * m * d
    bytes_acc = 12 * m * d + wbytes * d * d + 16 * d
    vmem = _vmem_budget(wbytes * d * d + 16 * d, 4 * tm * 3 * d)
    return pl.pallas_call(
        functools.partial(_proj_add_ln_kernel, eps=eps),
        out_shape=jax.ShapeDtypeStruct((m, d), x2d.dtype),
        grid=(m // tm,),
        in_specs=[
            pl.BlockSpec((tm, d), lambda i: (i, 0)),
            pl.BlockSpec((tm, d), lambda i: (i, 0)),
            _const_spec((d, d)),
            _const_spec((1, d)),
            _const_spec((1, d)),
            _const_spec((1, d)),
        ],
        out_specs=pl.BlockSpec((tm, d), lambda i: (i, 0)),
        compiler_params=pltpu.CompilerParams(
            dimension_semantics=("parallel",), vmem_limit_bytes=vmem),
        cost_estimate=pl.CostEstimate(flops=flops, transcendentals=m,
                                      bytes_accessed=bytes_acc),
    )(x2d, residual2d, w, b, gamma, beta)


def ffn_add_ln(x2d, w1, b1, w2, b2, gamma, beta, *, eps):
    m, d = x2d.shape
    f = w1.shape[1]
    tm = _pick_tm(m)
    tf = _pick_tf(f)
    nj = f // tf
    wbytes = w1.dtype.itemsize
    flops = 4 * m * d * f + 20 * m * f + 12 * m * d
    bytes_acc = 8 * m * d + wbytes * 2 * d * f + 4 * (f + 4 * d)
    vmem = _vmem_budget(16 * d,
                        8 * tm * d                       # x block + out block
                        + wbytes * 2 * d * tf + 4 * tf   # streamed weight slabs
                        + 4 * tm * (tf + d))             # f32 hidden chunk + acc
    wkw = _weight_pipeline_kwargs() if nj == 1 else {}
    return pl.pallas_call(
        functools.partial(_ffn_add_ln_kernel, eps=eps),
        out_shape=jax.ShapeDtypeStruct((m, d), x2d.dtype),
        grid=(m // tm, nj),
        in_specs=[
            pl.BlockSpec((tm, d), lambda i, j: (i, 0)),
            pl.BlockSpec((d, tf), lambda i, j: (0, j), **wkw),
            pl.BlockSpec((1, tf), lambda i, j: (0, j), **wkw),
            pl.BlockSpec((tf, d), lambda i, j: (j, 0), **wkw),
            _const_spec((1, d)),
            _const_spec((1, d)),
            _const_spec((1, d)),
        ],
        out_specs=pl.BlockSpec((tm, d), lambda i, j: (i, 0)),
        scratch_shapes=[pltpu.VMEM((tm, d), jnp.float32)],
        compiler_params=pltpu.CompilerParams(
            dimension_semantics=("parallel", "arbitrary"),
            vmem_limit_bytes=vmem),
        cost_estimate=pl.CostEstimate(flops=flops, transcendentals=m * f + m,
                                      bytes_accessed=bytes_acc),
    )(x2d, w1, b1, w2, b2, gamma, beta)


# ----------------------------------------------------------------------------
# Parameter preparation (one-time)
# ----------------------------------------------------------------------------
def prepare_decoder_params(layer_params, compute_dtype=jnp.bfloat16):
    """Fuse QKV / KV projection weights, cast matmul weights to the MXU compute
    dtype and reshape biases / LN params to (1, n) row vectors so no concat /
    reshape runs in the per-forward hot path."""
    def cw(w):
        return jnp.asarray(w, compute_dtype)

    def row(v):
        return jnp.asarray(v, jnp.float32).reshape(1, -1)

    prepped = []
    for p in layer_params:
        prepped.append({
            "self_wqkv": cw(jnp.concatenate(
                [p["self_wq"], p["self_wk"], p["self_wv"]], axis=1)),
            "self_bqkv": row(jnp.concatenate(
                [p["self_bq"], p["self_bk"], p["self_bv"]])),
            "self_wo": cw(p["self_wo"]), "self_bo": row(p["self_bo"]),
            "cross_wq": cw(p["cross_wq"]), "cross_bq": row(p["cross_bq"]),
            "cross_wkv": cw(jnp.concatenate(
                [p["cross_wk"], p["cross_wv"]], axis=1)),
            "cross_bkv": row(jnp.concatenate([p["cross_bk"], p["cross_bv"]])),
            "cross_wo": cw(p["cross_wo"]), "cross_bo": row(p["cross_bo"]),
            "fc1_w": cw(p["fc1_w"]), "fc1_b": row(p["fc1_b"]),
            "fc2_w": cw(p["fc2_w"]), "fc2_b": row(p["fc2_b"]),
            "ln1_g": row(p["ln1_g"]), "ln1_b": row(p["ln1_b"]),
            "ln2_g": row(p["ln2_g"]), "ln2_b": row(p["ln2_b"]),
            "ln3_g": row(p["ln3_g"]), "ln3_b": row(p["ln3_b"]),
        })
    return tuple(prepped)


# ----------------------------------------------------------------------------
# Decoder layer / stack
# ----------------------------------------------------------------------------
def _decoder_layer(x, enc2d, Se, p, la_bias, pad_bias, num_heads):
    B, Sq, d = x.shape
    cd = p["self_wo"].dtype            # MXU compute dtype (bf16 by default)
    x2d = x.reshape(B * Sq, d)

    # --- masked self-attention block ----------------------------------------
    qkv = linear(x2d, p["self_wqkv"], p["self_bqkv"])          # (B*Sq, 3d)
    ctx, attn_self = self_attention_mha(qkv.reshape(B, Sq, 3 * d), la_bias,
                                        num_heads, compute_dtype=cd)
    # TODO(synk): post-attention dropout is identity (eval mode).
    x2d = proj_add_ln(ctx.reshape(B * Sq, d), x2d, p["self_wo"], p["self_bo"],
                      p["ln1_g"], p["ln1_b"], eps=SELF_LN_EPS)

    # --- cross-attention block ----------------------------------------------
    q2d = linear(x2d, p["cross_wq"], p["cross_bq"])
    kv2d = linear(enc2d, p["cross_wkv"], p["cross_bkv"])        # (B*Se, 2d)
    ctx, attn_cross = cross_attention_mha(q2d.reshape(B, Sq, d),
                                          kv2d.reshape(B, Se, 2 * d),
                                          pad_bias, num_heads, compute_dtype=cd)
    x2d = proj_add_ln(ctx.reshape(B * Sq, d), x2d, p["cross_wo"], p["cross_bo"],
                      p["ln2_g"], p["ln2_b"], eps=OTHER_LN_EPS)

    # --- feed-forward block (fc1 -> GELU -> fc2 -> +res -> LN) ---------------
    x2d = ffn_add_ln(x2d, p["fc1_w"], p["fc1_b"], p["fc2_w"], p["fc2_b"],
                     p["ln3_g"], p["ln3_b"], eps=OTHER_LN_EPS)

    return x2d.reshape(B, Sq, d), attn_self, attn_cross


@functools.partial(jax.jit, static_argnums=(5,))
def _decoder_jit(x, enc_output, la_bias, pad_bias, layer_params, num_heads):
    B, Se, d = enc_output.shape
    enc2d = enc_output.reshape(B * Se, d)
    attn1, attn2 = [], []
    for p in layer_params:
        x, a1, a2 = _decoder_layer(x, enc2d, Se, p, la_bias, pad_bias,
                                   num_heads)
        attn1.append(a1)
        attn2.append(a2)
    return x, attn1, attn2


def transformer_decoder_forward(x, enc_output, look_ahead_mask, enc_pad_mask,
                                layer_params, num_heads,
                                compute_dtype=jnp.bfloat16):
    _single_buffer_ok()        # run hardware probes eagerly (outside jit)
    _vmem_capacity_bytes()
    if not (len(layer_params) and "self_wqkv" in layer_params[0]):
        layer_params = prepare_decoder_params(layer_params, compute_dtype)
    Sq, Se = x.shape[1], enc_output.shape[1]
    la_bias = _mask_to_bias(look_ahead_mask, (Sq, Sq))
    pad_bias = _mask_to_bias(enc_pad_mask, (Sq, Se))
    return _decoder_jit(x, enc_output, la_bias, pad_bias, tuple(layer_params),
                        num_heads)


# ----------------------------------------------------------------------------
# Pure-JAX references (mirror the PyTorch module in eval mode)
# ----------------------------------------------------------------------------
def _reference_decoder(x, enc_output, look_ahead_mask, enc_pad_mask,
                       layer_params, num_heads, cast, precision):
    c = cast
    Sq, Se = x.shape[1], enc_output.shape[1]
    la_bias = _mask_to_bias(look_ahead_mask, (Sq, Sq))
    pad_bias = _mask_to_bias(enc_pad_mask, (Sq, Se))

    def mm(a, w):
        return jnp.dot(c(a), c(w), preferred_element_type=jnp.float32,
                       precision=precision)

    def attention(query, key, value, bias, p, pre):
        B, sq, d = query.shape
        sk = key.shape[1]
        dk = d // num_heads
        q = mm(query, p[pre + "_wq"]) + p[pre + "_bq"]
        k = mm(key, p[pre + "_wk"]) + p[pre + "_bk"]
        v = mm(value, p[pre + "_wv"]) + p[pre + "_bv"]
        sh = lambda t, s: t.reshape(B, s, num_heads, dk).transpose(0, 2, 1, 3)
        qh, kh, vh = sh(q, sq), sh(k, sk), sh(v, sk)
        s = jnp.einsum("bhqd,bhkd->bhqk", c(qh), c(kh),
                       preferred_element_type=jnp.float32,
                       precision=precision) / math.sqrt(dk) + bias
        w = jax.nn.softmax(s, axis=-1)
        ctx = jnp.einsum("bhqk,bhkd->bhqd", c(w), c(vh),
                         preferred_element_type=jnp.float32,
                         precision=precision)
        ctx = ctx.transpose(0, 2, 1, 3).reshape(B, sq, d)
        return mm(ctx, p[pre + "_wo"]) + p[pre + "_bo"], w

    def layer_norm(y, g, b, eps):
        mu = jnp.mean(y, axis=-1, keepdims=True)
        var = jnp.mean((y - mu) ** 2, axis=-1, keepdims=True)
        return (y - mu) / jnp.sqrt(var + eps) * g + b

    attn1, attn2 = [], []
    for p in layer_params:
        res = x
        h, a1 = attention(x, x, x, la_bias, p, "self")
        x = layer_norm(res + h, p["ln1_g"], p["ln1_b"], SELF_LN_EPS)
        res = x
        h, a2 = attention(x, enc_output, enc_output, pad_bias, p, "cross")
        x = layer_norm(res + h, p["ln2_g"], p["ln2_b"], OTHER_LN_EPS)
        res = x
        h = jax.nn.gelu(mm(x, p["fc1_w"]) + p["fc1_b"], approximate=False)
        h = mm(h, p["fc2_w"]) + p["fc2_b"]
        x = layer_norm(res + h, p["ln3_g"], p["ln3_b"], OTHER_LN_EPS)
        attn1.append(a1)
        attn2.append(a2)
    return x, attn1, attn2


def reference_decoder_f32(*args):
    """Full-f32 reference (true-f32 matmuls)."""
    return _reference_decoder(*args, cast=lambda t: t,
                              precision=jax.lax.Precision.HIGHEST)


def reference_decoder_mixed(*args, compute_dtype=jnp.bfloat16):
    """Reference with the kernel's numerics: bf16 MXU operands, f32 accumulation
    and f32 elementwise math (softmax / GELU / LayerNorm / residuals)."""
    return _reference_decoder(*args,
                              cast=lambda t: t.astype(compute_dtype),
                              precision=None)


# ----------------------------------------------------------------------------
# Parameter construction + test
# ----------------------------------------------------------------------------
def init_layer_params(key, d_model, dim_feedforward):
    keys = iter(jax.random.split(key, 32))
    nrm = lambda shape, s=0.1: s * jax.random.normal(next(keys), shape,
                                                     dtype=jnp.float32)
    p = {}
    for pre in ("self", "cross"):
        for n in ("wq", "wk", "wv", "wo"):
            p[f"{pre}_{n}"] = nrm((d_model, d_model))
        for n in ("bq", "bk", "bv", "bo"):
            p[f"{pre}_{n}"] = nrm((d_model,), 0.02)
    p["fc1_w"] = nrm((d_model, dim_feedforward))
    p["fc1_b"] = nrm((dim_feedforward,), 0.02)
    p["fc2_w"] = nrm((dim_feedforward, d_model))
    p["fc2_b"] = nrm((d_model,), 0.02)
    for n in ("ln1", "ln2", "ln3"):
        p[f"{n}_g"] = 1.0 + nrm((d_model,), 0.05)
        p[f"{n}_b"] = nrm((d_model,), 0.05)
    return p


if __name__ == "__main__":
    num_layers, d_model, num_heads = 2, 32, 4
    dim_feedforward = 4 * d_model            # module default
    batch, dec_len, enc_len = 2, 8, 10

    root = jax.random.PRNGKey(0)
    k_x, k_enc, k_layers = jax.random.split(root, 3)
    x = jax.random.normal(k_x, (batch, dec_len, d_model), dtype=jnp.float32)
    enc_output = jax.random.normal(k_enc, (batch, enc_len, d_model),
                                   dtype=jnp.float32)

    look_ahead_mask = jnp.tril(jnp.ones((dec_len, dec_len), jnp.float32))
    enc_pad_mask = jnp.ones((dec_len, enc_len), jnp.float32).at[:, -2:].set(0.0)

    raw_params = [init_layer_params(k, d_model, dim_feedforward)
                  for k in jax.random.split(k_layers, num_layers)]
    params = prepare_decoder_params(raw_params, compute_dtype=jnp.bfloat16)

    out, self_attn, cross_attn = transformer_decoder_forward(
        x, enc_output, look_ahead_mask, enc_pad_mask, params, num_heads)
    out, self_attn, cross_attn = jax.block_until_ready(
        (out, self_attn, cross_attn))

    # Reference 1: same mixed-precision math as the kernels (tight check;
    # residual differences: approximate EUP reciprocal + erf polynomial).
    mref_out, mref_self, mref_cross = reference_decoder_mixed(
        x, enc_output, look_ahead_mask, enc_pad_mask, raw_params, num_heads)
    # Reference 2: full-f32 math (loose sanity check; gap dominated by the
    # intentional bf16 MXU operands).
    fref_out, fref_self, fref_cross = reference_decoder_f32(
        x, enc_output, look_ahead_mask, enc_pad_mask, raw_params, num_heads)

    assert out.shape == (batch, dec_len, d_model)
    assert len(self_attn) == num_layers and len(cross_attn) == num_layers

    TIGHT = dict(atol=1e-2, rtol=1e-2)
    LOOSE = dict(atol=1e-1, rtol=1e-1)
    assert jnp.allclose(out, mref_out, **TIGHT), "output mismatch (mixed ref)"
    assert jnp.allclose(out, fref_out, **LOOSE), "output mismatch (f32 ref)"
    for a, mr, fr in zip(self_attn, mref_self, fref_self):
        assert a.shape == (batch, num_heads, dec_len, dec_len)
        assert jnp.allclose(a, mr, **TIGHT), "self-attn mismatch (mixed ref)"
        assert jnp.allclose(a, fr, **LOOSE), "self-attn mismatch (f32 ref)"
    for a, mr, fr in zip(cross_attn, mref_cross, fref_cross):
        assert a.shape == (batch, num_heads, dec_len, enc_len)
        assert jnp.allclose(a, mr, **TIGHT), "cross-attn mismatch (mixed ref)"
        assert jnp.allclose(a, fr, **LOOSE), "cross-attn mismatch (f32 ref)"

    print("KERNEL_OK")
</pallas_src>

<mosaic_0001>
module attributes {stable_mosaic.version = 11 : i64} {
  func.func @_copy(%arg0: i32, %arg1: memref<8x128xf32, #tpu.memory_space<vmem>>, %arg2: memref<8x128xf32, #tpu.memory_space<vmem>>) attributes {dimension_semantics = [#tpu.dimension_semantics<arbitrary>], iteration_bounds = array<i64: 4>, scalar_prefetch = 0 : i64, scratch_operands = 0 : i64, tpu.core_type = #tpu.core_type<tc>, window_params = [{pipeline_mode = #tpu.pipeline_mode<synchronous>, transform_indices = @transform_0, window_bounds = array<i64: 8, 128>}, {transform_indices = @transform_1, window_bounds = array<i64: 8, 128>}]} {
    %c0 = arith.constant 0 : index
    %c0_0 = arith.constant 0 : index
    %0 = vector.load %arg1[%c0, %c0_0] : memref<8x128xf32, #tpu.memory_space<vmem>>, vector<8x128xf32>
    %cst = arith.constant 1.000000e+00 : f32
    %1 = vector.broadcast %cst : f32 to vector<8x128xf32>
    %2 = arith.addf %0, %1 : vector<8x128xf32>
    %c0_1 = arith.constant 0 : index
    %c0_2 = arith.constant 0 : index
    %3 = vector.load %arg2[%c0_1, %c0_2] : memref<8x128xf32, #tpu.memory_space<vmem>>, vector<8x128xf32>
    tpu.vector_store %arg2[%c0_1, %c0_2], %2 {strides = array<i32>} : memref<8x128xf32, #tpu.memory_space<vmem>>, vector<8x128xf32>,
    return
  }
  func.func @transform_0(%arg0: i32) -> (i32, i32) {
    %c0_i32 = arith.constant 0 : i32
    %c0_i32_0 = arith.constant 0 : i32
    %c0_i32_1 = arith.constant 0 : i32
    return %c0_i32, %c0_i32_0 : i32, i32
  }
  func.func @transform_1(%arg0: i32) -> (i32, i32) {
    %c0_i32 = arith.constant 0 : i32
    %c0_i32_0 = arith.constant 0 : i32
    return %arg0, %c0_i32 : i32, i32
  }
}

module attributes {stable_mosaic.version = 11 : i64} {
  func.func @_linear_kernel(%arg0: i32, %arg1: memref<16x32xf32, #tpu.memory_space<vmem>>, %arg2: memref<32x32xbf16, #tpu.memory_space<vmem>>, %arg3: memref<1x32xf32, #tpu.memory_space<vmem>>, %arg4: memref<16x32xf32, #tpu.memory_space<vmem>>) attributes {dimension_semantics = [#tpu.dimension_semantics<parallel>], iteration_bounds = array<i64: 1>, scalar_prefetch = 0 : i64, scratch_operands = 0 : i64, tpu.core_type = #tpu.core_type<tc>, window_params = [{transform_indices = @transform_0, window_bounds = array<i64: 16, 32>}, {pipeline_mode = #tpu.pipeline_mode<synchronous>, transform_indices = @transform_1, window_bounds = array<i64: 32, 32>}, {pipeline_mode = #tpu.pipeline_mode<synchronous>, transform_indices = @transform_2, window_bounds = array<i64: 1, 32>}, {transform_indices = @transform_3, window_bounds = array<i64: 16, 32>}]} {
    %c0 = arith.constant 0 : index
    %c0_0 = arith.constant 0 : index
    %0 = vector.load %arg1[%c0, %c0_0] : memref<16x32xf32, #tpu.memory_space<vmem>>, vector<16x32xf32>
    %1 = arith.truncf %0 : vector<16x32xf32> to vector<16x32xbf16>
    %c0_1 = arith.constant 0 : index
    %c0_2 = arith.constant 0 : index
    %2 = vector.load %arg2[%c0_1, %c0_2] : memref<32x32xbf16, #tpu.memory_space<vmem>>, vector<32x32xbf16>
    %cst = arith.constant dense<0.000000e+00> : vector<16x32xf32>
    %3 = tpu.matmul %1, %2, %cst {dimension_numbers = #tpu.dot_dimension_numbers<[1], [0], [0], [1], [0, 0, 1, 1], [], []>} : vector<16x32xbf16>, vector<32x32xbf16>, vector<16x32xf32> -> vector<16x32xf32>
    %c0_3 = arith.constant 0 : index
    %c0_4 = arith.constant 0 : index
    %4 = vector.load %arg3[%c0_3, %c0_4] : memref<1x32xf32, #tpu.memory_space<vmem>>, vector<1x32xf32>
    %5 = vector.broadcast %4 : vector<1x32xf32> to vector<16x32xf32>
    %6 = arith.addf %3, %5 : vector<16x32xf32>
    %c0_5 = arith.constant 0 : index
    %c0_6 = arith.constant 0 : index
    %7 = vector.load %arg4[%c0_5, %c0_6] : memref<16x32xf32, #tpu.memory_space<vmem>>, vector<16x32xf32>
    tpu.vector_store %arg4[%c0_5, %c0_6], %6 {strides = array<i32>} : memref<16x32xf32, #tpu.memory_space<vmem>>, vector<16x32xf32>,
    return
  }
  func.func @transform_0(%arg0: i32) -> (i32, i32) {
    %c0_i32 = arith.constant 0 : i32
    %c0_i32_0 = arith.constant 0 : i32
    return %arg0, %c0_i32 : i32, i32
  }
  func.func @transform_1(%arg0: i32) -> (i32, i32) {
    %c0_i32 = arith.constant 0 : i32
    %c0_i32_0 = arith.constant 0 : i32
    %c0_i32_1 = arith.constant 0 : i32
    return %c0_i32, %c0_i32_0 : i32, i32
  }
  func.func @transform_2(%arg0: i32) -> (i32, i32) {
    %c0_i32 = arith.constant 0 : i32
    %c0_i32_0 = arith.constant 0 : i32
    %c0_i32_1 = arith.constant 0 : i32
    return %c0_i32, %c0_i32_0 : i32, i32
  }
  func.func @transform_3(%arg0: i32) -> (i32, i32) {
    %c0_i32 = arith.constant 0 : i32
    %c0_i32_0 = arith.constant 0 : i32
    return %arg0, %c0_i32 : i32, i32
  }
}

module attributes {stable_mosaic.version = 11 : i64} {
  func.func @_linear_kernel(%arg0: i32, %arg1: memref<16x32xf32, #tpu.memory_space<vmem>>, %arg2: memref<32x96xbf16, #tpu.memory_space<vmem>>, %arg3: memref<1x96xf32, #tpu.memory_space<vmem>>, %arg4: memref<16x96xf32, #tpu.memory_space<vmem>>) attributes {dimension_semantics = [#tpu.dimension_semantics<parallel>], iteration_bounds = array<i64: 1>, scalar_prefetch = 0 : i64, scratch_operands = 0 : i64, tpu.core_type = #tpu.core_type<tc>, window_params = [{transform_indices = @transform_0, window_bounds = array<i64: 16, 32>}, {pipeline_mode = #tpu.pipeline_mode<synchronous>, transform_indices = @transform_1, window_bounds = array<i64: 32, 96>}, {pipeline_mode = #tpu.pipeline_mode<synchronous>, transform_indices = @transform_2, window_bounds = array<i64: 1, 96>}, {transform_indices = @transform_3, window_bounds = array<i64: 16, 96>}]} {
    %c0 = arith.constant 0 : index
    %c0_0 = arith.constant 0 : index
    %0 = vector.load %arg1[%c0, %c0_0] : memref<16x32xf32, #tpu.memory_space<vmem>>, vector<16x32xf32>
    %1 = arith.truncf %0 : vector<16x32xf32> to vector<16x32xbf16>
    %c0_1 = arith.constant 0 : index
    %c0_2 = arith.constant 0 : index
    %2 = vector.load %arg2[%c0_1, %c0_2] : memref<32x96xbf16, #tpu.memory_space<vmem>>, vector<32x96xbf16>
    %cst = arith.constant dense<0.000000e+00> : vector<16x96xf32>
    %3 = tpu.matmul %1, %2, %cst {dimension_numbers = #tpu.dot_dimension_numbers<[1], [0], [0], [1], [0, 0, 1, 1], [], []>} : vector<16x32xbf16>, vector<32x96xbf16>, vector<16x96xf32> -> vector<16x96xf32>
    %c0_3 = arith.constant 0 : index
    %c0_4 = arith.constant 0 : index
    %4 = vector.load %arg3[%c0_3, %c0_4] : memref<1x96xf32, #tpu.memory_space<vmem>>, vector<1x96xf32>
    %5 = vector.broadcast %4 : vector<1x96xf32> to vector<16x96xf32>
    %6 = arith.addf %3, %5 : vector<16x96xf32>
    %c0_5 = arith.constant 0 : index
    %c0_6 = arith.constant 0 : index
    %7 = vector.load %arg4[%c0_5, %c0_6] : memref<16x96xf32, #tpu.memory_space<vmem>>, vector<16x96xf32>
    tpu.vector_store %arg4[%c0_5, %c0_6], %6 {strides = array<i32>} : memref<16x96xf32, #tpu.memory_space<vmem>>, vector<16x96xf32>,
    return
  }
  func.func @transform_0(%arg0: i32) -> (i32, i32) {
    %c0_i32 = arith.constant 0 : i32
    %c0_i32_0 = arith.constant 0 : i32
    return %arg0, %c0_i32 : i32, i32
  }
  func.func @transform_1(%arg0: i32) -> (i32, i32) {
    %c0_i32 = arith.constant 0 : i32
    %c0_i32_0 = arith.constant 0 : i32
    %c0_i32_1 = arith.constant 0 : i32
    return %c0_i32, %c0_i32_0 : i32, i32
  }
  func.func @transform_2(%arg0: i32) -> (i32, i32) {
    %c0_i32 = arith.constant 0 : i32
    %c0_i32_0 = arith.constant 0 : i32
    %c0_i32_1 = arith.constant 0 : i32
    return %c0_i32, %c0_i32_0 : i32, i32
  }
  func.func @transform_3(%arg0: i32) -> (i32, i32) {
    %c0_i32 = arith.constant 0 : i32
    %c0_i32_0 = arith.constant 0 : i32
    return %arg0, %c0_i32 : i32, i32
  }
}

module attributes {stable_mosaic.version = 11 : i64} {
  func.func @_proj_add_ln_kernel(%arg0: i32, %arg1: memref<16x32xf32, #tpu.memory_space<vmem>>, %arg2: memref<16x32xf32, #tpu.memory_space<vmem>>, %arg3: memref<32x32xbf16, #tpu.memory_space<vmem>>, %arg4: memref<1x32xf32, #tpu.memory_space<vmem>>, %arg5: memref<1x32xf32, #tpu.memory_space<vmem>>, %arg6: memref<1x32xf32, #tpu.memory_space<vmem>>, %arg7: memref<16x32xf32, #tpu.memory_space<vmem>>) attributes {dimension_semantics = [#tpu.dimension_semantics<parallel>], iteration_bounds = array<i64: 1>, scalar_prefetch = 0 : i64, scratch_operands = 0 : i64, tpu.core_type = #tpu.core_type<tc>, window_params = [{transform_indices = @transform_0, window_bounds = array<i64: 16, 32>}, {transform_indices = @transform_1, window_bounds = array<i64: 16, 32>}, {pipeline_mode = #tpu.pipeline_mode<synchronous>, transform_indices = @transform_2, window_bounds = array<i64: 32, 32>}, {pipeline_mode = #tpu.pipeline_mode<synchronous>, transform_indices = @transform_3, window_bounds = array<i64: 1, 32>}, {pipeline_mode = #tpu.pipeline_mode<synchronous>, transform_indices = @transform_4, window_bounds = array<i64: 1, 32>}, {pipeline_mode = #tpu.pipeline_mode<synchronous>, transform_indices = @transform_5, window_bounds = array<i64: 1, 32>}, {transform_indices = @transform_6, window_bounds = array<i64: 16, 32>}]} {
    %c0 = arith.constant 0 : index
    %c0_0 = arith.constant 0 : index
    %0 = vector.load %arg1[%c0, %c0_0] : memref<16x32xf32, #tpu.memory_space<vmem>>, vector<16x32xf32>
    %1 = arith.truncf %0 : vector<16x32xf32> to vector<16x32xbf16>
    %c0_1 = arith.constant 0 : index
    %c0_2 = arith.constant 0 : index
    %2 = vector.load %arg3[%c0_1, %c0_2] : memref<32x32xbf16, #tpu.memory_space<vmem>>, vector<32x32xbf16>
    %cst = arith.constant dense<0.000000e+00> : vector<16x32xf32>
    %3 = tpu.matmul %1, %2, %cst {dimension_numbers = #tpu.dot_dimension_numbers<[1], [0], [0], [1], [0, 0, 1, 1], [], []>} : vector<16x32xbf16>, vector<32x32xbf16>, vector<16x32xf32> -> vector<16x32xf32>
    %c0_3 = arith.constant 0 : index
    %c0_4 = arith.constant 0 : index
    %4 = vector.load %arg4[%c0_3, %c0_4] : memref<1x32xf32, #tpu.memory_space<vmem>>, vector<1x32xf32>
    %5 = vector.broadcast %4 : vector<1x32xf32> to vector<16x32xf32>
    %6 = arith.addf %3, %5 : vector<16x32xf32>
    %c0_5 = arith.constant 0 : index
    %c0_6 = arith.constant 0 : index
    %7 = vector.load %arg2[%c0_5, %c0_6] : memref<16x32xf32, #tpu.memory_space<vmem>>, vector<16x32xf32>
    %8 = arith.addf %6, %7 : vector<16x32xf32>
    %c0_7 = arith.constant 0 : index
    %c0_8 = arith.constant 0 : index
    %9 = vector.load %arg5[%c0_7, %c0_8] : memref<1x32xf32, #tpu.memory_space<vmem>>, vector<1x32xf32>
    %c0_9 = arith.constant 0 : index
    %c0_10 = arith.constant 0 : index
    %10 = vector.load %arg6[%c0_9, %c0_10] : memref<1x32xf32, #tpu.memory_space<vmem>>, vector<1x32xf32>
    %cst_11 = arith.constant dense<0.000000e+00> : vector<16xf32>
    %11 = vector.multi_reduction <add>, %8, %cst_11 [1] : vector<16x32xf32> to vector<16xf32>
    %12 = vector.shape_cast %11 : vector<16xf32> to vector<16x1xf32>
    %cst_12 = arith.constant 3.200000e+01 : f32
    %13 = vector.broadcast %cst_12 : f32 to vector<16x1xf32>
    %14 = arith.divf %12, %13 : vector<16x1xf32>
    %15 = vector.broadcast %14 : vector<16x1xf32> to vector<16x32xf32>
    %16 = arith.subf %8, %15 : vector<16x32xf32>
    %17 = arith.mulf %16, %16 : vector<16x32xf32>
    %cst_13 = arith.constant dense<0.000000e+00> : vector<16xf32>
    %18 = vector.multi_reduction <add>, %17, %cst_13 [1] : vector<16x32xf32> to vector<16xf32>
    %19 = vector.shape_cast %18 : vector<16xf32> to vector<16x1xf32>
    %cst_14 = arith.constant 3.200000e+01 : f32
    %20 = vector.broadcast %cst_14 : f32 to vector<16x1xf32>
    %21 = arith.divf %19, %20 : vector<16x1xf32>
    %cst_15 = arith.constant 9.99999974E-6 : f32
    %22 = vector.broadcast %cst_15 : f32 to vector<16x1xf32>
    %23 = arith.addf %21, %22 : vector<16x1xf32>
    %24 = math.rsqrt %23 : vector<16x1xf32>
    %25 = vector.broadcast %24 : vector<16x1xf32> to vector<16x32xf32>
    %26 = arith.mulf %16, %25 : vector<16x32xf32>
    %27 = vector.broadcast %9 : vector<1x32xf32> to vector<16x32xf32>
    %28 = arith.mulf %26, %27 : vector<16x32xf32>
    %29 = vector.broadcast %10 : vector<1x32xf32> to vector<16x32xf32>
    %30 = arith.addf %28, %29 : vector<16x32xf32>
    %c0_16 = arith.constant 0 : index
    %c0_17 = arith.constant 0 : index
    %31 = vector.load %arg7[%c0_16, %c0_17] : memref<16x32xf32, #tpu.memory_space<vmem>>, vector<16x32xf32>
    tpu.vector_store %arg7[%c0_16, %c0_17], %30 {strides = array<i32>} : memref<16x32xf32, #tpu.memory_space<vmem>>, vector<16x32xf32>,
    return
  }
  func.func @transform_0(%arg0: i32) -> (i32, i32) {
    %c0_i32 = arith.constant 0 : i32
    %c0_i32_0 = arith.constant 0 : i32
    return %arg0, %c0_i32 : i32, i32
  }
  func.func @transform_1(%arg0: i32) -> (i32, i32) {
    %c0_i32 = arith.constant 0 : i32
    %c0_i32_0 = arith.constant 0 : i32
    return %arg0, %c0_i32 : i32, i32
  }
  func.func @transform_2(%arg0: i32) -> (i32, i32) {
    %c0_i32 = arith.constant 0 : i32
    %c0_i32_0 = arith.constant 0 : i32
    %c0_i32_1 = arith.constant 0 : i32
    return %c0_i32, %c0_i32_0 : i32, i32
  }
  func.func @transform_3(%arg0: i32) -> (i32, i32) {
    %c0_i32 = arith.constant 0 : i32
    %c0_i32_0 = arith.constant 0 : i32
    %c0_i32_1 = arith.constant 0 : i32
    return %c0_i32, %c0_i32_0 : i32, i32
  }
  func.func @transform_4(%arg0: i32) -> (i32, i32) {
    %c0_i32 = arith.constant 0 : i32
    %c0_i32_0 = arith.constant 0 : i32
    %c0_i32_1 = arith.constant 0 : i32
    return %c0_i32, %c0_i32_0 : i32, i32
  }
  func.func @transform_5(%arg0: i32) -> (i32, i32) {
    %c0_i32 = arith.constant 0 : i32
    %c0_i32_0 = arith.constant 0 : i32
    %c0_i32_1 = arith.constant 0 : i32
    return %c0_i32, %c0_i32_0 : i32, i32
  }
  func.func @transform_6(%arg0: i32) -> (i32, i32) {
    %c0_i32 = arith.constant 0 : i32
    %c0_i32_0 = arith.constant 0 : i32
    return %arg0, %c0_i32 : i32, i32
  }
}

module attributes {stable_mosaic.version = 11 : i64} {
  func.func @_self_attention_kernel(%arg0: i32, %arg1: memref<1x8x96xf32, #tpu.memory_space<vmem>>, %arg2: memref<8x8xf32, #tpu.memory_space<vmem>>, %arg3: memref<1x8x32xf32, #tpu.memory_space<vmem>>, %arg4: memref<1x4x8x8xf32, #tpu.memory_space<vmem>>) attributes {dimension_semantics = [#tpu.dimension_semantics<parallel>], iteration_bounds = array<i64: 2>, scalar_prefetch = 0 : i64, scratch_operands = 0 : i64, tpu.core_type = #tpu.core_type<tc>, window_params = [{transform_indices = @transform_0, window_bounds = array<i64: 1, 8, 96>}, {pipeline_mode = #tpu.pipeline_mode<synchronous>, transform_indices = @transform_1, window_bounds = array<i64: 8, 8>}, {transform_indices = @transform_2, window_bounds = array<i64: 1, 8, 32>}, {transform_indices = @transform_3, window_bounds = array<i64: 1, 4, 8, 8>}]} {
    %c0 = arith.constant 0 : index
    %c0_0 = arith.constant 0 : index
    %c0_1 = arith.constant 0 : index
    %0 = vector.load %arg1[%c0, %c0_0, %c0_1] : memref<1x8x96xf32, #tpu.memory_space<vmem>>, vector<1x8x96xf32>
    %1 = vector.shape_cast %0 : vector<1x8x96xf32> to vector<8x96xf32>
    %2 = vector.extract_strided_slice %1 {offsets = [0, 0], sizes = [8, 32], strides = [1, 1]} : vector<8x96xf32> to vector<8x32xf32>
    %3 = vector.extract_strided_slice %1 {offsets = [0, 32], sizes = [8, 32], strides = [1, 1]} : vector<8x96xf32> to vector<8x32xf32>
    %4 = vector.extract_strided_slice %1 {offsets = [0, 64], sizes = [8, 32], strides = [1, 1]} : vector<8x96xf32> to vector<8x32xf32>
    %c0_2 = arith.constant 0 : index
    %c0_3 = arith.constant 0 : index
    %5 = vector.load %arg2[%c0_2, %c0_3] : memref<8x8xf32, #tpu.memory_space<vmem>>, vector<8x8xf32>
    %6 = vector.extract_strided_slice %2 {offsets = [0, 0], sizes = [8, 8], strides = [1, 1]} : vector<8x32xf32> to vector<8x8xf32>
    %7 = arith.truncf %6 : vector<8x8xf32> to vector<8x8xbf16>
    %8 = vector.extract_strided_slice %3 {offsets = [0, 0], sizes = [8, 8], strides = [1, 1]} : vector<8x32xf32> to vector<8x8xf32>
    %9 = arith.truncf %8 : vector<8x8xf32> to vector<8x8xbf16>
    %10 = vector.extract_strided_slice %4 {offsets = [0, 0], sizes = [8, 8], strides = [1, 1]} : vector<8x32xf32> to vector<8x8xf32>
    %11 = arith.truncf %10 : vector<8x8xf32> to vector<8x8xbf16>
    %cst = arith.constant dense<0.000000e+00> : vector<8x8xf32>
    %12 = tpu.matmul %7, %9, %cst {dimension_numbers = #tpu.dot_dimension_numbers<[1], [1], [0], [0], [0, 0, 1, 0], [], []>} : vector<8x8xbf16>, vector<8x8xbf16>, vector<8x8xf32> -> vector<8x8xf32>
    %cst_4 = arith.constant 0.353553385 : f32
    %13 = vector.broadcast %cst_4 : f32 to vector<8x8xf32>
    %14 = arith.mulf %12, %13 : vector<8x8xf32>
    %15 = arith.addf %14, %5 : vector<8x8xf32>
    %cst_5 = arith.constant dense<0xFF800000> : vector<8xf32>
    %16 = vector.multi_reduction <maximumf>, %15, %cst_5 [1] : vector<8x8xf32> to vector<8xf32>
    %17 = vector.shape_cast %16 : vector<8xf32> to vector<8x1xf32>
    %18 = vector.broadcast %17 : vector<8x1xf32> to vector<8x8xf32>
    %19 = arith.subf %15, %18 : vector<8x8xf32>
    %20 = math.exp %19 : vector<8x8xf32>
    %cst_6 = arith.constant dense<0.000000e+00> : vector<8xf32>
    %21 = vector.multi_reduction <add>, %20, %cst_6 [1] : vector<8x8xf32> to vector<8xf32>
    %22 = vector.shape_cast %21 : vector<8xf32> to vector<8x1xf32>
    %23 = tpu.reciprocal %22 {approx = true} : vector<8x1xf32> -> vector<8x1xf32>
    %24 = vector.broadcast %23 : vector<8x1xf32> to vector<8x8xf32>
    %25 = arith.mulf %20, %24 : vector<8x8xf32>
    %c0_7 = arith.constant 0 : index
    %c0_8 = arith.constant 0 : index
    %c0_9 = arith.constant 0 : index
    %c0_10 = arith.constant 0 : index
    %26 = vector.load %arg4[%c0_7, %c0_8, %c0_9, %c0_10] : memref<1x4x8x8xf32, #tpu.memory_space<vmem>>, vector<1x1x8x8xf32>
    %27 = vector.shape_cast %26 : vector<1x1x8x8xf32> to vector<8x8xf32>
    %28 = vector.shape_cast %25 : vector<8x8xf32> to vector<1x1x8x8xf32>
    tpu.vector_store %arg4[%c0_7, %c0_8, %c0_9, %c0_10], %28 {strides = array<i32>} : memref<1x4x8x8xf32, #tpu.memory_space<vmem>>, vector<1x1x8x8xf32>,
    %29 = arith.truncf %25 : vector<8x8xf32> to vector<8x8xbf16>
    %cst_11 = arith.constant dense<0.000000e+00> : vector<8x8xf32>
    %30 = tpu.matmul %29, %11, %cst_11 {dimension_numbers = #tpu.dot_dimension_numbers<[1], [0], [0], [1], [0, 0, 1, 1], [], []>} : vector<8x8xbf16>, vector<8x8xbf16>, vector<8x8xf32> -> vector<8x8xf32>
    %31 = vector.extract_strided_slice %2 {offsets = [0, 8], sizes = [8, 8], strides = [1, 1]} : vector<8x32xf32> to vector<8x8xf32>
    %32 = arith.truncf %31 : vector<8x8xf32> to vector<8x8xbf16>
    %33 = vector.extract_strided_slice %3 {offsets = [0, 8], sizes = [8, 8], strides = [1, 1]} : vector<8x32xf32> to vector<8x8xf32>
    %34 = arith.truncf %33 : vector<8x8xf32> to vector<8x8xbf16>
    %35 = vector.extract_strided_slice %4 {offsets = [0, 8], sizes = [8, 8], strides = [1, 1]} : vector<8x32xf32> to vector<8x8xf32>
    %36 = arith.truncf %35 : vector<8x8xf32> to vector<8x8xbf16>
    %cst_12 = arith.constant dense<0.000000e+00> : vector<8x8xf32>
    %37 = tpu.matmul %32, %34, %cst_12 {dimension_numbers = #tpu.dot_dimension_numbers<[1], [1], [0], [0], [0, 0, 1, 0], [], []>} : vector<8x8xbf16>, vector<8x8xbf16>, vector<8x8xf32> -> vector<8x8xf32>
    %cst_13 = arith.constant 0.353553385 : f32
    %38 = vector.broadcast %cst_13 : f32 to vector<8x8xf32>
    %39 = arith.mulf %37, %38 : vector<8x8xf32>
    %40 = arith.addf %39, %5 : vector<8x8xf32>
    %cst_14 = arith.constant dense<0xFF800000> : vector<8xf32>
    %41 = vector.multi_reduction <maximumf>, %40, %cst_14 [1] : vector<8x8xf32> to vector<8xf32>
    %42 = vector.shape_cast %41 : vector<8xf32> to vector<8x1xf32>
    %43 = vector.broadcast %42 : vector<8x1xf32> to vector<8x8xf32>
    %44 = arith.subf %40, %43 : vector<8x8xf32>
    %45 = math.exp %44 : vector<8x8xf32>
    %cst_15 = arith.constant dense<0.000000e+00> : vector<8xf32>
    %46 = vector.multi_reduction <add>, %45, %cst_15 [1] : vector<8x8xf32> to vector<8xf32>
    %47 = vector.shape_cast %46 : vector<8xf32> to vector<8x1xf32>
    %48 = tpu.reciprocal %47 {approx = true} : vector<8x1xf32> -> vector<8x1xf32>
    %49 = vector.broadcast %48 : vector<8x1xf32> to vector<8x8xf32>
    %50 = arith.mulf %45, %49 : vector<8x8xf32>
    %c0_16 = arith.constant 0 : index
    %c1 = arith.constant 1 : index
    %c0_17 = arith.constant 0 : index
    %c0_18 = arith.constant 0 : index
    %51 = vector.load %arg4[%c0_16, %c1, %c0_17, %c0_18] : memref<1x4x8x8xf32, #tpu.memory_space<vmem>>, vector<1x1x8x8xf32>
    %52 = vector.shape_cast %51 : vector<1x1x8x8xf32> to vector<8x8xf32>
    %53 = vector.shape_cast %50 : vector<8x8xf32> to vector<1x1x8x8xf32>
    tpu.vector_store %arg4[%c0_16, %c1, %c0_17, %c0_18], %53 {strides = array<i32>} : memref<1x4x8x8xf32, #tpu.memory_space<vmem>>, vector<1x1x8x8xf32>,
    %54 = arith.truncf %50 : vector<8x8xf32> to vector<8x8xbf16>
    %cst_19 = arith.constant dense<0.000000e+00> : vector<8x8xf32>
    %55 = tpu.matmul %54, %36, %cst_19 {dimension_numbers = #tpu.dot_dimension_numbers<[1], [0], [0], [1], [0, 0, 1, 1], [], []>} : vector<8x8xbf16>, vector<8x8xbf16>, vector<8x8xf32> -> vector<8x8xf32>
    %56 = vector.extract_strided_slice %2 {offsets = [0, 16], sizes = [8, 8], strides = [1, 1]} : vector<8x32xf32> to vector<8x8xf32>
    %57 = arith.truncf %56 : vector<8x8xf32> to vector<8x8xbf16>
    %58 = vector.extract_strided_slice %3 {offsets = [0, 16], sizes = [8, 8], strides = [1, 1]} : vector<8x32xf32> to vector<8x8xf32>
    %59 = arith.truncf %58 : vector<8x8xf32> to vector<8x8xbf16>
    %60 = vector.extract_strided_slice %4 {offsets = [0, 16], sizes = [8, 8], strides = [1, 1]} : vector<8x32xf32> to vector<8x8xf32>
    %61 = arith.truncf %60 : vector<8x8xf32> to vector<8x8xbf16>
    %cst_20 = arith.constant dense<0.000000e+00> : vector<8x8xf32>
    %62 = tpu.matmul %57, %59, %cst_20 {dimension_numbers = #tpu.dot_dimension_numbers<[1], [1], [0], [0], [0, 0, 1, 0], [], []>} : vector<8x8xbf16>, vector<8x8xbf16>, vector<8x8xf32> -> vector<8x8xf32>
    %cst_21 = arith.constant 0.353553385 : f32
    %63 = vector.broadcast %cst_21 : f32 to vector<8x8xf32>
    %64 = arith.mulf %62, %63 : vector<8x8xf32>
    %65 = arith.addf %64, %5 : vector<8x8xf32>
    %cst_22 = arith.constant dense<0xFF800000> : vector<8xf32>
    %66 = vector.multi_reduction <maximumf>, %65, %cst_22 [1] : vector<8x8xf32> to vector<8xf32>
    %67 = vector.shape_cast %66 : vector<8xf32> to vector<8x1xf32>
    %68 = vector.broadcast %67 : vector<8x1xf32> to vector<8x8xf32>
    %69 = arith.subf %65, %68 : vector<8x8xf32>
    %70 = math.exp %69 : vector<8x8xf32>
    %cst_23 = arith.constant dense<0.000000e+00> : vector<8xf32>
    %71 = vector.multi_reduction <add>, %70, %cst_23 [1] : vector<8x8xf32> to vector<8xf32>
    %72 = vector.shape_cast %71 : vector<8xf32> to vector<8x1xf32>
    %73 = tpu.reciprocal %72 {approx = true} : vector<8x1xf32> -> vector<8x1xf32>
    %74 = vector.broadcast %73 : vector<8x1xf32> to vector<8x8xf32>
    %75 = arith.mulf %70, %74 : vector<8x8xf32>
    %c0_24 = arith.constant 0 : index
    %c2 = arith.constant 2 : index
    %c0_25 = arith.constant 0 : index
    %c0_26 = arith.constant 0 : index
    %76 = vector.load %arg4[%c0_24, %c2, %c0_25, %c0_26] : memref<1x4x8x8xf32, #tpu.memory_space<vmem>>, vector<1x1x8x8xf32>
    %77 = vector.shape_cast %76 : vector<1x1x8x8xf32> to vector<8x8xf32>
    %78 = vector.shape_cast %75 : vector<8x8xf32> to vector<1x1x8x8xf32>
    tpu.vector_store %arg4[%c0_24, %c2, %c0_25, %c0_26], %78 {strides = array<i32>} : memref<1x4x8x8xf32, #tpu.memory_space<vmem>>, vector<1x1x8x8xf32>,
    %79 = arith.truncf %75 : vector<8x8xf32> to vector<8x8xbf16>
    %cst_27 = arith.constant dense<0.000000e+00> : vector<8x8xf32>
    %80 = tpu.matmul %79, %61, %cst_27 {dimension_numbers = #tpu.dot_dimension_numbers<[1], [0], [0], [1], [0, 0, 1, 1], [], []>} : vector<8x8xbf16>, vector<8x8xbf16>, vector<8x8xf32> -> vector<8x8xf32>
    %81 = vector.extract_strided_slice %2 {offsets = [0, 24], sizes = [8, 8], strides = [1, 1]} : vector<8x32xf32> to vector<8x8xf32>
    %82 = arith.truncf %81 : vector<8x8xf32> to vector<8x8xbf16>
    %83 = vector.extract_strided_slice %3 {offsets = [0, 24], sizes = [8, 8], strides = [1, 1]} : vector<8x32xf32> to vector<8x8xf32>
    %84 = arith.truncf %83 : vector<8x8xf32> to vector<8x8xbf16>
    %85 = vector.extract_strided_slice %4 {offsets = [0, 24], sizes = [8, 8], strides = [1, 1]} : vector<8x32xf32> to vector<8x8xf32>
    %86 = arith.truncf %85 : vector<8x8xf32> to vector<8x8xbf16>
    %cst_28 = arith.constant dense<0.000000e+00> : vector<8x8xf32>
    %87 = tpu.matmul %82, %84, %cst_28 {dimension_numbers = #tpu.dot_dimension_numbers<[1], [1], [0], [0], [0, 0, 1, 0], [], []>} : vector<8x8xbf16>, vector<8x8xbf16>, vector<8x8xf32> -> vector<8x8xf32>
    %cst_29 = arith.constant 0.353553385 : f32
    %88 = vector.broadcast %cst_29 : f32 to vector<8x8xf32>
    %89 = arith.mulf %87, %88 : vector<8x8xf32>
    %90 = arith.addf %89, %5 : vector<8x8xf32>
    %cst_30 = arith.constant dense<0xFF800000> : vector<8xf32>
    %91 = vector.multi_reduction <maximumf>, %90, %cst_30 [1] : vector<8x8xf32> to vector<8xf32>
    %92 = vector.shape_cast %91 : vector<8xf32> to vector<8x1xf32>
    %93 = vector.broadcast %92 : vector<8x1xf32> to vector<8x8xf32>
    %94 = arith.subf %90, %93 : vector<8x8xf32>
    %95 = math.exp %94 : vector<8x8xf32>
    %cst_31 = arith.constant dense<0.000000e+00> : vector<8xf32>
    %96 = vector.multi_reduction <add>, %95, %cst_31 [1] : vector<8x8xf32> to vector<8xf32>
    %97 = vector.shape_cast %96 : vector<8xf32> to vector<8x1xf32>
    %98 = tpu.reciprocal %97 {approx = true} : vector<8x1xf32> -> vector<8x1xf32>
    %99 = vector.broadcast %98 : vector<8x1xf32> to vector<8x8xf32>
    %100 = arith.mulf %95, %99 : vector<8x8xf32>
    %c0_32 = arith.constant 0 : index
    %c3 = arith.constant 3 : index
    %c0_33 = arith.constant 0 : index
    %c0_34 = arith.constant 0 : index
    %101 = vector.load %arg4[%c0_32, %c3, %c0_33, %c0_34] : memref<1x4x8x8xf32, #tpu.memory_space<vmem>>, vector<1x1x8x8xf32>
    %102 = vector.shape_cast %101 : vector<1x1x8x8xf32> to vector<8x8xf32>
    %103 = vector.shape_cast %100 : vector<8x8xf32> to vector<1x1x8x8xf32>
    tpu.vector_store %arg4[%c0_32, %c3, %c0_33, %c0_34], %103 {strides = array<i32>} : memref<1x4x8x8xf32, #tpu.memory_space<vmem>>, vector<1x1x8x8xf32>,
    %104 = arith.truncf %100 : vector<8x8xf32> to vector<8x8xbf16>
    %cst_35 = arith.constant dense<0.000000e+00> : vector<8x8xf32>
    %105 = tpu.matmul %104, %86, %cst_35 {dimension_numbers = #tpu.dot_dimension_numbers<[1], [0], [0], [1], [0, 0, 1, 1], [], []>} : vector<8x8xbf16>, vector<8x8xbf16>, vector<8x8xf32> -> vector<8x8xf32>
    %106 = tpu.concatenate %30, %55, %80, %105 in 1 : vector<8x8xf32>, vector<8x8xf32>, vector<8x8xf32>, vector<8x8xf32> -> vector<8x32xf32>
    %c0_36 = arith.constant 0 : index
    %c0_37 = arith.constant 0 : index
    %c0_38 = arith.constant 0 : index
    %107 = vector.load %arg3[%c0_36, %c0_37, %c0_38] : memref<1x8x32xf32, #tpu.memory_space<vmem>>, vector<1x8x32xf32>
    %108 = vector.shape_cast %107 : vector<1x8x32xf32> to vector<8x32xf32>
    %109 = vector.shape_cast %106 : vector<8x32xf32> to vector<1x8x32xf32>
    tpu.vector_store %arg3[%c0_36, %c0_37, %c0_38], %109 {strides = array<i32>} : memref<1x8x32xf32, #tpu.memory_space<vmem>>, vector<1x8x32xf32>,
    return
  }
  func.func @transform_0(%arg0: i32) -> (i32, i32, i32) {
    %c0_i32 = arith.constant 0 : i32
    %c0_i32_0 = arith.constant 0 : i32
    %c0_i32_1 = arith.constant 0 : i32
    return %arg0, %c0_i32, %c0_i32_0 : i32, i32, i32
  }
  func.func @transform_1(%arg0: i32) -> (i32, i32) {
    %c0_i32 = arith.constant 0 : i32
    %c0_i32_0 = arith.constant 0 : i32
    %c0_i32_1 = arith.constant 0 : i32
    return %c0_i32, %c0_i32_0 : i32, i32
  }
  func.func @transform_2(%arg0: i32) -> (i32, i32, i32) {
    %c0_i32 = arith.constant 0 : i32
    %c0_i32_0 = arith.constant 0 : i32
    %c0_i32_1 = arith.constant 0 : i32
    return %arg0, %c0_i32, %c0_i32_0 : i32, i32, i32
  }
  func.func @transform_3(%arg0: i32) -> (i32, i32, i32, i32) {
    %c0_i32 = arith.constant 0 : i32
    %c0_i32_0 = arith.constant 0 : i32
    %c0_i32_1 = arith.constant 0 : i32
    %c0_i32_2 = arith.constant 0 : i32
    return %arg0, %c0_i32, %c0_i32_0, %c0_i32_1 : i32, i32, i32, i32
  }
}

module attributes {stable_mosaic.version = 11 : i64} {
  func.func @_linear_kernel(%arg0: i32, %arg1: memref<20x32xf32, #tpu.memory_space<vmem>>, %arg2: memref<32x64xbf16, #tpu.memory_space<vmem>>, %arg3: memref<1x64xf32, #tpu.memory_space<vmem>>, %arg4: memref<20x64xf32, #tpu.memory_space<vmem>>) attributes {dimension_semantics = [#tpu.dimension_semantics<parallel>], iteration_bounds = array<i64: 1>, scalar_prefetch = 0 : i64, scratch_operands = 0 : i64, tpu.core_type = #tpu.core_type<tc>, window_params = [{transform_indices = @transform_0, window_bounds = array<i64: 20, 32>}, {pipeline_mode = #tpu.pipeline_mode<synchronous>, transform_indices = @transform_1, window_bounds = array<i64: 32, 64>}, {pipeline_mode = #tpu.pipeline_mode<synchronous>, transform_indices = @transform_2, window_bounds = array<i64: 1, 64>}, {transform_indices = @transform_3, window_bounds = array<i64: 20, 64>}]} {
    %c0 = arith.constant 0 : index
    %c0_0 = arith.constant 0 : index
    %0 = vector.load %arg1[%c0, %c0_0] : memref<20x32xf32, #tpu.memory_space<vmem>>, vector<20x32xf32>
    %1 = arith.truncf %0 : vector<20x32xf32> to vector<20x32xbf16>
    %c0_1 = arith.constant 0 : index
    %c0_2 = arith.constant 0 : index
    %2 = vector.load %arg2[%c0_1, %c0_2] : memref<32x64xbf16, #tpu.memory_space<vmem>>, vector<32x64xbf16>
    %cst = arith.constant dense<0.000000e+00> : vector<20x64xf32>
    %3 = tpu.matmul %1, %2, %cst {dimension_numbers = #tpu.dot_dimension_numbers<[1], [0], [0], [1], [0, 0, 1, 1], [], []>} : vector<20x32xbf16>, vector<32x64xbf16>, vector<20x64xf32> -> vector<20x64xf32>
    %c0_3 = arith.constant 0 : index
    %c0_4 = arith.constant 0 : index
    %4 = vector.load %arg3[%c0_3, %c0_4] : memref<1x64xf32, #tpu.memory_space<vmem>>, vector<1x64xf32>
    %5 = vector.broadcast %4 : vector<1x64xf32> to vector<20x64xf32>
    %6 = arith.addf %3, %5 : vector<20x64xf32>
    %c0_5 = arith.constant 0 : index
    %c0_6 = arith.constant 0 : index
    %7 = vector.load %arg4[%c0_5, %c0_6] : memref<20x64xf32, #tpu.memory_space<vmem>>, vector<20x64xf32>
    tpu.vector_store %arg4[%c0_5, %c0_6], %6 {strides = array<i32>} : memref<20x64xf32, #tpu.memory_space<vmem>>, vector<20x64xf32>,
    return
  }
  func.func @transform_0(%arg0: i32) -> (i32, i32) {
    %c0_i32 = arith.constant 0 : i32
    %c0_i32_0 = arith.constant 0 : i32
    return %arg0, %c0_i32 : i32, i32
  }
  func.func @transform_1(%arg0: i32) -> (i32, i32) {
    %c0_i32 = arith.constant 0 : i32
    %c0_i32_0 = arith.constant 0 : i32
    %c0_i32_1 = arith.constant 0 : i32
    return %c0_i32, %c0_i32_0 : i32, i32
  }
  func.func @transform_2(%arg0: i32) -> (i32, i32) {
    %c0_i32 = arith.constant 0 : i32
    %c0_i32_0 = arith.constant 0 : i32
    %c0_i32_1 = arith.constant 0 : i32
    return %c0_i32, %c0_i32_0 : i32, i32
  }
  func.func @transform_3(%arg0: i32) -> (i32, i32) {
    %c0_i32 = arith.constant 0 : i32
    %c0_i32_0 = arith.constant 0 : i32
    return %arg0, %c0_i32 : i32, i32
  }
}

module attributes {stable_mosaic.version = 11 : i64} {
  func.func @_cross_attention_kernel(%arg0: i32, %arg1: memref<1x8x32xf32, #tpu.memory_space<vmem>>, %arg2: memref<1x10x64xf32, #tpu.memory_space<vmem>>, %arg3: memref<8x10xf32, #tpu.memory_space<vmem>>, %arg4: memref<1x8x32xf32, #tpu.memory_space<vmem>>, %arg5: memref<1x4x8x10xf32, #tpu.memory_space<vmem>>) attributes {dimension_semantics = [#tpu.dimension_semantics<parallel>], iteration_bounds = array<i64: 2>, scalar_prefetch = 0 : i64, scratch_operands = 0 : i64, tpu.core_type = #tpu.core_type<tc>, window_params = [{transform_indices = @transform_0, window_bounds = array<i64: 1, 8, 32>}, {transform_indices = @transform_1, window_bounds = array<i64: 1, 10, 64>}, {pipeline_mode = #tpu.pipeline_mode<synchronous>, transform_indices = @transform_2, window_bounds = array<i64: 8, 10>}, {transform_indices = @transform_3, window_bounds = array<i64: 1, 8, 32>}, {transform_indices = @transform_4, window_bounds = array<i64: 1, 4, 8, 10>}]} {
    %c0 = arith.constant 0 : index
    %c0_0 = arith.constant 0 : index
    %c0_1 = arith.constant 0 : index
    %0 = vector.load %arg2[%c0, %c0_0, %c0_1] : memref<1x10x64xf32, #tpu.memory_space<vmem>>, vector<1x10x64xf32>
    %1 = vector.shape_cast %0 : vector<1x10x64xf32> to vector<10x64xf32>
    %c0_2 = arith.constant 0 : index
    %c0_3 = arith.constant 0 : index
    %c0_4 = arith.constant 0 : index
    %2 = vector.load %arg1[%c0_2, %c0_3, %c0_4] : memref<1x8x32xf32, #tpu.memory_space<vmem>>, vector<1x8x32xf32>
    %3 = vector.shape_cast %2 : vector<1x8x32xf32> to vector<8x32xf32>
    %4 = vector.extract_strided_slice %1 {offsets = [0, 0], sizes = [10, 32], strides = [1, 1]} : vector<10x64xf32> to vector<10x32xf32>
    %5 = vector.extract_strided_slice %1 {offsets = [0, 32], sizes = [10, 32], strides = [1, 1]} : vector<10x64xf32> to vector<10x32xf32>
    %c0_5 = arith.constant 0 : index
    %c0_6 = arith.constant 0 : index
    %6 = vector.load %arg3[%c0_5, %c0_6] : memref<8x10xf32, #tpu.memory_space<vmem>>, vector<8x10xf32>
    %7 = vector.extract_strided_slice %3 {offsets = [0, 0], sizes = [8, 8], strides = [1, 1]} : vector<8x32xf32> to vector<8x8xf32>
    %8 = arith.truncf %7 : vector<8x8xf32> to vector<8x8xbf16>
    %9 = vector.extract_strided_slice %4 {offsets = [0, 0], sizes = [10, 8], strides = [1, 1]} : vector<10x32xf32> to vector<10x8xf32>
    %10 = arith.truncf %9 : vector<10x8xf32> to vector<10x8xbf16>
    %11 = vector.extract_strided_slice %5 {offsets = [0, 0], sizes = [10, 8], strides = [1, 1]} : vector<10x32xf32> to vector<10x8xf32>
    %12 = arith.truncf %11 : vector<10x8xf32> to vector<10x8xbf16>
    %cst = arith.constant dense<0.000000e+00> : vector<8x10xf32>
    %13 = tpu.matmul %8, %10, %cst {dimension_numbers = #tpu.dot_dimension_numbers<[1], [1], [0], [0], [0, 0, 1, 0], [], []>} : vector<8x8xbf16>, vector<10x8xbf16>, vector<8x10xf32> -> vector<8x10xf32>
    %cst_7 = arith.constant 0.353553385 : f32
    %14 = vector.broadcast %cst_7 : f32 to vector<8x10xf32>
    %15 = arith.mulf %13, %14 : vector<8x10xf32>
    %16 = arith.addf %15, %6 : vector<8x10xf32>
    %cst_8 = arith.constant dense<0xFF800000> : vector<8xf32>
    %17 = vector.multi_reduction <maximumf>, %16, %cst_8 [1] : vector<8x10xf32> to vector<8xf32>
    %18 = vector.shape_cast %17 : vector<8xf32> to vector<8x1xf32>
    %19 = vector.broadcast %18 : vector<8x1xf32> to vector<8x10xf32>
    %20 = arith.subf %16, %19 : vector<8x10xf32>
    %21 = math.exp %20 : vector<8x10xf32>
    %cst_9 = arith.constant dense<0.000000e+00> : vector<8xf32>
    %22 = vector.multi_reduction <add>, %21, %cst_9 [1] : vector<8x10xf32> to vector<8xf32>
    %23 = vector.shape_cast %22 : vector<8xf32> to vector<8x1xf32>
    %24 = tpu.reciprocal %23 {approx = true} : vector<8x1xf32> -> vector<8x1xf32>
    %25 = vector.broadcast %24 : vector<8x1xf32> to vector<8x10xf32>
    %26 = arith.mulf %21, %25 : vector<8x10xf32>
    %c0_10 = arith.constant 0 : index
    %c0_11 = arith.constant 0 : index
    %c0_12 = arith.constant 0 : index
    %c0_13 = arith.constant 0 : index
    %27 = vector.load %arg5[%c0_10, %c0_11, %c0_12, %c0_13] : memref<1x4x8x10xf32, #tpu.memory_space<vmem>>, vector<1x1x8x10xf32>
    %28 = vector.shape_cast %27 : vector<1x1x8x10xf32> to vector<8x10xf32>
    %29 = vector.shape_cast %26 : vector<8x10xf32> to vector<1x1x8x10xf32>
    tpu.vector_store %arg5[%c0_10, %c0_11, %c0_12, %c0_13], %29 {strides = array<i32>} : memref<1x4x8x10xf32, #tpu.memory_space<vmem>>, vector<1x1x8x10xf32>,
    %30 = arith.truncf %26 : vector<8x10xf32> to vector<8x10xbf16>
    %cst_14 = arith.constant dense<0.000000e+00> : vector<8x8xf32>
    %31 = tpu.matmul %30, %12, %cst_14 {dimension_numbers = #tpu.dot_dimension_numbers<[1], [0], [0], [1], [0, 0, 1, 1], [], []>} : vector<8x10xbf16>, vector<10x8xbf16>, vector<8x8xf32> -> vector<8x8xf32>
    %32 = vector.extract_strided_slice %3 {offsets = [0, 8], sizes = [8, 8], strides = [1, 1]} : vector<8x32xf32> to vector<8x8xf32>
    %33 = arith.truncf %32 : vector<8x8xf32> to vector<8x8xbf16>
    %34 = vector.extract_strided_slice %4 {offsets = [0, 8], sizes = [10, 8], strides = [1, 1]} : vector<10x32xf32> to vector<10x8xf32>
    %35 = arith.truncf %34 : vector<10x8xf32> to vector<10x8xbf16>
    %36 = vector.extract_strided_slice %5 {offsets = [0, 8], sizes = [10, 8], strides = [1, 1]} : vector<10x32xf32> to vector<10x8xf32>
    %37 = arith.truncf %36 : vector<10x8xf32> to vector<10x8xbf16>
    %cst_15 = arith.constant dense<0.000000e+00> : vector<8x10xf32>
    %38 = tpu.matmul %33, %35, %cst_15 {dimension_numbers = #tpu.dot_dimension_numbers<[1], [1], [0], [0], [0, 0, 1, 0], [], []>} : vector<8x8xbf16>, vector<10x8xbf16>, vector<8x10xf32> -> vector<8x10xf32>
    %cst_16 = arith.constant 0.353553385 : f32
    %39 = vector.broadcast %cst_16 : f32 to vector<8x10xf32>
    %40 = arith.mulf %38, %39 : vector<8x10xf32>
    %41 = arith.addf %40, %6 : vector<8x10xf32>
    %cst_17 = arith.constant dense<0xFF800000> : vector<8xf32>
    %42 = vector.multi_reduction <maximumf>, %41, %cst_17 [1] : vector<8x10xf32> to vector<8xf32>
    %43 = vector.shape_cast %42 : vector<8xf32> to vector<8x1xf32>
    %44 = vector.broadcast %43 : vector<8x1xf32> to vector<8x10xf32>
    %45 = arith.subf %41, %44 : vector<8x10xf32>
    %46 = math.exp %45 : vector<8x10xf32>
    %cst_18 = arith.constant dense<0.000000e+00> : vector<8xf32>
    %47 = vector.multi_reduction <add>, %46, %cst_18 [1] : vector<8x10xf32> to vector<8xf32>
    %48 = vector.shape_cast %47 : vector<8xf32> to vector<8x1xf32>
    %49 = tpu.reciprocal %48 {approx = true} : vector<8x1xf32> -> vector<8x1xf32>
    %50 = vector.broadcast %49 : vector<8x1xf32> to vector<8x10xf32>
    %51 = arith.mulf %46, %50 : vector<8x10xf32>
    %c0_19 = arith.constant 0 : index
    %c1 = arith.constant 1 : index
    %c0_20 = arith.constant 0 : index
    %c0_21 = arith.constant 0 : index
    %52 = vector.load %arg5[%c0_19, %c1, %c0_20, %c0_21] : memref<1x4x8x10xf32, #tpu.memory_space<vmem>>, vector<1x1x8x10xf32>
    %53 = vector.shape_cast %52 : vector<1x1x8x10xf32> to vector<8x10xf32>
    %54 = vector.shape_cast %51 : vector<8x10xf32> to vector<1x1x8x10xf32>
    tpu.vector_store %arg5[%c0_19, %c1, %c0_20, %c0_21], %54 {strides = array<i32>} : memref<1x4x8x10xf32, #tpu.memory_space<vmem>>, vector<1x1x8x10xf32>,
    %55 = arith.truncf %51 : vector<8x10xf32> to vector<8x10xbf16>
    %cst_22 = arith.constant dense<0.000000e+00> : vector<8x8xf32>
    %56 = tpu.matmul %55, %37, %cst_22 {dimension_numbers = #tpu.dot_dimension_numbers<[1], [0], [0], [1], [0, 0, 1, 1], [], []>} : vector<8x10xbf16>, vector<10x8xbf16>, vector<8x8xf32> -> vector<8x8xf32>
    %57 = vector.extract_strided_slice %3 {offsets = [0, 16], sizes = [8, 8], strides = [1, 1]} : vector<8x32xf32> to vector<8x8xf32>
    %58 = arith.truncf %57 : vector<8x8xf32> to vector<8x8xbf16>
    %59 = vector.extract_strided_slice %4 {offsets = [0, 16], sizes = [10, 8], strides = [1, 1]} : vector<10x32xf32> to vector<10x8xf32>
    %60 = arith.truncf %59 : vector<10x8xf32> to vector<10x8xbf16>
    %61 = vector.extract_strided_slice %5 {offsets = [0, 16], sizes = [10, 8], strides = [1, 1]} : vector<10x32xf32> to vector<10x8xf32>
    %62 = arith.truncf %61 : vector<10x8xf32> to vector<10x8xbf16>
    %cst_23 = arith.constant dense<0.000000e+00> : vector<8x10xf32>
    %63 = tpu.matmul %58, %60, %cst_23 {dimension_numbers = #tpu.dot_dimension_numbers<[1], [1], [0], [0], [0, 0, 1, 0], [], []>} : vector<8x8xbf16>, vector<10x8xbf16>, vector<8x10xf32> -> vector<8x10xf32>
    %cst_24 = arith.constant 0.353553385 : f32
    %64 = vector.broadcast %cst_24 : f32 to vector<8x10xf32>
    %65 = arith.mulf %63, %64 : vector<8x10xf32>
    %66 = arith.addf %65, %6 : vector<8x10xf32>
    %cst_25 = arith.constant dense<0xFF800000> : vector<8xf32>
    %67 = vector.multi_reduction <maximumf>, %66, %cst_25 [1] : vector<8x10xf32> to vector<8xf32>
    %68 = vector.shape_cast %67 : vector<8xf32> to vector<8x1xf32>
    %69 = vector.broadcast %68 : vector<8x1xf32> to vector<8x10xf32>
    %70 = arith.subf %66, %69 : vector<8x10xf32>
    %71 = math.exp %70 : vector<8x10xf32>
    %cst_26 = arith.constant dense<0.000000e+00> : vector<8xf32>
    %72 = vector.multi_reduction <add>, %71, %cst_26 [1] : vector<8x10xf32> to vector<8xf32>
    %73 = vector.shape_cast %72 : vector<8xf32> to vector<8x1xf32>
    %74 = tpu.reciprocal %73 {approx = true} : vector<8x1xf32> -> vector<8x1xf32>
    %75 = vector.broadcast %74 : vector<8x1xf32> to vector<8x10xf32>
    %76 = arith.mulf %71, %75 : vector<8x10xf32>
    %c0_27 = arith.constant 0 : index
    %c2 = arith.constant 2 : index
    %c0_28 = arith.constant 0 : index
    %c0_29 = arith.constant 0 : index
    %77 = vector.load %arg5[%c0_27, %c2, %c0_28, %c0_29] : memref<1x4x8x10xf32, #tpu.memory_space<vmem>>, vector<1x1x8x10xf32>
    %78 = vector.shape_cast %77 : vector<1x1x8x10xf32> to vector<8x10xf32>
    %79 = vector.shape_cast %76 : vector<8x10xf32> to vector<1x1x8x10xf32>
    tpu.vector_store %arg5[%c0_27, %c2, %c0_28, %c0_29], %79 {strides = array<i32>} : memref<1x4x8x10xf32, #tpu.memory_space<vmem>>, vector<1x1x8x10xf32>,
    %80 = arith.truncf %76 : vector<8x10xf32> to vector<8x10xbf16>
    %cst_30 = arith.constant dense<0.000000e+00> : vector<8x8xf32>
    %81 = tpu.matmul %80, %62, %cst_30 {dimension_numbers = #tpu.dot_dimension_numbers<[1], [0], [0], [1], [0, 0, 1, 1], [], []>} : vector<8x10xbf16>, vector<10x8xbf16>, vector<8x8xf32> -> vector<8x8xf32>
    %82 = vector.extract_strided_slice %3 {offsets = [0, 24], sizes = [8, 8], strides = [1, 1]} : vector<8x32xf32> to vector<8x8xf32>
    %83 = arith.truncf %82 : vector<8x8xf32> to vector<8x8xbf16>
    %84 = vector.extract_strided_slice %4 {offsets = [0, 24], sizes = [10, 8], strides = [1, 1]} : vector<10x32xf32> to vector<10x8xf32>
    %85 = arith.truncf %84 : vector<10x8xf32> to vector<10x8xbf16>
    %86 = vector.extract_strided_slice %5 {offsets = [0, 24], sizes = [10, 8], strides = [1, 1]} : vector<10x32xf32> to vector<10x8xf32>
    %87 = arith.truncf %86 : vector<10x8xf32> to vector<10x8xbf16>
    %cst_31 = arith.constant dense<0.000000e+00> : vector<8x10xf32>
    %88 = tpu.matmul %83, %85, %cst_31 {dimension_numbers = #tpu.dot_dimension_numbers<[1], [1], [0], [0], [0, 0, 1, 0], [], []>} : vector<8x8xbf16>, vector<10x8xbf16>, vector<8x10xf32> -> vector<8x10xf32>
    %cst_32 = arith.constant 0.353553385 : f32
    %89 = vector.broadcast %cst_32 : f32 to vector<8x10xf32>
    %90 = arith.mulf %88, %89 : vector<8x10xf32>
    %91 = arith.addf %90, %6 : vector<8x10xf32>
    %cst_33 = arith.constant dense<0xFF800000> : vector<8xf32>
    %92 = vector.multi_reduction <maximumf>, %91, %cst_33 [1] : vector<8x10xf32> to vector<8xf32>
    %93 = vector.shape_cast %92 : vector<8xf32> to vector<8x1xf32>
    %94 = vector.broadcast %93 : vector<8x1xf32> to vector<8x10xf32>
    %95 = arith.subf %91, %94 : vector<8x10xf32>
    %96 = math.exp %95 : vector<8x10xf32>
    %cst_34 = arith.constant dense<0.000000e+00> : vector<8xf32>
    %97 = vector.multi_reduction <add>, %96, %cst_34 [1] : vector<8x10xf32> to vector<8xf32>
    %98 = vector.shape_cast %97 : vector<8xf32> to vector<8x1xf32>
    %99 = tpu.reciprocal %98 {approx = true} : vector<8x1xf32> -> vector<8x1xf32>
    %100 = vector.broadcast %99 : vector<8x1xf32> to vector<8x10xf32>
    %101 = arith.mulf %96, %100 : vector<8x10xf32>
    %c0_35 = arith.constant 0 : index
    %c3 = arith.constant 3 : index
    %c0_36 = arith.constant 0 : index
    %c0_37 = arith.constant 0 : index
    %102 = vector.load %arg5[%c0_35, %c3, %c0_36, %c0_37] : memref<1x4x8x10xf32, #tpu.memory_space<vmem>>, vector<1x1x8x10xf32>
    %103 = vector.shape_cast %102 : vector<1x1x8x10xf32> to vector<8x10xf32>
    %104 = vector.shape_cast %101 : vector<8x10xf32> to vector<1x1x8x10xf32>
    tpu.vector_store %arg5[%c0_35, %c3, %c0_36, %c0_37], %104 {strides = array<i32>} : memref<1x4x8x10xf32, #tpu.memory_space<vmem>>, vector<1x1x8x10xf32>,
    %105 = arith.truncf %101 : vector<8x10xf32> to vector<8x10xbf16>
    %cst_38 = arith.constant dense<0.000000e+00> : vector<8x8xf32>
    %106 = tpu.matmul %105, %87, %cst_38 {dimension_numbers = #tpu.dot_dimension_numbers<[1], [0], [0], [1], [0, 0, 1, 1], [], []>} : vector<8x10xbf16>, vector<10x8xbf16>, vector<8x8xf32> -> vector<8x8xf32>
    %107 = tpu.concatenate %31, %56, %81, %106 in 1 : vector<8x8xf32>, vector<8x8xf32>, vector<8x8xf32>, vector<8x8xf32> -> vector<8x32xf32>
    %c0_39 = arith.constant 0 : index
    %c0_40 = arith.constant 0 : index
    %c0_41 = arith.constant 0 : index
    %108 = vector.load %arg4[%c0_39, %c0_40, %c0_41] : memref<1x8x32xf32, #tpu.memory_space<vmem>>, vector<1x8x32xf32>
    %109 = vector.shape_cast %108 : vector<1x8x32xf32> to vector<8x32xf32>
    %110 = vector.shape_cast %107 : vector<8x32xf32> to vector<1x8x32xf32>
    tpu.vector_store %arg4[%c0_39, %c0_40, %c0_41], %110 {strides = array<i32>} : memref<1x8x32xf32, #tpu.memory_space<vmem>>, vector<1x8x32xf32>,
    return
  }
  func.func @transform_0(%arg0: i32) -> (i32, i32, i32) {
    %c0_i32 = arith.constant 0 : i32
    %c0_i32_0 = arith.constant 0 : i32
    %c0_i32_1 = arith.constant 0 : i32
    return %arg0, %c0_i32, %c0_i32_0 : i32, i32, i32
  }
  func.func @transform_1(%arg0: i32) -> (i32, i32, i32) {
    %c0_i32 = arith.constant 0 : i32
    %c0_i32_0 = arith.constant 0 : i32
    %c0_i32_1 = arith.constant 0 : i32
    return %arg0, %c0_i32, %c0_i32_0 : i32, i32, i32
  }
  func.func @transform_2(%arg0: i32) -> (i32, i32) {
    %c0_i32 = arith.constant 0 : i32
    %c0_i32_0 = arith.constant 0 : i32
    %c0_i32_1 = arith.constant 0 : i32
    return %c0_i32, %c0_i32_0 : i32, i32
  }
  func.func @transform_3(%arg0: i32) -> (i32, i32, i32) {
    %c0_i32 = arith.constant 0 : i32
    %c0_i32_0 = arith.constant 0 : i32
    %c0_i32_1 = arith.constant 0 : i32
    return %arg0, %c0_i32, %c0_i32_0 : i32, i32, i32
  }
  func.func @transform_4(%arg0: i32) -> (i32, i32, i32, i32) {
    %c0_i32 = arith.constant 0 : i32
    %c0_i32_0 = arith.constant 0 : i32
    %c0_i32_1 = arith.constant 0 : i32
    %c0_i32_2 = arith.constant 0 : i32
    return %arg0, %c0_i32, %c0_i32_0, %c0_i32_1 : i32, i32, i32, i32
  }
}

module attributes {stable_mosaic.version = 11 : i64} {
  func.func @_proj_add_ln_kernel(%arg0: i32, %arg1: memref<16x32xf32, #tpu.memory_space<vmem>>, %arg2: memref<16x32xf32, #tpu.memory_space<vmem>>, %arg3: memref<32x32xbf16, #tpu.memory_space<vmem>>, %arg4: memref<1x32xf32, #tpu.memory_space<vmem>>, %arg5: memref<1x32xf32, #tpu.memory_space<vmem>>, %arg6: memref<1x32xf32, #tpu.memory_space<vmem>>, %arg7: memref<16x32xf32, #tpu.memory_space<vmem>>) attributes {dimension_semantics = [#tpu.dimension_semantics<parallel>], iteration_bounds = array<i64: 1>, scalar_prefetch = 0 : i64, scratch_operands = 0 : i64, tpu.core_type = #tpu.core_type<tc>, window_params = [{transform_indices = @transform_0, window_bounds = array<i64: 16, 32>}, {transform_indices = @transform_1, window_bounds = array<i64: 16, 32>}, {pipeline_mode = #tpu.pipeline_mode<synchronous>, transform_indices = @transform_2, window_bounds = array<i64: 32, 32>}, {pipeline_mode = #tpu.pipeline_mode<synchronous>, transform_indices = @transform_3, window_bounds = array<i64: 1, 32>}, {pipeline_mode = #tpu.pipeline_mode<synchronous>, transform_indices = @transform_4, window_bounds = array<i64: 1, 32>}, {pipeline_mode = #tpu.pipeline_mode<synchronous>, transform_indices = @transform_5, window_bounds = array<i64: 1, 32>}, {transform_indices = @transform_6, window_bounds = array<i64: 16, 32>}]} {
    %c0 = arith.constant 0 : index
    %c0_0 = arith.constant 0 : index
    %0 = vector.load %arg1[%c0, %c0_0] : memref<16x32xf32, #tpu.memory_space<vmem>>, vector<16x32xf32>
    %1 = arith.truncf %0 : vector<16x32xf32> to vector<16x32xbf16>
    %c0_1 = arith.constant 0 : index
    %c0_2 = arith.constant 0 : index
    %2 = vector.load %arg3[%c0_1, %c0_2] : memref<32x32xbf16, #tpu.memory_space<vmem>>, vector<32x32xbf16>
    %cst = arith.constant dense<0.000000e+00> : vector<16x32xf32>
    %3 = tpu.matmul %1, %2, %cst {dimension_numbers = #tpu.dot_dimension_numbers<[1], [0], [0], [1], [0, 0, 1, 1], [], []>} : vector<16x32xbf16>, vector<32x32xbf16>, vector<16x32xf32> -> vector<16x32xf32>
    %c0_3 = arith.constant 0 : index
    %c0_4 = arith.constant 0 : index
    %4 = vector.load %arg4[%c0_3, %c0_4] : memref<1x32xf32, #tpu.memory_space<vmem>>, vector<1x32xf32>
    %5 = vector.broadcast %4 : vector<1x32xf32> to vector<16x32xf32>
    %6 = arith.addf %3, %5 : vector<16x32xf32>
    %c0_5 = arith.constant 0 : index
    %c0_6 = arith.constant 0 : index
    %7 = vector.load %arg2[%c0_5, %c0_6] : memref<16x32xf32, #tpu.memory_space<vmem>>, vector<16x32xf32>
    %8 = arith.addf %6, %7 : vector<16x32xf32>
    %c0_7 = arith.constant 0 : index
    %c0_8 = arith.constant 0 : index
    %9 = vector.load %arg5[%c0_7, %c0_8] : memref<1x32xf32, #tpu.memory_space<vmem>>, vector<1x32xf32>
    %c0_9 = arith.constant 0 : index
    %c0_10 = arith.constant 0 : index
    %10 = vector.load %arg6[%c0_9, %c0_10] : memref<1x32xf32, #tpu.memory_space<vmem>>, vector<1x32xf32>
    %cst_11 = arith.constant dense<0.000000e+00> : vector<16xf32>
    %11 = vector.multi_reduction <add>, %8, %cst_11 [1] : vector<16x32xf32> to vector<16xf32>
    %12 = vector.shape_cast %11 : vector<16xf32> to vector<16x1xf32>
    %cst_12 = arith.constant 3.200000e+01 : f32
    %13 = vector.broadcast %cst_12 : f32 to vector<16x1xf32>
    %14 = arith.divf %12, %13 : vector<16x1xf32>
    %15 = vector.broadcast %14 : vector<16x1xf32> to vector<16x32xf32>
    %16 = arith.subf %8, %15 : vector<16x32xf32>
    %17 = arith.mulf %16, %16 : vector<16x32xf32>
    %cst_13 = arith.constant dense<0.000000e+00> : vector<16xf32>
    %18 = vector.multi_reduction <add>, %17, %cst_13 [1] : vector<16x32xf32> to vector<16xf32>
    %19 = vector.shape_cast %18 : vector<16xf32> to vector<16x1xf32>
    %cst_14 = arith.constant 3.200000e+01 : f32
    %20 = vector.broadcast %cst_14 : f32 to vector<16x1xf32>
    %21 = arith.divf %19, %20 : vector<16x1xf32>
    %cst_15 = arith.constant 9.99999996E-13 : f32
    %22 = vector.broadcast %cst_15 : f32 to vector<16x1xf32>
    %23 = arith.addf %21, %22 : vector<16x1xf32>
    %24 = math.rsqrt %23 : vector<16x1xf32>
    %25 = vector.broadcast %24 : vector<16x1xf32> to vector<16x32xf32>
    %26 = arith.mulf %16, %25 : vector<16x32xf32>
    %27 = vector.broadcast %9 : vector<1x32xf32> to vector<16x32xf32>
    %28 = arith.mulf %26, %27 : vector<16x32xf32>
    %29 = vector.broadcast %10 : vector<1x32xf32> to vector<16x32xf32>
    %30 = arith.addf %28, %29 : vector<16x32xf32>
    %c0_16 = arith.constant 0 : index
    %c0_17 = arith.constant 0 : index
    %31 = vector.load %arg7[%c0_16, %c0_17] : memref<16x32xf32, #tpu.memory_space<vmem>>, vector<16x32xf32>
    tpu.vector_store %arg7[%c0_16, %c0_17], %30 {strides = array<i32>} : memref<16x32xf32, #tpu.memory_space<vmem>>, vector<16x32xf32>,
    return
  }
  func.func @transform_0(%arg0: i32) -> (i32, i32) {
    %c0_i32 = arith.constant 0 : i32
    %c0_i32_0 = arith.constant 0 : i32
    return %arg0, %c0_i32 : i32, i32
  }
  func.func @transform_1(%arg0: i32) -> (i32, i32) {
    %c0_i32 = arith.constant 0 : i32
    %c0_i32_0 = arith.constant 0 : i32
    return %arg0, %c0_i32 : i32, i32
  }
  func.func @transform_2(%arg0: i32) -> (i32, i32) {
    %c0_i32 = arith.constant 0 : i32
    %c0_i32_0 = arith.constant 0 : i32
    %c0_i32_1 = arith.constant 0 : i32
    return %c0_i32, %c0_i32_0 : i32, i32
  }
  func.func @transform_3(%arg0: i32) -> (i32, i32) {
    %c0_i32 = arith.constant 0 : i32
    %c0_i32_0 = arith.constant 0 : i32
    %c0_i32_1 = arith.constant 0 : i32
    return %c0_i32, %c0_i32_0 : i32, i32
  }
  func.func @transform_4(%arg0: i32) -> (i32, i32) {
    %c0_i32 = arith.constant 0 : i32
    %c0_i32_0 = arith.constant 0 : i32
    %c0_i32_1 = arith.constant 0 : i32
    return %c0_i32, %c0_i32_0 : i32, i32
  }
  func.func @transform_5(%arg0: i32) -> (i32, i32) {
    %c0_i32 = arith.constant 0 : i32
    %c0_i32_0 = arith.constant 0 : i32
    %c0_i32_1 = arith.constant 0 : i32
    return %c0_i32, %c0_i32_0 : i32, i32
  }
  func.func @transform_6(%arg0: i32) -> (i32, i32) {
    %c0_i32 = arith.constant 0 : i32
    %c0_i32_0 = arith.constant 0 : i32
    return %arg0, %c0_i32 : i32, i32
  }
}

module attributes {stable_mosaic.version = 11 : i64} {
  func.func @_ffn_add_ln_kernel(%arg0: i32, %arg1: i32, %arg2: memref<16x32xf32, #tpu.memory_space<vmem>>, %arg3: memref<32x128xbf16, #tpu.memory_space<vmem>>, %arg4: memref<1x128xf32, #tpu.memory_space<vmem>>, %arg5: memref<128x32xbf16, #tpu.memory_space<vmem>>, %arg6: memref<1x32xf32, #tpu.memory_space<vmem>>, %arg7: memref<1x32xf32, #tpu.memory_space<vmem>>, %arg8: memref<1x32xf32, #tpu.memory_space<vmem>>, %arg9: memref<16x32xf32, #tpu.memory_space<vmem>>, %arg10: memref<16x32xf32, #tpu.memory_space<vmem>>) attributes {dimension_semantics = [#tpu.dimension_semantics<parallel>, #tpu.dimension_semantics<arbitrary>], iteration_bounds = array<i64: 1, 1>, scalar_prefetch = 0 : i64, scratch_operands = 1 : i64, tpu.core_type = #tpu.core_type<tc>, window_params = [{transform_indices = @transform_0, window_bounds = array<i64: 16, 32>}, {transform_indices = @transform_1, window_bounds = array<i64: 32, 128>}, {transform_indices = @transform_2, window_bounds = array<i64: 1, 128>}, {transform_indices = @transform_3, window_bounds = array<i64: 128, 32>}, {pipeline_mode = #tpu.pipeline_mode<synchronous>, transform_indices = @transform_4, window_bounds = array<i64: 1, 32>}, {pipeline_mode = #tpu.pipeline_mode<synchronous>, transform_indices = @transform_5, window_bounds = array<i64: 1, 32>}, {pipeline_mode = #tpu.pipeline_mode<synchronous>, transform_indices = @transform_6, window_bounds = array<i64: 1, 32>}, {transform_indices = @transform_7, window_bounds = array<i64: 16, 32>}]} {
    %c0_i32 = arith.constant 0 : i32
    %0 = arith.cmpi eq, %arg1, %c0_i32 : i32
    %1 = arith.extui %0 : i1 to i32
    %c0_i32_0 = arith.constant 0 : i32
    %2 = arith.cmpi ne, %1, %c0_i32_0 : i32
    scf.if %2 {
      %cst_30 = arith.constant 0.000000e+00 : f32
      %59 = vector.broadcast %cst_30 : f32 to vector<16x32xf32>
      %c0_31 = arith.constant 0 : index
      %c0_32 = arith.constant 0 : index
      %60 = vector.load %arg10[%c0_31, %c0_32] : memref<16x32xf32, #tpu.memory_space<vmem>>, vector<16x32xf32>
      tpu.vector_store %arg10[%c0_31, %c0_32], %59 {strides = array<i32>} : memref<16x32xf32, #tpu.memory_space<vmem>>, vector<16x32xf32>,
    } else {
    }
    %c0 = arith.constant 0 : index
    %c0_1 = arith.constant 0 : index
    %3 = vector.load %arg2[%c0, %c0_1] : memref<16x32xf32, #tpu.memory_space<vmem>>, vector<16x32xf32>
    %4 = arith.truncf %3 : vector<16x32xf32> to vector<16x32xbf16>
    %c0_2 = arith.constant 0 : index
    %c0_3 = arith.constant 0 : index
    %5 = vector.load %arg3[%c0_2, %c0_3] : memref<32x128xbf16, #tpu.memory_space<vmem>>, vector<32x128xbf16>
    %cst = arith.constant dense<0.000000e+00> : vector<16x128xf32>
    %6 = tpu.matmul %4, %5, %cst {dimension_numbers = #tpu.dot_dimension_numbers<[1], [0], [0], [1], [0, 0, 1, 1], [], []>} : vector<16x32xbf16>, vector<32x128xbf16>, vector<16x128xf32> -> vector<16x128xf32>
    %c0_4 = arith.constant 0 : index
    %c0_5 = arith.constant 0 : index
    %7 = vector.load %arg4[%c0_4, %c0_5] : memref<1x128xf32, #tpu.memory_space<vmem>>, vector<1x128xf32>
    %8 = vector.broadcast %7 : vector<1x128xf32> to vector<16x128xf32>
    %9 = arith.addf %6, %8 : vector<16x128xf32>
    %cst_6 = arith.constant 0.707106769 : f32
    %10 = vector.broadcast %cst_6 : f32 to vector<16x128xf32>
    %11 = arith.mulf %9, %10 : vector<16x128xf32>
    %12 = math.absf %11 : vector<16x128xf32>
    %cst_7 = arith.constant 0.327591091 : f32
    %13 = vector.broadcast %cst_7 : f32 to vector<16x128xf32>
    %14 = arith.mulf %13, %12 : vector<16x128xf32>
    %cst_8 = arith.constant 1.000000e+00 : f32
    %15 = vector.broadcast %cst_8 : f32 to vector<16x128xf32>
    %16 = arith.addf %15, %14 : vector<16x128xf32>
    %cst_9 = arith.constant 1.000000e+00 : f32
    %17 = vector.broadcast %cst_9 : f32 to vector<16x128xf32>
    %18 = arith.divf %17, %16 : vector<16x128xf32>
    %cst_10 = arith.constant 1.06140542 : f32
    %19 = vector.broadcast %cst_10 : f32 to vector<16x128xf32>
    %20 = arith.mulf %19, %18 : vector<16x128xf32>
    %cst_11 = arith.constant -1.45315206 : f32
    %21 = vector.broadcast %cst_11 : f32 to vector<16x128xf32>
    %22 = arith.addf %20, %21 : vector<16x128xf32>
    %23 = arith.mulf %22, %18 : vector<16x128xf32>
    %cst_12 = arith.constant 1.42141378 : f32
    %24 = vector.broadcast %cst_12 : f32 to vector<16x128xf32>
    %25 = arith.addf %23, %24 : vector<16x128xf32>
    %26 = arith.mulf %25, %18 : vector<16x128xf32>
    %cst_13 = arith.constant -0.284496725 : f32
    %27 = vector.broadcast %cst_13 : f32 to vector<16x128xf32>
    %28 = arith.addf %26, %27 : vector<16x128xf32>
    %29 = arith.mulf %28, %18 : vector<16x128xf32>
    %cst_14 = arith.constant 0.254829586 : f32
    %30 = vector.broadcast %cst_14 : f32 to vector<16x128xf32>
    %31 = arith.addf %29, %30 : vector<16x128xf32>
    %32 = arith.mulf %31, %18 : vector<16x128xf32>
    %cst_15 = arith.constant 0.000000e+00 : f32
    %33 = vector.broadcast %cst_15 : f32 to vector<16x128xf32>
    %34 = arith.subf %33, %12 : vector<16x128xf32>
    %35 = arith.mulf %34, %12 : vector<16x128xf32>
    %36 = math.exp %35 : vector<16x128xf32>
    %37 = arith.mulf %32, %36 : vector<16x128xf32>
    %cst_16 = arith.constant 1.000000e+00 : f32
    %38 = vector.broadcast %cst_16 : f32 to vector<16x128xf32>
    %39 = arith.subf %38, %37 : vector<16x128xf32>
    %cst_17 = arith.constant 0.000000e+00 : f32
    %40 = vector.broadcast %cst_17 : f32 to vector<16x128xf32>
    %41 = arith.cmpf olt, %11, %40 : vector<16x128xf32>
    %cst_18 = arith.constant 0.000000e+00 : f32
    %42 = vector.broadcast %cst_18 : f32 to vector<16x128xf32>
    %43 = arith.subf %42, %39 : vector<16x128xf32>
    %44 = arith.select %41, %43, %39 : vector<16x128xi1>, vector<16x128xf32>
    %cst_19 = arith.constant 1.000000e+00 : f32
    %45 = vector.broadcast %cst_19 : f32 to vector<16x128xf32>
    %46 = arith.addf %45, %44 : vector<16x128xf32>
    %cst_20 = arith.constant 5.000000e-01 : f32
    %47 = vector.broadcast %cst_20 : f32 to vector<16x128xf32>
    %48 = arith.mulf %47, %46 : vector<16x128xf32>
    %49 = arith.mulf %9, %48 : vector<16x128xf32>
    %c0_21 = arith.constant 0 : index
    %c0_22 = arith.constant 0 : index
    %50 = vector.load %arg10[%c0_21, %c0_22] : memref<16x32xf32, #tpu.memory_space<vmem>>, vector<16x32xf32>
    %51 = arith.truncf %49 : vector<16x128xf32> to vector<16x128xbf16>
    %c0_23 = arith.constant 0 : index
    %c0_24 = arith.constant 0 : index
    %52 = vector.load %arg5[%c0_23, %c0_24] : memref<128x32xbf16, #tpu.memory_space<vmem>>, vector<128x32xbf16>
    %cst_25 = arith.constant dense<0.000000e+00> : vector<16x32xf32>
    %53 = tpu.matmul %51, %52, %cst_25 {dimension_numbers = #tpu.dot_dimension_numbers<[1], [0], [0], [1], [0, 0, 1, 1], [], []>} : vector<16x128xbf16>, vector<128x32xbf16>, vector<16x32xf32> -> vector<16x32xf32>
    %54 = arith.addf %50, %53 : vector<16x32xf32>
    %c0_26 = arith.constant 0 : index
    %c0_27 = arith.constant 0 : index
    %55 = vector.load %arg10[%c0_26, %c0_27] : memref<16x32xf32, #tpu.memory_space<vmem>>, vector<16x32xf32>
    tpu.vector_store %arg10[%c0_26, %c0_27], %54 {strides = array<i32>} : memref<16x32xf32, #tpu.memory_space<vmem>>, vector<16x32xf32>,
    %c0_i32_28 = arith.constant 0 : i32
    %56 = arith.cmpi eq, %arg1, %c0_i32_28 : i32
    %57 = arith.extui %56 : i1 to i32
    %c0_i32_29 = arith.constant 0 : i32
    %58 = arith.cmpi ne, %57, %c0_i32_29 : i32
    scf.if %58 {
      %c0_30 = arith.constant 0 : index
      %c0_31 = arith.constant 0 : index
      %59 = vector.load %arg10[%c0_30, %c0_31] : memref<16x32xf32, #tpu.memory_space<vmem>>, vector<16x32xf32>
      %c0_32 = arith.constant 0 : index
      %c0_33 = arith.constant 0 : index
      %60 = vector.load %arg6[%c0_32, %c0_33] : memref<1x32xf32, #tpu.memory_space<vmem>>, vector<1x32xf32>
      %61 = vector.broadcast %60 : vector<1x32xf32> to vector<16x32xf32>
      %62 = arith.addf %59, %61 : vector<16x32xf32>
      %63 = arith.addf %62, %3 : vector<16x32xf32>
      %c0_34 = arith.constant 0 : index
      %c0_35 = arith.constant 0 : index
      %64 = vector.load %arg7[%c0_34, %c0_35] : memref<1x32xf32, #tpu.memory_space<vmem>>, vector<1x32xf32>
      %c0_36 = arith.constant 0 : index
      %c0_37 = arith.constant 0 : index
      %65 = vector.load %arg8[%c0_36, %c0_37] : memref<1x32xf32, #tpu.memory_space<vmem>>, vector<1x32xf32>
      %cst_38 = arith.constant dense<0.000000e+00> : vector<16xf32>
      %66 = vector.multi_reduction <add>, %63, %cst_38 [1] : vector<16x32xf32> to vector<16xf32>
      %67 = vector.shape_cast %66 : vector<16xf32> to vector<16x1xf32>
      %cst_39 = arith.constant 3.200000e+01 : f32
      %68 = vector.broadcast %cst_39 : f32 to vector<16x1xf32>
      %69 = arith.divf %67, %68 : vector<16x1xf32>
      %70 = vector.broadcast %69 : vector<16x1xf32> to vector<16x32xf32>
      %71 = arith.subf %63, %70 : vector<16x32xf32>
      %72 = arith.mulf %71, %71 : vector<16x32xf32>
      %cst_40 = arith.constant dense<0.000000e+00> : vector<16xf32>
      %73 = vector.multi_reduction <add>, %72, %cst_40 [1] : vector<16x32xf32> to vector<16xf32>
      %74 = vector.shape_cast %73 : vector<16xf32> to vector<16x1xf32>
      %cst_41 = arith.constant 3.200000e+01 : f32
      %75 = vector.broadcast %cst_41 : f32 to vector<16x1xf32>
      %76 = arith.divf %74, %75 : vector<16x1xf32>
      %cst_42 = arith.constant 9.99999996E-13 : f32
      %77 = vector.broadcast %cst_42 : f32 to vector<16x1xf32>
      %78 = arith.addf %76, %77 : vector<16x1xf32>
      %79 = math.rsqrt %78 : vector<16x1xf32>
      %80 = vector.broadcast %79 : vector<16x1xf32> to vector<16x32xf32>
      %81 = arith.mulf %71, %80 : vector<16x32xf32>
      %82 = vector.broadcast %64 : vector<1x32xf32> to vector<16x32xf32>
      %83 = arith.mulf %81, %82 : vector<16x32xf32>
      %84 = vector.broadcast %65 : vector<1x32xf32> to vector<16x32xf32>
      %85 = arith.addf %83, %84 : vector<16x32xf32>
      %c0_43 = arith.constant 0 : index
      %c0_44 = arith.constant 0 : index
      %86 = vector.load %arg9[%c0_43, %c0_44] : memref<16x32xf32, #tpu.memory_space<vmem>>, vector<16x32xf32>
      tpu.vector_store %arg9[%c0_43, %c0_44], %85 {strides = array<i32>} : memref<16x32xf32, #tpu.memory_space<vmem>>, vector<16x32xf32>,
    } else {
    }
    return
  }
  func.func @transform_0(%arg0: i32, %arg1: i32) -> (i32, i32) {
    %c0_i32 = arith.constant 0 : i32
    %c0_i32_0 = arith.constant 0 : i32
    return %arg0, %c0_i32 : i32, i32
  }
  func.func @transform_1(%arg0: i32, %arg1: i32) -> (i32, i32) {
    %c0_i32 = arith.constant 0 : i32
    %c0_i32_0 = arith.constant 0 : i32
    return %c0_i32, %arg1 : i32, i32
  }
  func.func @transform_2(%arg0: i32, %arg1: i32) -> (i32, i32) {
    %c0_i32 = arith.constant 0 : i32
    %c0_i32_0 = arith.constant 0 : i32
    return %c0_i32, %arg1 : i32, i32
  }
  func.func @transform_3(%arg0: i32, %arg1: i32) -> (i32, i32) {
    %c0_i32 = arith.constant 0 : i32
    %c0_i32_0 = arith.constant 0 : i32
    return %arg1, %c0_i32 : i32, i32
  }
  func.func @transform_4(%arg0: i32, %arg1: i32) -> (i32, i32) {
    %c0_i32 = arith.constant 0 : i32
    %c0_i32_0 = arith.constant 0 : i32
    %c0_i32_1 = arith.constant 0 : i32
    return %c0_i32, %c0_i32_0 : i32, i32
  }
  func.func @transform_5(%arg0: i32, %arg1: i32) -> (i32, i32) {
    %c0_i32 = arith.constant 0 : i32
    %c0_i32_0 = arith.constant 0 : i32
    %c0_i32_1 = arith.constant 0 : i32
    return %c0_i32, %c0_i32_0 : i32, i32
  }
  func.func @transform_6(%arg0: i32, %arg1: i32) -> (i32, i32) {
    %c0_i32 = arith.constant 0 : i32
    %c0_i32_0 = arith.constant 0 : i32
    %c0_i32_1 = arith.constant 0 : i32
    return %c0_i32, %c0_i32_0 : i32, i32
  }
  func.func @transform_7(%arg0: i32, %arg1: i32) -> (i32, i32) {
    %c0_i32 = arith.constant 0 : i32
    %c0_i32_0 = arith.constant 0 : i32
    return %arg0, %c0_i32 : i32, i32
  }
}

module attributes {stable_mosaic.version = 11 : i64} {
  func.func @_ffn_add_ln_kernel(%arg0: i32, %arg1: i32, %arg2: memref<16x32xf32, #tpu.memory_space<vmem>>, %arg3: memref<32x128xbf16, #tpu.memory_space<vmem>>, %arg4: memref<1x128xf32, #tpu.memory_space<vmem>>, %arg5: memref<128x32xbf16, #tpu.memory_space<vmem>>, %arg6: memref<1x32xf32, #tpu.memory_space<vmem>>, %arg7: memref<1x32xf32, #tpu.memory_space<vmem>>, %arg8: memref<1x32xf32, #tpu.memory_space<vmem>>, %arg9: memref<16x32xf32, #tpu.memory_space<vmem>>, %arg10: memref<16x32xf32, #tpu.memory_space<vmem>>) attributes {dimension_semantics = [#tpu.dimension_semantics<parallel>, #tpu.dimension_semantics<arbitrary>], iteration_bounds = array<i64: 1, 1>, scalar_prefetch = 0 : i64, scratch_operands = 1 : i64, tpu.core_type = #tpu.core_type<tc>, window_params = [{transform_indices = @transform_0, window_bounds = array<i64: 16, 32>}, {transform_indices = @transform_1, window_bounds = array<i64: 32, 128>}, {transform_indices = @transform_2, window_bounds = array<i64: 1, 128>}, {transform_indices = @transform_3, window_bounds = array<i64: 128, 32>}, {pipeline_mode = #tpu.pipeline_mode<synchronous>, transform_indices = @transform_4, window_bounds = array<i64: 1, 32>}, {pipeline_mode = #tpu.pipeline_mode<synchronous>, transform_indices = @transform_5, window_bounds = array<i64: 1, 32>}, {pipeline_mode = #tpu.pipeline_mode<synchronous>, transform_indices = @transform_6, window_bounds = array<i64: 1, 32>}, {transform_indices = @transform_7, window_bounds = array<i64: 16, 32>}]} {
    %c0_i32 = arith.constant 0 : i32
    %0 = arith.cmpi eq, %arg1, %c0_i32 : i32
    %1 = arith.extui %0 : i1 to i32
    %c0_i32_0 = arith.constant 0 : i32
    %2 = arith.cmpi ne, %1, %c0_i32_0 : i32
    scf.if %2 {
      %cst_30 = arith.constant 0.000000e+00 : f32
      %59 = vector.broadcast %cst_30 : f32 to vector<16x32xf32>
      %c0_31 = arith.constant 0 : index
      %c0_32 = arith.constant 0 : index
      %60 = vector.load %arg10[%c0_31, %c0_32] : memref<16x32xf32, #tpu.memory_space<vmem>>, vector<16x32xf32>
      tpu.vector_store %arg10[%c0_31, %c0_32], %59 {strides = array<i32>} : memref<16x32xf32, #tpu.memory_space<vmem>>, vector<16x32xf32>,
    } else {
    }
    %c0 = arith.constant 0 : index
    %c0_1 = arith.constant 0 : index
    %3 = vector.load %arg2[%c0, %c0_1] : memref<16x32xf32, #tpu.memory_space<vmem>>, vector<16x32xf32>
    %4 = arith.truncf %3 : vector<16x32xf32> to vector<16x32xbf16>
    %c0_2 = arith.constant 0 : index
    %c0_3 = arith.constant 0 : index
    %5 = vector.load %arg3[%c0_2, %c0_3] : memref<32x128xbf16, #tpu.memory_space<vmem>>, vector<32x128xbf16>
    %cst = arith.constant dense<0.000000e+00> : vector<16x128xf32>
    %6 = tpu.matmul %4, %5, %cst {dimension_numbers = #tpu.dot_dimension_numbers<[1], [0], [0], [1], [0, 0, 1, 1], [], []>} : vector<16x32xbf16>, vector<32x128xbf16>, vector<16x128xf32> -> vector<16x128xf32>
    %c0_4 = arith.constant 0 : index
    %c0_5 = arith.constant 0 : index
    %7 = vector.load %arg4[%c0_4, %c0_5] : memref<1x128xf32, #tpu.memory_space<vmem>>, vector<1x128xf32>
    %8 = vector.broadcast %7 : vector<1x128xf32> to vector<16x128xf32>
    %9 = arith.addf %6, %8 : vector<16x128xf32>
    %cst_6 = arith.constant 0.707106769 : f32
    %10 = vector.broadcast %cst_6 : f32 to vector<16x128xf32>
    %11 = arith.mulf %9, %10 : vector<16x128xf32>
    %12 = math.absf %11 : vector<16x128xf32>
    %cst_7 = arith.constant 0.327591091 : f32
    %13 = vector.broadcast %cst_7 : f32 to vector<16x128xf32>
    %14 = arith.mulf %13, %12 : vector<16x128xf32>
    %cst_8 = arith.constant 1.000000e+00 : f32
    %15 = vector.broadcast %cst_8 : f32 to vector<16x128xf32>
    %16 = arith.addf %15, %14 : vector<16x128xf32>
    %cst_9 = arith.constant 1.000000e+00 : f32
    %17 = vector.broadcast %cst_9 : f32 to vector<16x128xf32>
    %18 = arith.divf %17, %16 : vector<16x128xf32>
    %cst_10 = arith.constant 1.06140542 : f32
    %19 = vector.broadcast %cst_10 : f32 to vector<16x128xf32>
    %20 = arith.mulf %19, %18 : vector<16x128xf32>
    %cst_11 = arith.constant -1.45315206 : f32
    %21 = vector.broadcast %cst_11 : f32 to vector<16x128xf32>
    %22 = arith.addf %20, %21 : vector<16x128xf32>
    %23 = arith.mulf %22, %18 : vector<16x128xf32>
    %cst_12 = arith.constant 1.42141378 : f32
    %24 = vector.broadcast %cst_12 : f32 to vector<16x128xf32>
    %25 = arith.addf %23, %24 : vector<16x128xf32>
    %26 = arith.mulf %25, %18 : vector<16x128xf32>
    %cst_13 = arith.constant -0.284496725 : f32
    %27 = vector.broadcast %cst_13 : f32 to vector<16x128xf32>
    %28 = arith.addf %26, %27 : vector<16x128xf32>
    %29 = arith.mulf %28, %18 : vector<16x128xf32>
    %cst_14 = arith.constant 0.254829586 : f32
    %30 = vector.broadcast %cst_14 : f32 to vector<16x128xf32>
    %31 = arith.addf %29, %30 : vector<16x128xf32>
    %32 = arith.mulf %31, %18 : vector<16x128xf32>
    %cst_15 = arith.constant 0.000000e+00 : f32
    %33 = vector.broadcast %cst_15 : f32 to vector<16x128xf32>
    %34 = arith.subf %33, %12 : vector<16x128xf32>
    %35 = arith.mulf %34, %12 : vector<16x128xf32>
    %36 = math.exp %35 : vector<16x128xf32>
    %37 = arith.mulf %32, %36 : vector<16x128xf32>
    %cst_16 = arith.constant 1.000000e+00 : f32
    %38 = vector.broadcast %cst_16 : f32 to vector<16x128xf32>
    %39 = arith.subf %38, %37 : vector<16x128xf32>
    %cst_17 = arith.constant 0.000000e+00 : f32
    %40 = vector.broadcast %cst_17 : f32 to vector<16x128xf32>
    %41 = arith.cmpf olt, %11, %40 : vector<16x128xf32>
    %cst_18 = arith.constant 0.000000e+00 : f32
    %42 = vector.broadcast %cst_18 : f32 to vector<16x128xf32>
    %43 = arith.subf %42, %39 : vector<16x128xf32>
    %44 = arith.select %41, %43, %39 : vector<16x128xi1>, vector<16x128xf32>
    %cst_19 = arith.constant 1.000000e+00 : f32
    %45 = vector.broadcast %cst_19 : f32 to vector<16x128xf32>
    %46 = arith.addf %45, %44 : vector<16x128xf32>
    %cst_20 = arith.constant 5.000000e-01 : f32
    %47 = vector.broadcast %cst_20 : f32 to vector<16x128xf32>
    %48 = arith.mulf %47, %46 : vector<16x128xf32>
    %49 = arith.mulf %9, %48 : vector<16x128xf32>
    %c0_21 = arith.constant 0 : index
    %c0_22 = arith.constant 0 : index
    %50 = vector.load %arg10[%c0_21, %c0_22] : memref<16x32xf32, #tpu.memory_space<vmem>>, vector<16x32xf32>
    %51 = arith.truncf %49 : vector<16x128xf32> to vector<16x128xbf16>
    %c0_23 = arith.constant 0 : index
    %c0_24 = arith.constant 0 : index
    %52 = vector.load %arg5[%c0_23, %c0_24] : memref<128x32xbf16, #tpu.memory_space<vmem>>, vector<128x32xbf16>
    %cst_25 = arith.constant dense<0.000000e+00> : vector<16x32xf32>
    %53 = tpu.matmul %51, %52, %cst_25 {dimension_numbers = #tpu.dot_dimension_numbers<[1], [0], [0], [1], [0, 0, 1, 1], [], []>} : vector<16x128xbf16>, vector<128x32xbf16>, vector<16x32xf32> -> vector<16x32xf32>
    %54 = arith.addf %50, %53 : vector<16x32xf32>
    %c0_26 = arith.constant 0 : index
    %c0_27 = arith.constant 0 : index
    %55 = vector.load %arg10[%c0_26, %c0_27] : memref<16x32xf32, #tpu.memory_space<vmem>>, vector<16x32xf32>
    tpu.vector_store %arg10[%c0_26, %c0_27], %54 {strides = array<i32>} : memref<16x32xf32, #tpu.memory_space<vmem>>, vector<16x32xf32>,
    %c0_i32_28 = arith.constant 0 : i32
    %56 = arith.cmpi eq, %arg1, %c0_i32_28 : i32
    %57 = arith.extui %56 : i1 to i32
    %c0_i32_29 = arith.constant 0 : i32
    %58 = arith.cmpi ne, %57, %c0_i32_29 : i32
    scf.if %58 {
      %c0_30 = arith.constant 0 : index
      %c0_31 = arith.constant 0 : index
      %59 = vector.load %arg10[%c0_30, %c0_31] : memref<16x32xf32, #tpu.memory_space<vmem>>, vector<16x32xf32>
      %c0_32 = arith.constant 0 : index
      %c0_33 = arith.constant 0 : index
      %60 = vector.load %arg6[%c0_32, %c0_33] : memref<1x32xf32, #tpu.memory_space<vmem>>, vector<1x32xf32>
      %61 = vector.broadcast %60 : vector<1x32xf32> to vector<16x32xf32>
      %62 = arith.addf %59, %61 : vector<16x32xf32>
      %63 = arith.addf %62, %3 : vector<16x32xf32>
      %c0_34 = arith.constant 0 : index
      %c0_35 = arith.constant 0 : index
      %64 = vector.load %arg7[%c0_34, %c0_35] : memref<1x32xf32, #tpu.memory_space<vmem>>, vector<1x32xf32>
      %c0_36 = arith.constant 0 : index
      %c0_37 = arith.constant 0 : index
      %65 = vector.load %arg8[%c0_36, %c0_37] : memref<1x32xf32, #tpu.memory_space<vmem>>, vector<1x32xf32>
      %cst_38 = arith.constant dense<0.000000e+00> : vector<16xf32>
      %66 = vector.multi_reduction <add>, %63, %cst_38 [1] : vector<16x32xf32> to vector<16xf32>
      %67 = vector.shape_cast %66 : vector<16xf32> to vector<16x1xf32>
      %cst_39 = arith.constant 3.200000e+01 : f32
      %68 = vector.broadcast %cst_39 : f32 to vector<16x1xf32>
      %69 = arith.divf %67, %68 : vector<16x1xf32>
      %70 = vector.broadcast %69 : vector<16x1xf32> to vector<16x32xf32>
      %71 = arith.subf %63, %70 : vector<16x32xf32>
      %72 = arith.mulf %71, %71 : vector<16x32xf32>
      %cst_40 = arith.constant dense<0.000000e+00> : vector<16xf32>
      %73 = vector.multi_reduction <add>, %72, %cst_40 [1] : vector<16x32xf32> to vector<16xf32>
      %74 = vector.shape_cast %73 : vector<16xf32> to vector<16x1xf32>
      %cst_41 = arith.constant 3.200000e+01 : f32
      %75 = vector.broadcast %cst_41 : f32 to vector<16x1xf32>
      %76 = arith.divf %74, %75 : vector<16x1xf32>
      %cst_42 = arith.constant 9.99999996E-13 : f32
      %77 = vector.broadcast %cst_42 : f32 to vector<16x1xf32>
      %78 = arith.addf %76, %77 : vector<16x1xf32>
      %79 = math.rsqrt %78 : vector<16x1xf32>
      %80 = vector.broadcast %79 : vector<16x1xf32> to vector<16x32xf32>
      %81 = arith.mulf %71, %80 : vector<16x32xf32>
      %82 = vector.broadcast %64 : vector<1x32xf32> to vector<16x32xf32>
      %83 = arith.mulf %81, %82 : vector<16x32xf32>
      %84 = vector.broadcast %65 : vector<1x32xf32> to vector<16x32xf32>
      %85 = arith.addf %83, %84 : vector<16x32xf32>
      %c0_43 = arith.constant 0 : index
      %c0_44 = arith.constant 0 : index
      %86 = vector.load %arg9[%c0_43, %c0_44] : memref<16x32xf32, #tpu.memory_space<vmem>>, vector<16x32xf32>
      tpu.vector_store %arg9[%c0_43, %c0_44], %85 {strides = array<i32>} : memref<16x32xf32, #tpu.memory_space<vmem>>, vector<16x32xf32>,
    } else {
    }
    return
  }
  func.func @transform_0(%arg0: i32, %arg1: i32) -> (i32, i32) {
    %c0_i32 = arith.constant 0 : i32
    %c0_i32_0 = arith.constant 0 : i32
    return %arg0, %c0_i32 : i32, i32
  }
  func.func @transform_1(%arg0: i32, %arg1: i32) -> (i32, i32) {
    %c0_i32 = arith.constant 0 : i32
    %c0_i32_0 = arith.constant 0 : i32
    return %c0_i32, %arg1 : i32, i32
  }
  func.func @transform_2(%arg0: i32, %arg1: i32) -> (i32, i32) {
    %c0_i32 = arith.constant 0 : i32
    %c0_i32_0 = arith.constant 0 : i32
    return %c0_i32, %arg1 : i32, i32
  }
  func.func @transform_3(%arg0: i32, %arg1: i32) -> (i32, i32) {
    %c0_i32 = arith.constant 0 : i32
    %c0_i32_0 = arith.constant 0 : i32
    return %arg1, %c0_i32 : i32, i32
  }
  func.func @transform_4(%arg0: i32, %arg1: i32) -> (i32, i32) {
    %c0_i32 = arith.constant 0 : i32
    %c0_i32_0 = arith.constant 0 : i32
    %c0_i32_1 = arith.constant 0 : i32
    return %c0_i32, %c0_i32_0 : i32, i32
  }
  func.func @transform_5(%arg0: i32, %arg1: i32) -> (i32, i32) {
    %c0_i32 = arith.constant 0 : i32
    %c0_i32_0 = arith.constant 0 : i32
    %c0_i32_1 = arith.constant 0 : i32
    return %c0_i32, %c0_i32_0 : i32, i32
  }
  func.func @transform_6(%arg0: i32, %arg1: i32) -> (i32, i32) {
    %c0_i32 = arith.constant 0 : i32
    %c0_i32_0 = arith.constant 0 : i32
    %c0_i32_1 = arith.constant 0 : i32
    return %c0_i32, %c0_i32_0 : i32, i32
  }
  func.func @transform_7(%arg0: i32, %arg1: i32) -> (i32, i32) {
    %c0_i32 = arith.constant 0 : i32
    %c0_i32_0 = arith.constant 0 : i32
    return %arg0, %c0_i32 : i32, i32
  }
}

</mosaic_0001>

<bundles_post_ra>
// kernel: tpu_custom_call.1
= control target key start
LH: loop header
LB: loop body
LE: loop exit
PB: predicated region body
PF: predicated region fallthrough
CT: control target
= control target key end

     0   :  { %6 = vsyncpa [#allocation3], 0  ;;  %s441_s0 = inlined_call_operand.hbm [shape: f32[8,128], index: 0, kind: input, shape index: {}]   ;;  %s442_s1 = inlined_call_operand.hbm [shape: f32[32,128], index: 1, kind: output, shape index: {}]  }
   0x1   :  { %7 = vsyncpa [#allocation4], 0 }
   0x2   :  { %9 = vsyncpa [#allocation4 + $0x1], 0  ;;  %s357_s6 = smov 0   ;;  %s359_s7 = smov 0  }
   0x3   :  { %s361_s8 = smov 0   ;;  %s363_s9 = smov 0  }
   0x4 LB: > { %s378_s10 = sadd.s32 4294967295, %s344_s9   ;;  %s188_s11 = sadd.s32 4294967294, %s344_s9   ;;  %s344_s9 = sphi %s363_s9, %s448_s9   ;;  %s340_s8 = sphi %s361_s8, %s447_s8   ;;  %s336_s7 = sphi %s359_s7, %s446_s7   ;;  %s332_s6 = sphi %s357_s6, %s445_s6  }
   0x5   : > { %s382_s12 = sadd.s32 1, %s344_s9   ;;  %s43_s13 = sadd.s32 1, %s340_s8 }
   0x6   : > { %s40_s14 = ssub.s32 %s344_s9, %s382_s12  ;;  %p53_p0 = scmp.ne.s32.totalorder %s340_s8, %s336_s7 }
   0x7   : > { %p41_p1 = scmp.eq.s32.totalorder %s40_s14, 0  ;;  %p54_p2 = scmp.eq.s32.totalorder %s378_s10, 3 }
   0x8   : > { %p59_p3 = scmp.ne.s32.totalorder %s336_s7, %s332_s6  ;;  %p60_p4 = scmp.eq.s32.totalorder %s188_s11, 3 }
   0x9   : > { %s393_s15 = scalar_select %p41_p1, %s340_s8, %s43_s13  }
   0xa   : > { %p395_p5 = por %p54_p2, %p53_p0  ;;  %p399_p6 = por %p60_p4, %p59_p3 }
   0xb   : > { %p189_p7 = scmp.ge.s32.totalorder %s344_s9, 1  ;;  %p67_p8 = scmp.lt.s32.totalorder %s344_s9, 5 }
   0xc   : > { %p212_p9 = scmp.eq.s32.totalorder %s378_s10, 0  ;;  %s79_s20 = sshll.u32 %s441_s0, 4  ;;  %s80_s20 = int_to_ptr.hbm [resolvable:$true] %s79_s20 }
   0xd   : > { %p68_p10 = pnand %p189_p7, %p67_p8  ;;  %s346_s21 = smov [#allocation2]  }
   0xe   : > { %s81_s22 = sshll.u32 %s346_s21, 4  ;;  %s82_s22 = int_to_ptr.vmem [resolvable:$true] %s81_s22 }
   0xf   : > { %p204_p11 = pneg %p68_p10  ;;  %94 = sbr.rel (%p68_p10) target bundleno = 37 (0x25), region = 24 }
  0x11   : > { %p205_p12 = pnand %p212_p9, %p204_p11 }
  0x13   : > { %207 = dma.hbm_to_vmem [thread:$0]  (!%p205_p12), %s80_s20, 128, %s82_s22, [#allocation3]  }
  0x14   : > { %323 = dma.done.wait (%p212_p9), [#allocation3], 128  }
  0x15   : > { %325 = vsyncadd (%p212_p9), [#allocation3], 4294967168  ;;  %s107_s23 = sand.u32 1, %s336_s7   ;;  %s195_s24 = sshll.u32 %s378_s10, 3  ;;  %v110_v0 = vld [vmem:[#allocation2] sm:$0xff] }
  0x16   : > { %s193_s25 = sshll.u32 %s107_s23, 3  ;;  %s124_s28 = scalar_lea.hbm %s442_s1, %s195_s24  ;;  %v111_v1 = vadd.f32 1.0, %v110_v0 }
  0x17   : > { %s109_s29 = scalar_lea.vmem [#allocation5], %s193_s25  ;;  %s128_s2 = sshll.u32 %s124_s28, 4  ;;  %s129_s2 = int_to_ptr.hbm [resolvable:$true] %s128_s2 }
  0x18   : > { %s126_s30 = sshll.u32 %s109_s29, 4  ;;  %112 = vst [vmem:[%s109_s29] sm:$0xff] %v111_v1  ;;  %s114_s3 = scalar_lea.sflag [#allocation4], %s107_s23  ;;  %s127_s30 = int_to_ptr.vmem [resolvable:$true] %s126_s30 }
  0x19   : > { %s292_s4 = sshra.s32 %s129_s2, 4  ;;  %s298_s13 = scalar_lea.hbm %s442_s1, 32  ;;  %s293_s4 = int_to_ptr.hbm [resolvable:$true] %s292_s4 }
  0x1a   : > { %s294_s5 = scalar_lea.hbm %s293_s4, 8  ;;  %p299_p2 = scmp.lt.s32.totalorder %s293_s4, %s442_s1 }
  0x1b   : > { %p295_p13 = scmp.ne.s32.totalorder %s293_s4, %s294_s5  ;;  %p300_p3 = scmp.lt.s32.totalorder %s298_s13, %s294_s5 }
  0x1d   : > { %p296_p0 = pnand %p295_p13, %p395_p5  ;;  %p301_p4 = por %p300_p3, %p299_p2 }
  0x1f   : > { %p297_p1 = pneg %p296_p0 }
  0x21   : > { %p302_p7 = pnand %p301_p4, %p297_p1 }
  0x23   : > { %305 = shalt.err (!%p302_p7)
}
  0x24   : > { %202 = dma.vmem_to_hbm [thread:$0]  (%p395_p5), %s127_s30, 128, %s129_s2, %s114_s3  }
  0x25 PF: > { %p214_p8 = scmp.ge.s32.totalorder %s344_s9, 2  ;;  %s140_s19 = sand.u32 1, %s332_s6  }
  0x26   : > { %s141_s20 = scalar_lea.sflag [#allocation4], %s140_s19 }
  0x27   : > { %p209_p9 = pnand %p214_p8, %p399_p6 }
  0x29   : > { %p210_p10 = pneg %p209_p9 }
  0x2b   : > { %327 = dma.done.wait (%p210_p10), %s141_s20, 128  }
  0x2c   : > { %329 = vsyncadd (%p210_p10), %s141_s20, 4294967168  ;;  %p12_p11 = scmp.ge.s32.totalorder %s382_s12, 6   ;;  %s445_s6 = smov %s336_s7 }
  0x2d   : > { %s446_s7 = smov %s340_s8  ;;  %s447_s8 = smov %s393_s15 }
  0x2e   : > { %s448_s9 = smov %s382_s12  ;;  %14 = sbr.rel (!%p12_p11) target bundleno = 4 (0x4), region = 61 }
  0x33   :  { %147 = vsyncpa [#allocation3], 1 }
  0x34   :  { %149 = vsyncpa [#allocation3 + $0x1], 1 }
  0x35   :  { %150 = vsyncpa [#allocation4], 1 }
  0x36   :  { %152 = vsyncpa [#allocation4 + $0x1], 1 }

// kernel: _decoder_jit.19
= control target key start
LH: loop header
LB: loop body
LE: loop exit
PB: predicated region body
PF: predicated region fallthrough
CT: control target
= control target key end

     0   :  { %vm38_vm0 = vcmask 261120   ;;  %s115_s1 = inlined_call_operand.vmem [shape: bf16[32,32], index: 1, kind: input, shape index: {}]   ;;  %s116_s0 = inlined_call_operand.vmem [shape: f32[16,32], index: 0, kind: input, shape index: {}]   ;;  %s117_s2 = inlined_call_operand.vmem [shape: f32[1,32], index: 2, kind: input, shape index: {}]   ;;  %s118_s3 = inlined_call_operand.vmem [shape: f32[16,32], index: 3, kind: output, shape index: {}]  }
   0x1   :  { %v72_v0 = vld [vmem:[%s115_s1 + $0x8] sm:$0xff]  ;;  %v71_v1 = vld [vmem:[%s115_s1] sm:$0xff] }
   0x2   :  { %48 = vmatpush.bf16.msra.mxu0 %v72_v0  ;;  %v15_v2 = vld [vmem:[%s116_s0] sm:$0xff]  ;;  %v16_v3 = vld [vmem:[%s116_s0 + $0x8] sm:$0xff] }
   0x3   :  { %v17_v4 = vpack.c.bf16 %v16_v3, %v15_v2  ;;  %v73_v5 = vld [vmem:[%s117_s2] ss:$0 sm:$0xff] }
   0x6   :  { %49 = vmatpush.bf16.msra.mxu0 %v71_v1 }
   0x9   :  { %70 = vmatmul.msk.bf16.vlgmr.msra.gmra.mxu0 %vm38_vm0, %v17_v4 }
  0x86   :  { %v51_v6 = vpop.f32.mrf.mxu0 }
  0x87   :  { %v52_v7 = vadd.f32 %v73_v5, %v51_v6 }
  0x89   :  { %56 = vst.msk [vmem:[%s118_s3] sm:$0xff] %vm38_vm0, %v52_v7 }
  0x8e   :  { %v53_v8 = vpop.f32.mrf.mxu0 }
  0x8f   :  { %v54_v9 = vadd.f32 %v73_v5, %v53_v8 }
  0x91   :  { %57 = vst.msk [vmem:[%s118_s3 + $0x8] sm:$0xff] %vm38_vm0, %v54_v9 }

// kernel: _decoder_jit.16
= control target key start
LH: loop header
LB: loop body
LE: loop exit
PB: predicated region body
PF: predicated region fallthrough
CT: control target
= control target key end

     0   :  { %vm38_vm0 = vcmask 261120   ;;  %vm56_vm1 = vcmask 785408   ;;  %s116_s1 = inlined_call_operand.vmem [shape: bf16[32,96], index: 1, kind: input, shape index: {}]   ;;  %s117_s0 = inlined_call_operand.vmem [shape: f32[16,32], index: 0, kind: input, shape index: {}]   ;;  %s118_s2 = inlined_call_operand.vmem [shape: f32[1,96], index: 2, kind: input, shape index: {}]   ;;  %s119_s3 = inlined_call_operand.vmem [shape: f32[16,96], index: 3, kind: output, shape index: {}]  }
   0x1   :  { %v73_v0 = vld [vmem:[%s116_s1 + $0x8] sm:$0xff]  ;;  %v72_v1 = vld [vmem:[%s116_s1] sm:$0xff] }
   0x2   :  { %48 = vmatpush.bf16.msra.mxu0 %v73_v0  ;;  %v15_v2 = vld [vmem:[%s117_s0] sm:$0xff]  ;;  %v16_v3 = vld [vmem:[%s117_s0 + $0x8] sm:$0xff] }
   0x3   :  { %v17_v4 = vpack.c.bf16 %v16_v3, %v15_v2  ;;  %v74_v5 = vld [vmem:[%s118_s2] ss:$0 sm:$0xff] }
   0x6   :  { %49 = vmatpush.bf16.msra.mxu0 %v72_v1 }
   0x9   :  { %71 = vmatmul.msk.bf16.vlgmr.msra.gmra.mxu0 %vm38_vm0, %v17_v4 }
  0x86   :  { %v51_v6 = vpop.f32.mrf.mxu0 }
  0x87   :  { %v52_v7 = vadd.f32 %v74_v5, %v51_v6 }
  0x89   :  { %57 = vst.msk [vmem:[%s119_s3] sm:$0xff] %vm56_vm1, %v52_v7 }
  0x8e   :  { %v53_v8 = vpop.f32.mrf.mxu0 }
  0x8f   :  { %v54_v9 = vadd.f32 %v74_v5, %v53_v8 }
  0x91   :  { %58 = vst.msk [vmem:[%s119_s3 + $0x8] sm:$0xff] %vm56_vm1, %v54_v9 }

// kernel: _decoder_jit.18
= control target key start
LH: loop header
LB: loop body
LE: loop exit
PB: predicated region body
PF: predicated region fallthrough
CT: control target
= control target key end

     0   :  { %vm47_vm0 = vcmask 261120   ;;  %v159_v16 = vmov 32.0   ;;  %s235_s2 = inlined_call_operand.vmem [shape: bf16[32,32], index: 2, kind: input, shape index: {}]   ;;  %s236_s0 = inlined_call_operand.vmem [shape: f32[16,32], index: 0, kind: input, shape index: {}]   ;;  %s237_s3 = inlined_call_operand.vmem [shape: f32[1,32], index: 3, kind: input, shape index: {}]   ;;  %s238_s1 = inlined_call_operand.vmem [shape: f32[16,32], index: 1, kind: input, shape index: {}]   ;;  %s239_s4 = inlined_call_operand.vmem [shape: f32[1,32], index: 4, kind: input, shape index: {}]   ;;  %s240_s5 = inlined_call_operand.vmem [shape: f32[1,32], index: 5, kind: input, shape index: {}]   ;;  %s241_s6 = inlined_call_operand.vmem [shape: f32[16,32], index: 6, kind: output, shape index: {}]  }
   0x1   :  { %v148_v0 = vld [vmem:[%s235_s2 + $0x8] sm:$0xff]  ;;  %v147_v1 = vld [vmem:[%s235_s2] sm:$0xff]  ;;  %153 = vrcp.f32 %v159_v16 }
   0x2   :  { %57 = vmatpush.bf16.msra.mxu0 %v148_v0  ;;  %v24_v2 = vld [vmem:[%s236_s0] sm:$0xff]  ;;  %v25_v3 = vld [vmem:[%s236_s0 + $0x8] sm:$0xff] }
   0x3   :  { %v26_v4 = vpack.c.bf16 %v25_v3, %v24_v2  ;;  %v150_v5 = vld [vmem:[%s237_s3] ss:$0 sm:$0xff]  ;;  %v66_v12 = vld [vmem:[%s238_s1 + $0x8] sm:$0xff] }
   0x4   :  { %v65_v7 = vld [vmem:[%s238_s1] sm:$0xff] }
   0x5   :  { %v151_v47 = vld [vmem:[%s239_s4] ss:$0 sm:$0xff] }
   0x6   :  { %58 = vmatpush.bf16.msra.mxu0 %v147_v1  ;;  %v152_v50 = vld [vmem:[%s240_s5] ss:$0 sm:$0xff] }
   0x7   :  { %v154_v17 = vpop.eup %153 }
   0x8   :  { %v78_v18 = vmul.f32 32.0, %v154_v17  ;;  %vm82_vm1 = vweird.f32 %v154_v17 }
   0x9   :  { %146 = vmatmul.msk.bf16.vlgmr.msra.gmra.mxu0 %vm47_vm0, %v26_v4 }
   0xa   :  { %v79_v19 = vsub.f32 1.0, %v78_v18 }
   0xc   :  { %v80_v20 = vmul.f32 %v154_v17, %v79_v19 }
   0xe   :  { %v81_v21 = vadd.f32 %v154_v17, %v80_v20 }
  0x10   :  { %v83_v22 = vsel %vm82_vm1, %v154_v17, %v81_v21 }
  0x86   :  { %v60_v6 = vpop.f32.mrf.mxu0 }
  0x87   :  { %v61_v8 = vadd.f32 %v150_v5, %v60_v6 }
  0x89   :  { %v67_v9 = vadd.f32 %v65_v7, %v61_v8 }
  0x8b   :  { %v71_v10 = vsel %vm47_vm0, %v67_v9, 0.0 }
  0x8c   :  { %72 = vadd.xlane.f32.xlu0 %v71_v10 }
  0x8e   :  { %v62_v11 = vpop.f32.mrf.mxu0 }
  0x8f   :  { %v63_v13 = vadd.f32 %v150_v5, %v62_v11 }
  0x91   :  { %v68_v14 = vadd.f32 %v66_v12, %v63_v13 }
  0x93   :  { %v74_v15 = vsel %vm47_vm0, %v68_v14, 0.0 }
  0x94   :  { %75 = vadd.xlane.f32.xlu0 %v74_v15 }
  0xff   :  { %v73_v23 = vpop.xlane.xlu0 %72 }
 0x100   :  { %v84_v24 = vmul.f32 %v83_v22, %v73_v23 }
 0x102   :  { %v86_v25 = vsub.f32 %v67_v9, %v84_v24 }
 0x104   :  { %v88_v26 = vmul.f32 %v86_v25, %v86_v25 }
 0x106   :  { %v90_v27 = vsel %vm47_vm0, %v88_v26, 0.0 }
 0x107   :  { %91 = vadd.xlane.f32.xlu1 %v90_v27  ;;  %v76_v28 = vpop.xlane.xlu0 %75 }
 0x108   :  { %v85_v29 = vmul.f32 %v83_v22, %v76_v28 }
 0x10a   :  { %v87_v30 = vsub.f32 %v68_v14, %v85_v29 }
 0x10c   :  { %v89_v31 = vmul.f32 %v87_v30, %v87_v30 }
 0x10e   :  { %v93_v32 = vsel %vm47_vm0, %v89_v31, 0.0 }
 0x10f   :  { %94 = vadd.xlane.f32.xlu1 %v93_v32 }
 0x17a   :  { %v92_v33 = vpop.xlane.xlu1 %91 }
 0x17b   :  { %v96_v34 = vmul.f32 %v92_v33, %v83_v22 }
 0x17d   :  { %v98_v35 = vadd.f32 1e-05, %v96_v34 }
 0x17f   :  { %155 = vrsqrt.f32 %v98_v35  ;;  %vm106_vm3 = vweird.f32 %v98_v35 }
 0x182   :  { %v95_v36 = vpop.xlane.xlu1 %94 }
 0x183   :  { %v97_v37 = vmul.f32 %v95_v36, %v83_v22 }
 0x185   :  { %v156_v38 = vpop.eup %155  ;;  %v99_v39 = vadd.f32 1e-05, %v97_v37 }
 0x186   :  { %v101_v40 = vmul.f32 %v156_v38, %v98_v35  ;;  %vm107_vm2 = vweird.f32 %v156_v38 }
 0x187   :  { %157 = vrsqrt.f32 %v99_v39  ;;  %vm108_vm4 = vmor %vm106_vm3, %vm107_vm2  ;;  %vm116_vm6 = vweird.f32 %v99_v39 }
 0x188   :  { %v102_v41 = vmul.f32 %v156_v38, %v101_v40 }
 0x18a   :  { %v103_v42 = vmul.f32 0.5, %v102_v41 }
 0x18c   :  { %v104_v43 = vsub.f32 1.5, %v103_v42 }
 0x18d   :  { %v158_v44 = vpop.eup %157 }
 0x18e   :  { %v105_v45 = vmul.f32 %v156_v38, %v104_v43  ;;  %v111_v46 = vmul.f32 %v158_v44, %v99_v39  ;;  %vm117_vm5 = vweird.f32 %v158_v44 }
 0x18f   :  { %vm118_vm7 = vmor %vm116_vm6, %vm117_vm5 }
 0x190   :  { %v109_v48 = vsel %vm108_vm4, %v156_v38, %v105_v45  ;;  %v112_v49 = vmul.f32 %v158_v44, %v111_v46 }
 0x191   :  { %v120_v51 = vmul.f32 %v109_v48, %v86_v25 }
 0x192   :  { %v113_v52 = vmul.f32 0.5, %v112_v49 }
 0x193   :  { %v125_v53 = vmul.f32 %v151_v47, %v120_v51 }
 0x194   :  { %v114_v54 = vsub.f32 1.5, %v113_v52 }
 0x195   :  { %v130_v55 = vadd.f32 %v152_v50, %v125_v53 }
 0x196   :  { %v115_v56 = vmul.f32 %v158_v44, %v114_v54 }
 0x197   :  { %132 = vst.msk [vmem:[%s241_s6] sm:$0xff] %vm47_vm0, %v130_v55 }
 0x198   :  { %v119_v57 = vsel %vm118_vm7, %v158_v44, %v115_v56 }
 0x199   :  { %v121_v58 = vmul.f32 %v119_v57, %v87_v30 }
 0x19b   :  { %v126_v59 = vmul.f32 %v151_v47, %v121_v58 }
 0x19d   :  { %v131_v60 = vadd.f32 %v152_v50, %v126_v59 }
 0x19f   :  { %133 = vst.msk [vmem:[%s241_s6 + $0x8] sm:$0xff] %vm47_vm0, %v131_v60 }

// kernel: _decoder_jit.17
= control target key start
LH: loop header
LB: loop body
LE: loop exit
PB: predicated region body
PF: predicated region fallthrough
CT: control target
= control target key end

     0   :  { %9 = vsyncpa [#allocation3], 0  ;;  %s899_s0 = inlined_call_operand.vmem [shape: f32[2,8,96], index: 0, kind: input, shape index: {}]   ;;  %s900_s1 = inlined_call_operand.vmem [shape: f32[8,8], index: 1, kind: input, shape index: {}]   ;;  %s901_s2 = inlined_call_operand.vmem [shape: f32[2,8,32], index: 2, kind: output, shape index: {0}]   ;;  %s902_s3 = inlined_call_operand.hbm [shape: f32[2,4,8,8], index: 3, kind: output, shape index: {1}]  }
   0x1   :  { %11 = vsyncpa [#allocation3 + $0x1], 0  ;;  %s742_s12 = smov 0   ;;  %s744_s13 = smov 0  }
   0x2   :  { %s746_s14 = smov 0   ;;  %s748_s15 = smov 0  }
   0x3 LB: > { %s763_s16 = sadd.s32 4294967295, %s705_s15   ;;  %s549_s17 = sadd.s32 4294967294, %s705_s15   ;;  %s705_s15 = sphi %s748_s15, %s908_s15   ;;  %s701_s14 = sphi %s746_s14, %s907_s14   ;;  %s697_s13 = sphi %s744_s13, %s906_s13   ;;  %s693_s12 = sphi %s742_s12, %s905_s12  }
   0x4   : > { %s767_s18 = sadd.s32 1, %s705_s15   ;;  %s97_s19 = sadd.s32 1, %s701_s14 }
   0x5   : > { %s94_s20 = ssub.s32 %s705_s15, %s767_s18  ;;  %p107_p0 = scmp.ne.s32.totalorder %s701_s14, %s697_s13 }
   0x6   : > { %p95_p1 = scmp.eq.s32.totalorder %s94_s20, 0  ;;  %p108_p2 = scmp.eq.s32.totalorder %s763_s16, 1 }
   0x7   : > { %p113_p3 = scmp.ne.s32.totalorder %s697_s13, %s693_s12  ;;  %p114_p4 = scmp.eq.s32.totalorder %s549_s17, 1 }
   0x8   : > { %s778_s21 = scalar_select %p95_p1, %s701_s14, %s97_s19  }
   0x9   : > { %p780_p5 = por %p108_p2, %p107_p0  ;;  %p784_p6 = por %p114_p4, %p113_p3 }
   0xa   : > { %p552_p7 = scmp.ge.s32.totalorder %s705_s15, 1  ;;  %p142_p8 = scmp.lt.s32.totalorder %s705_s15, 3 }
   0xc   : > { %p143_p9 = pnand %p552_p7, %p142_p8 }
   0xd   : > { %p169_p10 = scmp.lt.s32.totalorder (!%p143_p9), %s763_s16, 1  ;;  %s707_s29 = smov (!%p143_p9), 96  }
   0xe   : > { %146 = sbr.rel (%p143_p9) target bundleno = 1206 (0x4b6), region = 28  ;;  %s708_s30 = smov (!%p143_p9), 88  }
   0xf   : > { %s709_s4 = smov (!%p143_p9), 120   ;;  %s710_s5 = smov (!%p143_p9), 64  }
  0x10   : > { %s711_s6 = smov (!%p143_p9), 80   ;;  %s712_s7 = smov (!%p143_p9), 72  }
  0x11   : > { %s713_s8 = smov (!%p143_p9), 112   ;;  %s714_s9 = smov (!%p143_p9), 104  }
  0x12   : > { %s166_s17 = sand.u32 (!%p143_p9), 1, %s697_s13   ;;  %s715_s26 = smov (!%p143_p9), 56  }
  0x13   : > { %s792_s24 = scalar_select %p169_p10, %s763_s16, 1  ;;  %vm184_vm0 = vcmask 64512   ;;  %v179_v8 = vld [vmem:[%s900_s1] sm:$0xff]  ;;  %vm224_vm1 = vcmask 1043456  }
  0x14   : > { %s553_s19 = sshll.u32 %s166_s17, 5  ;;  %s716_s27 = smov 40  }
  0x15   : > { %s554_s25 = sshll.u32 %s792_s24, 3  ;;  %s829_s20 = scalar_lea.vmem [#allocation2], %s553_s19 }
  0x16   : > { %s172_s28 = scalar_lea.vmem %s899_s0, %s554_s25 }
  0x17   : > { %v178_v0 = vld [vmem:[%s172_s28] sm:$0xff]  ;;  %s717_s28 = smov 48  }
  0x18   : > { %v800_v1 = vpack.c.bf16 %v178_v0, %v178_v0 }
  0x1a   : > { %182 = vrot.lane.b32.xlu0 %v800_v1, %s707_s29  ;;  %243 = vrot.lane.b32.xlu1 %v800_v1, %s708_s30  ;;  %s718_s29 = smov 8   ;;  %s572_s30 = sshll.u32 %s763_s16, 5 }
  0x1b   : > { %241 = vrot.lane.b32.xlu2 %v800_v1, %s709_s4  ;;  %s663_s16 = scalar_lea.hbm %s902_s3, 64 }
  0x23   : > { %219 = vrot.lane.b32.xlu2 %v800_v1, %s710_s5 }
  0x2b   : > { %303 = vrot.lane.b32.xlu2 %v800_v1, %s711_s6  ;;  %s459_s6 = scalar_lea.hbm %s902_s3, %s572_s30 }
  0x33   : > { %363 = vrot.lane.b32.xlu2 %v800_v1, %s712_s7  ;;  %s460_s7 = sshll.u32 %s829_s20, 4  ;;  %s461_s7 = int_to_ptr.vmem [resolvable:$true] %s460_s7 }
  0x3b   : > { %301 = vrot.lane.b32.xlu2 %v800_v1, %s713_s8  ;;  %s462_s8 = sshll.u32 %s459_s6, 4  ;;  %s463_s8 = int_to_ptr.hbm [resolvable:$true] %s462_s8 }
  0x3c   : > { %s657_s10 = sshra.s32 %s463_s8, 4  ;;  %s658_s10 = int_to_ptr.hbm [resolvable:$true] %s657_s10 }
  0x3d   : > { %s659_s11 = scalar_lea.hbm %s658_s10, 32  ;;  %p664_p0 = scmp.lt.s32.totalorder %s658_s10, %s902_s3 }
  0x3e   : > { %p660_p11 = scmp.ne.s32.totalorder %s658_s10, %s659_s11  ;;  %p665_p1 = scmp.lt.s32.totalorder %s663_s16, %s659_s11 }
  0x40   : > { %p661_p12 = pnand %p660_p11, %p780_p5  ;;  %p666_p2 = por %p665_p1, %p664_p0 }
  0x42   : > { %p662_p13 = pneg %p661_p12 }
  0x43   : > { %361 = vrot.lane.b32.xlu2 %v800_v1, %s714_s9  ;;  %s445_s9 = scalar_lea.sflag [#allocation3], %s166_s17 }
  0x44   : > { %p667_p3 = pnand %p666_p2, %p662_p13 }
  0x75   : > { %v242_v6 = vpop.permute.xlu2 %241 }
  0x7d   : > { %v220_v13 = vpop.permute.xlu2 %219 }
  0x7e   : > { %v226_v18 = vsel %vm224_vm1, %v220_v13, 0 }
  0x7f   : > { %235 = vmatpush.bf16.msra.mxu1 %v226_v18 }
  0x85   : > { %v304_v14 = vpop.permute.xlu2 %303 }
  0x86   : > { %v309_v16 = vsel %vm184_vm0, %v304_v14, 0 }
  0x87   : > { %318 = vmatpush.bf16.xpose.msrb.mxu1 %v309_v16 }
  0x8c   : > { %v183_v2 = vpop.permute.xlu0 %182  ;;  %v244_v4 = vpop.permute.xlu1 %243 }
  0x8d   : > { %v189_v3 = vsel %vm184_vm0, %v183_v2, 0  ;;  %v249_v5 = vsel %vm184_vm0, %v244_v4, 0  ;;  %v364_v15 = vpop.permute.xlu2 %363 }
  0x8e   : > { %198 = vmatpush.bf16.xpose.msra.mxu0 %v189_v3  ;;  %258 = vmatpush.bf16.xpose.msra.mxu2 %v249_v5  ;;  %v369_v17 = vsel %vm184_vm0, %v364_v15, 0 }
  0x95   : > { %556 = vmatmul.msk.bf16.vlgmr.msra.gmra.mxu0 %vm184_vm0, %v800_v1  ;;  %558 = vmatmul.msk.bf16.vlgmr.msra.gmra.mxu2 %vm184_vm0, %v242_v6  ;;  %v302_v19 = vpop.permute.xlu2 %301 }
  0x96   : > { %378 = vmatpush.bf16.xpose.msrb.mxu0 %v369_v17 }
  0x9d   : > { %v362_v22 = vpop.permute.xlu2 %361 }
  0xa5   : > { %564 = vmatmul.msk.bf16.vlgmr.msrb.gmra.mxu0 %vm184_vm0, %v362_v22 }
 0x112   : > { %v200_v7 = vpop.f32.mrf.mxu0 }
 0x113   : > { %v204_v9 = vmul.f32 0.35355338, %v200_v7 }
 0x115   : > { %v205_v10 = vadd.f32 %v204_v9, %v179_v8 }
 0x117   : > { %v206_v11 = vsel %vm184_vm0, %v205_v10, -inf }
 0x118   : > { %207 = vmax.xlane.f32.xlu0 %v206_v11  ;;  %v260_v20 = vpop.f32.mrf.mxu2 }
 0x119   : > { %v264_v21 = vmul.f32 0.35355338, %v260_v20 }
 0x11a   : > { %v202_v12 = vpop.f32.mrf.mxu0 }
 0x11b   : > { %v265_v23 = vadd.f32 %v264_v21, %v179_v8 }
 0x11d   : > { %v266_v25 = vsel %vm184_vm0, %v265_v23, -inf }
 0x11e   : > { %267 = vmax.xlane.f32.xlu2 %v266_v25 }
 0x120   : > { %v262_v28 = vpop.f32.mrf.mxu2 }
 0x122   : > { %v380_v31 = vpop.f32.mrf.mxu0 }
 0x123   : > { %v384_v32 = vmul.f32 0.35355338, %v380_v31 }
 0x125   : > { %v385_v33 = vadd.f32 %v384_v32, %v179_v8 }
 0x127   : > { %v386_v35 = vsel %vm184_vm0, %v385_v33, -inf }
 0x12a   : > { %v382_v36 = vpop.f32.mrf.mxu0 }
 0x18b   : > { %v208_v24 = vpop.xlane.xlu0 %207 }
 0x18c   : > { %v209_v26 = vsub.f32 %v205_v10, %v208_v24 }
 0x18e   : > { %v210_v27 = vmul.f32 1.442695, %v209_v26 }
 0x190   : > { %627 = vpow2.f32 %v210_v27 }
 0x191   : > { %v268_v42 = vpop.xlane.xlu2 %267 }
 0x192   : > { %v269_v43 = vsub.f32 %v265_v23, %v268_v42 }
 0x194   : > { %v270_v44 = vmul.f32 1.442695, %v269_v43 }
 0x196   : > { %v628_v29 = vpop.eup %627 }
 0x197   : > { %v212_v30 = vsel %vm184_vm0, %v628_v29, 0.0 }
 0x198   : > { %213 = vadd.xlane.f32.xlu1 %v212_v30 }
 0x1a0   : > { %387 = vmax.xlane.f32.xlu1 %v386_v35 }
 0x1b9   : > { %280 = vrot.lane.b32.xlu1 %v800_v1, %s715_s26 }
 0x1c1   : > { %400 = vrot.lane.b32.xlu1 %v800_v1, %s716_s27 }
 0x20b   : > { %v214_v34 = vpop.xlane.xlu1 %213 }
 0x20c   : > { %629 = vrcp.f32 %v214_v34 }
 0x20d   : > { %631 = vpow2.f32 %v270_v44 }
 0x212   : > { %v630_v37 = vpop.eup %629 }
 0x213   : > { %v216_v38 = vmul.f32 %v630_v37, %v628_v29  ;;  %v388_v46 = vpop.xlane.xlu1 %387  ;;  %v632_v53 = vpop.eup %631 }
 0x214   : > { %v389_v49 = vsub.f32 %v385_v33, %v388_v46  ;;  %v272_v54 = vsel %vm184_vm0, %v632_v53, 0.0 }
 0x215   : > { %217 = vst.msk [vmem:[%s829_s20] sm:$0xff] %vm184_vm0, %v216_v38  ;;  %v218_v39 = vpack.c.bf16 %v216_v38, %v216_v38 }
 0x216   : > { %v390_v51 = vmul.f32 1.442695, %v389_v49 }
 0x217   : > { %557 = vmatmul.msk.bf16.vlgmr.msra.gmra.mxu1 %vm184_vm0, %v218_v39 }
 0x218   : > { %633 = vpow2.f32 %v390_v51 }
 0x21e   : > { %v634_v55 = vpop.eup %633 }
 0x21f   : > { %v392_v56 = vsel %vm184_vm0, %v634_v55, 0.0 }
 0x227   : > { %561 = vmatmul.msk.bf16.vlgmr.msrb.gmra.mxu1 %vm184_vm0, %v302_v19 }
 0x22b   : > { %v281_v57 = vpop.permute.xlu1 %280 }
 0x22c   : > { %v286_v58 = vsel %vm224_vm1, %v281_v57, 0 }
 0x22d   : > { %295 = vmatpush.bf16.msra.mxu3 %v286_v58 }
 0x233   : > { %v401_v59 = vpop.permute.xlu1 %400 }
 0x234   : > { %v406_v60 = vsel %vm224_vm1, %v401_v59, 0 }
 0x235   : > { %415 = vmatpush.bf16.msrb.mxu2 %v406_v60 }
 0x294   : > { %v837_v40 = vpop.f32.mrf.mxu1 }
 0x29c   : > { %v239_v41 = vpop.f32.mrf.mxu1 }
 0x2a4   : > { %v320_v45 = vpop.f32.mrf.mxu1 }
 0x2a5   : > { %v324_v47 = vmul.f32 0.35355338, %v320_v45 }
 0x2a7   : > { %v325_v48 = vadd.f32 %v324_v47, %v179_v8 }
 0x2a9   : > { %v326_v50 = vsel %vm184_vm0, %v325_v48, -inf }
 0x2aa   : > { %327 = vmax.xlane.f32.xlu0 %v326_v50 }
 0x2ac   : > { %v322_v52 = vpop.f32.mrf.mxu1 }
 0x2b2   : > { %273 = vadd.xlane.f32.xlu0 %v272_v54 }
 0x2ba   : > { %393 = vadd.xlane.f32.xlu0 %v392_v56 }
 0x31d   : > { %v328_v61 = vpop.xlane.xlu0 %327 }
 0x31e   : > { %v329_v62 = vsub.f32 %v325_v48, %v328_v61 }
 0x320   : > { %v330_v63 = vmul.f32 1.442695, %v329_v62 }
 0x322   : > { %635 = vpow2.f32 %v330_v63 }
 0x325   : > { %v274_v0 = vpop.xlane.xlu0 %273 }
 0x326   : > { %637 = vrcp.f32 %v274_v0 }
 0x328   : > { %v636_v2 = vpop.eup %635 }
 0x329   : > { %v332_v3 = vsel %vm184_vm0, %v636_v2, 0.0 }
 0x32a   : > { %333 = vadd.xlane.f32.xlu0 %v332_v3 }
 0x32c   : > { %v638_v4 = vpop.eup %637 }
 0x32d   : > { %v394_v5 = vpop.xlane.xlu0 %393  ;;  %v276_v6 = vmul.f32 %v638_v4, %v632_v53 }
 0x32e   : > { %639 = vrcp.f32 %v394_v5 }
 0x32f   : > { %559 = vst.msk [vmem:[%s829_s20 + $0x8] sm:$0xff] %vm184_vm0, %v276_v6  ;;  %v279_v7 = vpack.c.bf16 %v276_v6, %v276_v6 }
 0x331   : > { %560 = vmatmul.msk.bf16.vlgmr.msra.gmra.mxu3 %vm184_vm0, %v279_v7 }
 0x334   : > { %v640_v8 = vpop.eup %639 }
 0x335   : > { %v396_v9 = vmul.f32 %v640_v8, %v634_v55 }
 0x337   : > { %565 = vst.msk [vmem:[%s829_s20 + $0x18] sm:$0xff] %vm184_vm0, %v396_v9  ;;  %v399_v10 = vpack.c.bf16 %v396_v9, %v396_v9 }
 0x339   : > { %566 = vmatmul.msk.bf16.vlgmr.msrb.gmra.mxu2 %vm184_vm0, %v399_v10 }
 0x33e   : > { %340 = vrot.lane.b32.xlu0 %v800_v1, %s717_s28 }
 0x39d   : > { %v334_v11 = vpop.xlane.xlu0 %333 }
 0x39e   : > { %641 = vrcp.f32 %v334_v11 }
 0x3a4   : > { %v642_v12 = vpop.eup %641 }
 0x3a5   : > { %v336_v13 = vmul.f32 %v642_v12, %v636_v2 }
 0x3a7   : > { %562 = vst.msk [vmem:[%s829_s20 + $0x10] sm:$0xff] %vm184_vm0, %v336_v13  ;;  %v339_v16 = vpack.c.bf16 %v336_v13, %v336_v13 }
 0x3b0   : > { %v341_v14 = vpop.permute.xlu0 %340 }
 0x3b1   : > { %v346_v15 = vsel %vm224_vm1, %v341_v14, 0 }
 0x3b2   : > { %355 = vmatpush.bf16.msrb.mxu3 %v346_v15 }
 0x3b4   : > { %v297_v17 = vpop.f32.mrf.mxu3 }
 0x3b5   : > { %563 = vmatmul.msk.bf16.vlgmr.msrb.gmra.mxu3 %vm184_vm0, %v339_v16  ;;  %422 = vrot.lane.b32.xlu2 %v297_v17, %s718_s29 }
 0x3bc   : > { %v299_v1 = vpop.f32.mrf.mxu3  ;;  %v417_v18 = vpop.f32.mrf.mxu2 }
 0x3c4   : > { %v419_v19 = vpop.f32.mrf.mxu2 }
 0x3c5   : > { %670 = shalt.err (!%p667_p3)
}
 0x3c6   : > { %s719_s17 = smov 128   ;;  %s720_s20 = smov 16   ;;  %vm434_vm2 = vcmask 130048   ;;  %vm436_vm3 = vcmask 195584   ;;  %vm438_vm4 = vcmask 261120  }
 0x3c7   : > { %573 = dma.vmem_to_hbm [thread:$0]  (%p780_p5), %s461_s7, 512, %s463_s8, %s445_s9, %s719_s17, %s719_s17, %s718_s29  }
 0x3c8   : > { %s721_s30 = smov 24   ;;  %s176_s22 = scalar_lea.vmem %s901_s2, %s554_s25 }
 0x40f   : > { %v423_v23 = vpop.permute.xlu2 %422 }
 0x410   : > { %v433_v24 = vsel %vm184_vm0, %v837_v40, %v423_v23 }
 0x438   : > { %v357_v20 = vpop.f32.mrf.mxu3 }
 0x439   : > { %426 = vrot.lane.b32.xlu1 %v357_v20, %s720_s20 }
 0x440   : > { %v359_v21 = vpop.f32.mrf.mxu3 }
 0x441   : > { %430 = vrot.lane.b32.xlu1 %v417_v18, %s721_s30 }
 0x4ab   : > { %v427_v22 = vpop.permute.xlu1 %426 }
 0x4ac   : > { %v435_v25 = vsel %vm434_vm2, %v433_v24, %v427_v22 }
 0x4b3   : > { %v431_v26 = vpop.permute.xlu1 %430 }
 0x4b4   : > { %v437_v27 = vsel %vm436_vm3, %v435_v25, %v431_v26 }
 0x4b5   : > { %439 = vst.msk [vmem:[%s176_s22] sm:$0xff] %vm438_vm4, %v437_v27 }
 0x4b6 PF: > { %p579_p4 = scmp.ge.s32.totalorder %s705_s15, 2  ;;  %s484_s29 = sand.u32 1, %s693_s12  }
 0x4b7   : > { %s485_s6 = scalar_lea.sflag [#allocation3], %s484_s29 }
 0x4b8   : > { %p576_p5 = pnand %p579_p4, %p784_p6 }
 0x4ba   : > { %p577_p7 = pneg %p576_p5 }
 0x4bc   : > { %688 = dma.done.wait (%p577_p7), %s485_s6, 512  }
 0x4bd   : > { %690 = vsyncadd (%p577_p7), %s485_s6, 4294966784  ;;  %p14_p8 = scmp.ge.s32.totalorder %s767_s18, 4   ;;  %s905_s12 = smov %s697_s13 }
 0x4be   : > { %s906_s13 = smov %s701_s14  ;;  %s907_s14 = smov %s778_s21 }
 0x4bf   : > { %s908_s15 = smov %s767_s18  ;;  %16 = sbr.rel (!%p14_p8) target bundleno = 3 (0x3), region = 78 }
 0x4c4   :  { %491 = vsyncpa [#allocation3], 1 }
 0x4c5   :  { %493 = vsyncpa [#allocation3 + $0x1], 1 }

// kernel: _decoder_jit.20
= control target key start
LH: loop header
LB: loop body
LE: loop exit
PB: predicated region body
PF: predicated region fallthrough
CT: control target
= control target key end

     0   :  { %vm40_vm0 = vcmask 261120   ;;  %vm65_vm1 = vcmask 523264   ;;  %vm68_vm2 = vcmask 519168   ;;  %s136_s1 = inlined_call_operand.vmem [shape: bf16[32,64], index: 1, kind: input, shape index: {}]   ;;  %s137_s0 = inlined_call_operand.vmem [shape: f32[20,32], index: 0, kind: input, shape index: {}]   ;;  %s138_s2 = inlined_call_operand.vmem [shape: f32[1,64], index: 2, kind: input, shape index: {}]   ;;  %s139_s3 = inlined_call_operand.vmem [shape: f32[20,64], index: 3, kind: output, shape index: {}]  }
   0x1   :  { %v85_v0 = vld [vmem:[%s136_s1 + $0x8] sm:$0xff]  ;;  %v84_v1 = vld [vmem:[%s136_s1] sm:$0xff]  ;;  %v17_v4 = vld [vmem:[%s137_s0 + $0x10] sm:$0xf] }
   0x2   :  { %53 = vmatpush.bf16.msra.mxu0 %v85_v0  ;;  %86 = vmatpush.bf16.msra.mxu1 %v85_v0  ;;  %v15_v2 = vld [vmem:[%s137_s0] sm:$0xff]  ;;  %v16_v3 = vld [vmem:[%s137_s0 + $0x8] sm:$0xff]  ;;  %v19_v6 = vpack.c.bf16 %v17_v4, %v17_v4 }
   0x3   :  { %v18_v5 = vpack.c.bf16 %v16_v3, %v15_v2  ;;  %v88_v7 = vld [vmem:[%s138_s2] ss:$0 sm:$0xff] }
   0x6   :  { %54 = vmatpush.bf16.msra.mxu0 %v84_v1  ;;  %87 = vmatpush.bf16.msra.mxu1 %v84_v1 }
   0x9   :  { %82 = vmatmul.msk.bf16.vlgmr.msra.gmra.mxu0 %vm40_vm0, %v18_v5  ;;  %83 = vmatmul.msk.bf16.vlgmr.msra.gmra.mxu1 %vm40_vm0, %v19_v6 }
  0x86   :  { %v56_v8 = vpop.f32.mrf.mxu0  ;;  %v61_v9 = vpop.f32.mrf.mxu1 }
  0x87   :  { %v57_v10 = vadd.f32 %v88_v7, %v56_v8  ;;  %v62_v11 = vadd.f32 %v88_v7, %v61_v9 }
  0x89   :  { %66 = vst.msk [vmem:[%s139_s3] sm:$0xff] %vm65_vm1, %v57_v10 }
  0x8a   :  { %69 = vst.msk [vmem:[%s139_s3 + $0x10] sm:$0xf] %vm68_vm2, %v62_v11 }
  0x8e   :  { %v58_v12 = vpop.f32.mrf.mxu0  ;;  %v63_v13 = vpop.f32.mrf.mxu1 }
  0x8f   :  { %v59_v14 = vadd.f32 %v88_v7, %v58_v12 }
  0x91   :  { %67 = vst.msk [vmem:[%s139_s3 + $0x8] sm:$0xff] %vm65_vm1, %v59_v14 }

// kernel: _decoder_jit.21
= control target key start
LH: loop header
LB: loop body
LE: loop exit
PB: predicated region body
PF: predicated region fallthrough
CT: control target
= control target key end

     0   :  { %10 = vsyncpa [#allocation3], 0  ;;  %s959_s0 = inlined_call_operand.vmem [shape: f32[2,8,32], index: 0, kind: input, shape index: {}]   ;;  %s960_s1 = inlined_call_operand.vmem [shape: f32[2,10,64], index: 1, kind: input, shape index: {}]   ;;  %s961_s2 = inlined_call_operand.vmem [shape: f32[8,10], index: 2, kind: input, shape index: {}]   ;;  %s962_s3 = inlined_call_operand.vmem [shape: f32[2,8,32], index: 3, kind: output, shape index: {0}]   ;;  %s963_s4 = inlined_call_operand.hbm [shape: f32[2,4,8,10], index: 4, kind: output, shape index: {1}]  }
   0x1   :  { %12 = vsyncpa [#allocation3 + $0x1], 0  ;;  %s804_s15 = smov 0   ;;  %s806_s16 = smov 0  }
   0x2   :  { %s808_s17 = smov 0   ;;  %s810_s18 = smov 0  }
   0x3 LB: > { %s825_s19 = sadd.s32 4294967295, %s766_s18   ;;  %s611_s20 = sadd.s32 4294967294, %s766_s18   ;;  %s766_s18 = sphi %s810_s18, %s969_s18   ;;  %s762_s17 = sphi %s808_s17, %s968_s17   ;;  %s758_s16 = sphi %s806_s16, %s967_s16   ;;  %s754_s15 = sphi %s804_s15, %s966_s15  }
   0x4   : > { %s829_s21 = sadd.s32 1, %s766_s18   ;;  %s124_s22 = sadd.s32 1, %s762_s17 }
   0x5   : > { %s121_s23 = ssub.s32 %s766_s18, %s829_s21  ;;  %p134_p0 = scmp.ne.s32.totalorder %s762_s17, %s758_s16 }
   0x6   : > { %p122_p1 = scmp.eq.s32.totalorder %s121_s23, 0  ;;  %p135_p2 = scmp.eq.s32.totalorder %s825_s19, 1 }
   0x7   : > { %p140_p3 = scmp.ne.s32.totalorder %s758_s16, %s754_s15  ;;  %p141_p4 = scmp.eq.s32.totalorder %s611_s20, 1 }
   0x8   : > { %s840_s24 = scalar_select %p122_p1, %s762_s17, %s124_s22  }
   0x9   : > { %p842_p5 = por %p135_p2, %p134_p0  ;;  %p846_p6 = por %p141_p4, %p140_p3 }
   0xa   : > { %p614_p7 = scmp.ge.s32.totalorder %s766_s18, 1  ;;  %p177_p8 = scmp.lt.s32.totalorder %s766_s18, 3 }
   0xc   : > { %p178_p9 = pnand %p614_p7, %p177_p8 }
   0xd   : > { %p211_p10 = scmp.lt.s32.totalorder (!%p178_p9), %s825_s19, 1  ;;  %s768_s10 = smov (!%p178_p9), 96  }
   0xe   : > { %181 = sbr.rel (%p178_p9) target bundleno = 1091 (0x443), region = 32  ;;  %s769_s11 = smov (!%p178_p9), 112  }
   0xf   : > { %s770_s12 = smov (!%p178_p9), 104   ;;  %s771_s20 = smov (!%p178_p9), 120  }
  0x10   : > { %s208_s22 = sand.u32 (!%p178_p9), 1, %s758_s16   ;;  %s772_s30 = smov (!%p178_p9), 88  }
  0x11   : > { %s615_s23 = sshll.u32 (!%p178_p9), %s208_s22, 5  ;;  %s773_s5 = smov (!%p178_p9), 80  }
  0x12   : > { %s775_s7 = smov (!%p178_p9), 8   ;;  %s637_s8 = sshll.u32 (!%p178_p9), %s825_s19, 5 }
  0x13   : > { %s854_s27 = scalar_select %p211_p10, %s825_s19, 1  ;;  %vm231_vm0 = vcmask 64512   ;;  %v228_v7 = vld [vmem:[%s961_s2] sm:$0xff]  ;;  %vm253_vm1 = vcmask 80896   ;;  %vm273_vm2 = vcmask 1044480  }
  0x14   : > { %s495_s14 = scalar_lea.sflag [#allocation3], %s208_s22  ;;  %s724_s19 = scalar_lea.hbm %s963_s4, 64 }
  0x15   : > { %s636_s28 = sshll.u32 %s854_s27, 4  ;;  %s616_s29 = sshll.u32 %s854_s27, 3 }
  0x16   : > { %s219_s6 = scalar_lea.vmem %s960_s1, %s636_s28  ;;  %s214_s9 = scalar_lea.vmem %s959_s0, %s616_s29 }
  0x17   : > { %v225_v0 = vld [vmem:[%s219_s6] sm:$0xff]  ;;  %v226_v1 = vld [vmem:[%s219_s6 + $0x8] sm:$0x3]  ;;  %s888_s28 = scalar_lea.vmem [#allocation2], %s615_s23  ;;  %s774_s6 = smov 72  }
  0x18   : > { %v861_v2 = vpack.c.bf16 %v226_v1, %v225_v0  ;;  %v227_v4 = vld [vmem:[%s214_s9] sm:$0xff] }
  0x19   : > { %v229_v5 = vpack.c.bf16 %v227_v4, %v227_v4 }
  0x1a   : > { %v236_v3 = vsel %vm231_vm0, %v861_v2, 0  ;;  %268 = vrot.lane.b32.xlu2 %v861_v2, %s768_s10 }
  0x1b   : > { %245 = vmatpush.bf16.xpose.msra.mxu0 %v236_v3 }
  0x22   : > { %620 = vmatmul.msk.bf16.vlgmr.msra.gmra.mxu0 %vm231_vm0, %v229_v5  ;;  %353 = vrot.lane.b32.xlu2 %v861_v2, %s769_s11 }
  0x2a   : > { %413 = vrot.lane.b32.xlu2 %v861_v2, %s770_s12 }
  0x32   : > { %351 = vrot.lane.b32.xlu2 %v229_v5, %s769_s11  ;;  %s509_s11 = scalar_lea.hbm %s963_s4, %s637_s8 }
  0x33   : > { %s512_s13 = sshll.u32 %s509_s11, 4  ;;  %s513_s13 = int_to_ptr.hbm [resolvable:$true] %s512_s13 }
  0x74   : > { %v269_v12 = vpop.permute.xlu2 %268 }
  0x75   : > { %v275_v23 = vsel %vm273_vm2, %v269_v12, 0 }
  0x76   : > { %284 = vmatpush.bf16.msra.mxu1 %v275_v23 }
  0x7c   : > { %v354_v13 = vpop.permute.xlu2 %353 }
  0x7d   : > { %v359_v24 = vsel %vm231_vm0, %v354_v13, 0 }
  0x7e   : > { %368 = vmatpush.bf16.xpose.msrb.mxu1 %v359_v24 }
  0x84   : > { %v414_v17 = vpop.permute.xlu2 %413 }
  0x85   : > { %v419_v18 = vsel %vm231_vm0, %v414_v17, 0 }
  0x86   : > { %428 = vmatpush.bf16.xpose.msrb.mxu0 %v419_v18 }
  0x8c   : > { %v352_v31 = vpop.permute.xlu2 %351 }
  0x9f   : > { %v247_v6 = vpop.f32.mrf.mxu0 }
  0xa0   : > { %v251_v8 = vmul.f32 0.35355338, %v247_v6 }
  0xa2   : > { %v252_v9 = vadd.f32 %v251_v8, %v228_v7 }
  0xa4   : > { %v254_v10 = vsel %vm253_vm1, %v252_v9, -inf }
  0xa5   : > { %255 = vmax.xlane.f32.xlu0 %v254_v10 }
  0xa7   : > { %v249_v11 = vpop.f32.mrf.mxu0 }
  0xb9   : > { %293 = vrot.lane.b32.xlu0 %v861_v2, %s771_s20 }
  0xc1   : > { %411 = vrot.lane.b32.xlu0 %v229_v5, %s770_s12  ;;  %s510_s12 = sshll.u32 %s888_s28, 4  ;;  %s511_s12 = int_to_ptr.vmem [resolvable:$true] %s510_s12 }
 0x118   : > { %v256_v14 = vpop.xlane.xlu0 %255 }
 0x119   : > { %v257_v15 = vsub.f32 %v252_v9, %v256_v14 }
 0x11b   : > { %v258_v16 = vmul.f32 1.442695, %v257_v15 }
 0x11d   : > { %688 = vpow2.f32 %v258_v16 }
 0x123   : > { %v689_v19 = vpop.eup %688 }
 0x124   : > { %v260_v20 = vsel %vm253_vm1, %v689_v19, 0.0 }
 0x125   : > { %261 = vadd.xlane.f32.xlu1 %v260_v20 }
 0x12b   : > { %v294_v21 = vpop.permute.xlu0 %293 }
 0x12c   : > { %v299_v25 = vsel %vm231_vm0, %v294_v21, 0 }
 0x12d   : > { %308 = vmatpush.bf16.xpose.msra.mxu2 %v299_v25 }
 0x133   : > { %v412_v22 = vpop.permute.xlu0 %411 }
 0x134   : > { %628 = vmatmul.msk.bf16.vlgmr.msrb.gmra.mxu0 %vm231_vm0, %v412_v22 }
 0x13e   : > { %291 = vrot.lane.b32.xlu1 %v229_v5, %s771_s20  ;;  %s718_s20 = sshra.s32 %s513_s13, 4  ;;  %s719_s20 = int_to_ptr.hbm [resolvable:$true] %s718_s20 }
 0x13f   : > { %s720_s23 = scalar_lea.hbm %s719_s20, 32  ;;  %p725_p0 = scmp.lt.s32.totalorder %s719_s20, %s963_s4 }
 0x140   : > { %p721_p11 = scmp.ne.s32.totalorder %s719_s20, %s720_s23  ;;  %p726_p1 = scmp.lt.s32.totalorder %s724_s19, %s720_s23 }
 0x142   : > { %p722_p12 = pnand %p721_p11, %p842_p5  ;;  %p727_p2 = por %p726_p1, %p725_p0 }
 0x144   : > { %p723_p13 = pneg %p722_p12 }
 0x146   : > { %p728_p3 = pnand %p727_p2, %p723_p13 }
 0x198   : > { %v262_v26 = vpop.xlane.xlu1 %261 }
 0x199   : > { %690 = vrcp.f32 %v262_v26 }
 0x19f   : > { %v691_v27 = vpop.eup %690 }
 0x1a0   : > { %v264_v28 = vmul.f32 %v691_v27, %v689_v19 }
 0x1a2   : > { %265 = vst.msk [vmem:[%s888_s28] sm:$0xff] %vm253_vm1, %v264_v28  ;;  %v266_v29 = vpack.c.bf16 %v264_v28, %v264_v28 }
 0x1a4   : > { %621 = vmatmul.msk.bf16.vlgmr.msra.gmra.mxu1 %vm253_vm1, %v266_v29 }
 0x1b0   : > { %v292_v30 = vpop.permute.xlu1 %291 }
 0x1b1   : > { %622 = vmatmul.msk.bf16.vlgmr.msra.gmra.mxu2 %vm231_vm0, %v292_v30  ;;  %v430_v32 = vpop.f32.mrf.mxu0 }
 0x1b2   : > { %v434_v33 = vmul.f32 0.35355338, %v430_v32 }
 0x1b4   : > { %625 = vmatmul.msk.bf16.vlgmr.msrb.gmra.mxu1 %vm231_vm0, %v352_v31  ;;  %v435_v34 = vadd.f32 %v434_v33, %v228_v7 }
 0x1b6   : > { %v436_v35 = vsel %vm253_vm1, %v435_v34, -inf }
 0x1b7   : > { %437 = vmax.xlane.f32.xlu0 %v436_v35 }
 0x1b9   : > { %v432_v36 = vpop.f32.mrf.mxu0 }
 0x221   : > { %v896_v37 = vpop.f32.mrf.mxu1 }
 0x229   : > { %v288_v38 = vpop.f32.mrf.mxu1 }
 0x22a   : > { %v438_v51 = vpop.xlane.xlu0 %437 }
 0x22b   : > { %v439_v55 = vsub.f32 %v435_v34, %v438_v51 }
 0x22d   : > { %v440_v57 = vmul.f32 1.442695, %v439_v55 }
 0x231   : > { %v370_v39 = vpop.f32.mrf.mxu1 }
 0x232   : > { %v374_v40 = vmul.f32 0.35355338, %v370_v39 }
 0x234   : > { %v310_v41 = vpop.f32.mrf.mxu2  ;;  %v375_v42 = vadd.f32 %v374_v40, %v228_v7 }
 0x235   : > { %v314_v43 = vmul.f32 0.35355338, %v310_v41 }
 0x236   : > { %v376_v44 = vsel %vm253_vm1, %v375_v42, -inf }
 0x237   : > { %377 = vmax.xlane.f32.xlu1 %v376_v44  ;;  %v315_v45 = vadd.f32 %v314_v43, %v228_v7 }
 0x239   : > { %v372_v46 = vpop.f32.mrf.mxu1  ;;  %v316_v47 = vsel %vm253_vm1, %v315_v45, -inf }
 0x23a   : > { %317 = vmax.xlane.f32.xlu2 %v316_v47 }
 0x23c   : > { %v312_v48 = vpop.f32.mrf.mxu2 }
 0x250   : > { %330 = vrot.lane.b32.xlu1 %v861_v2, %s772_s30 }
 0x2aa   : > { %v378_v49 = vpop.xlane.xlu1 %377 }
 0x2ab   : > { %v379_v50 = vsub.f32 %v375_v42, %v378_v49 }
 0x2ad   : > { %v380_v52 = vmul.f32 1.442695, %v379_v50  ;;  %v318_v53 = vpop.xlane.xlu2 %317 }
 0x2ae   : > { %v319_v54 = vsub.f32 %v315_v45, %v318_v53 }
 0x2af   : > { %692 = vpow2.f32 %v380_v52 }
 0x2b0   : > { %v320_v56 = vmul.f32 1.442695, %v319_v54 }
 0x2b2   : > { %694 = vpow2.f32 %v320_v56 }
 0x2b3   : > { %696 = vpow2.f32 %v440_v57 }
 0x2b5   : > { %v693_v58 = vpop.eup %692 }
 0x2b6   : > { %v382_v59 = vsel %vm253_vm1, %v693_v58, 0.0 }
 0x2b7   : > { %383 = vadd.xlane.f32.xlu0 %v382_v59 }
 0x2b8   : > { %v695_v60 = vpop.eup %694 }
 0x2b9   : > { %v322_v61 = vsel %vm253_vm1, %v695_v60, 0.0  ;;  %v697_v62 = vpop.eup %696 }
 0x2ba   : > { %323 = vadd.xlane.f32.xlu2 %v322_v61  ;;  %v442_v63 = vsel %vm253_vm1, %v697_v62, 0.0 }
 0x2c2   : > { %443 = vadd.xlane.f32.xlu2 %v442_v63  ;;  %v331_v0 = vpop.permute.xlu1 %330 }
 0x2c3   : > { %v336_v1 = vsel %vm273_vm2, %v331_v0, 0 }
 0x2c4   : > { %345 = vmatpush.bf16.msra.mxu3 %v336_v1 }
 0x2cb   : > { %390 = vrot.lane.b32.xlu0 %v861_v2, %s773_s5 }
 0x2da   : > { %450 = vrot.lane.b32.xlu2 %v861_v2, %s774_s6 }
 0x32a   : > { %v384_v3 = vpop.xlane.xlu0 %383 }
 0x32b   : > { %698 = vrcp.f32 %v384_v3 }
 0x32d   : > { %v324_v4 = vpop.xlane.xlu2 %323 }
 0x32e   : > { %700 = vrcp.f32 %v324_v4 }
 0x331   : > { %v699_v5 = vpop.eup %698 }
 0x332   : > { %v386_v6 = vmul.f32 %v699_v5, %v693_v58 }
 0x334   : > { %v701_v7 = vpop.eup %700  ;;  %626 = vst.msk [vmem:[%s888_s28 + $0x10] sm:$0xff] %vm253_vm1, %v386_v6  ;;  %v389_v17 = vpack.c.bf16 %v386_v6, %v386_v6 }
 0x335   : > { %v444_v8 = vpop.xlane.xlu2 %443  ;;  %v326_v9 = vmul.f32 %v701_v7, %v695_v60 }
 0x336   : > { %702 = vrcp.f32 %v444_v8 }
 0x337   : > { %623 = vst.msk [vmem:[%s888_s28 + $0x8] sm:$0xff] %vm253_vm1, %v326_v9  ;;  %v329_v2 = vpack.c.bf16 %v326_v9, %v326_v9 }
 0x339   : > { %624 = vmatmul.msk.bf16.vlgmr.msra.gmra.mxu3 %vm253_vm1, %v329_v2 }
 0x33c   : > { %v703_v10 = vpop.eup %702 }
 0x33d   : > { %v446_v11 = vmul.f32 %v703_v10, %v697_v62  ;;  %v451_v12 = vpop.permute.xlu2 %450  ;;  %v391_v13 = vpop.permute.xlu0 %390 }
 0x33e   : > { %v396_v14 = vsel %vm273_vm2, %v391_v13, 0  ;;  %v456_v15 = vsel %vm273_vm2, %v451_v12, 0 }
 0x33f   : > { %629 = vst.msk [vmem:[%s888_s28 + $0x18] sm:$0xff] %vm253_vm1, %v446_v11  ;;  %405 = vmatpush.bf16.msrb.mxu3 %v396_v14  ;;  %465 = vmatpush.bf16.msrb.mxu2 %v456_v15  ;;  %v449_v16 = vpack.c.bf16 %v446_v11, %v446_v11 }
 0x342   : > { %630 = vmatmul.msk.bf16.vlgmr.msrb.gmra.mxu2 %vm253_vm1, %v449_v16 }
 0x349   : > { %627 = vmatmul.msk.bf16.vlgmr.msrb.gmra.mxu3 %vm253_vm1, %v389_v17 }
 0x3bc   : > { %v347_v18 = vpop.f32.mrf.mxu3 }
 0x3bd   : > { %472 = vrot.lane.b32.xlu1 %v347_v18, %s775_s7 }
 0x3be   : > { %731 = shalt.err (!%p728_p3)
}
 0x3bf   : > { %s776_s22 = smov 128   ;;  %s777_s28 = smov 24   ;;  %vm484_vm3 = vcmask 130048   ;;  %vm486_vm4 = vcmask 195584   ;;  %vm488_vm5 = vcmask 261120  }
 0x3c0   : > { %638 = dma.vmem_to_hbm [thread:$0]  (%p842_p5), %s511_s12, 512, %s513_s13, %s495_s14, %s776_s22, %s776_s22, %s775_s7  }
 0x3c1   : > { %s778_s8 = smov 16   ;;  %s223_s7 = scalar_lea.vmem %s962_s3, %s616_s29 }
 0x3c4   : > { %v349_v19 = vpop.f32.mrf.mxu3 }
 0x3c5   : > { %v467_v20 = vpop.f32.mrf.mxu2 }
 0x3c6   : > { %480 = vrot.lane.b32.xlu1 %v467_v20, %s777_s28 }
 0x3cc   : > { %v407_v21 = vpop.f32.mrf.mxu3 }
 0x3cd   : > { %v469_v22 = vpop.f32.mrf.mxu2  ;;  %476 = vrot.lane.b32.xlu0 %v407_v21, %s778_s8 }
 0x3d4   : > { %v409_v23 = vpop.f32.mrf.mxu3 }
 0x42f   : > { %v473_v24 = vpop.permute.xlu1 %472 }
 0x430   : > { %v483_v25 = vsel %vm231_vm0, %v896_v37, %v473_v24 }
 0x438   : > { %v481_v27 = vpop.permute.xlu1 %480 }
 0x43f   : > { %v477_v26 = vpop.permute.xlu0 %476 }
 0x440   : > { %v485_v28 = vsel %vm484_vm3, %v483_v25, %v477_v26 }
 0x441   : > { %v487_v29 = vsel %vm486_vm4, %v485_v28, %v481_v27 }
 0x442   : > { %489 = vst.msk [vmem:[%s223_s7] sm:$0xff] %vm488_vm5, %v487_v29 }
 0x443 PF: > { %p644_p4 = scmp.ge.s32.totalorder %s766_s18, 2  ;;  %s534_s11 = sand.u32 1, %s754_s15  }
 0x444   : > { %s535_s27 = scalar_lea.sflag [#allocation3], %s534_s11 }
 0x445   : > { %p641_p5 = pnand %p644_p4, %p846_p6 }
 0x447   : > { %p642_p7 = pneg %p641_p5 }
 0x449   : > { %749 = dma.done.wait (%p642_p7), %s535_s27, 512  }
 0x44a   : > { %751 = vsyncadd (%p642_p7), %s535_s27, 4294966784  ;;  %p15_p8 = scmp.ge.s32.totalorder %s829_s21, 4   ;;  %s966_s15 = smov %s758_s16 }
 0x44b   : > { %s967_s16 = smov %s762_s17  ;;  %s968_s17 = smov %s840_s24 }
 0x44c   : > { %s969_s18 = smov %s829_s21  ;;  %17 = sbr.rel (!%p15_p8) target bundleno = 3 (0x3), region = 85 }
 0x451   :  { %541 = vsyncpa [#allocation3], 1 }
 0x452   :  { %543 = vsyncpa [#allocation3 + $0x1], 1 }

// kernel: _decoder_jit.22
= control target key start
LH: loop header
LB: loop body
LE: loop exit
PB: predicated region body
PF: predicated region fallthrough
CT: control target
= control target key end

     0   :  { %vm47_vm0 = vcmask 261120   ;;  %v159_v16 = vmov 32.0   ;;  %s235_s2 = inlined_call_operand.vmem [shape: bf16[32,32], index: 2, kind: input, shape index: {}]   ;;  %s236_s0 = inlined_call_operand.vmem [shape: f32[16,32], index: 0, kind: input, shape index: {}]   ;;  %s237_s3 = inlined_call_operand.vmem [shape: f32[1,32], index: 3, kind: input, shape index: {}]   ;;  %s238_s1 = inlined_call_operand.vmem [shape: f32[16,32], index: 1, kind: input, shape index: {}]   ;;  %s239_s4 = inlined_call_operand.vmem [shape: f32[1,32], index: 4, kind: input, shape index: {}]   ;;  %s240_s5 = inlined_call_operand.vmem [shape: f32[1,32], index: 5, kind: input, shape index: {}]   ;;  %s241_s6 = inlined_call_operand.vmem [shape: f32[16,32], index: 6, kind: output, shape index: {}]  }
   0x1   :  { %v148_v0 = vld [vmem:[%s235_s2 + $0x8] sm:$0xff]  ;;  %v147_v1 = vld [vmem:[%s235_s2] sm:$0xff]  ;;  %153 = vrcp.f32 %v159_v16 }
   0x2   :  { %57 = vmatpush.bf16.msra.mxu0 %v148_v0  ;;  %v24_v2 = vld [vmem:[%s236_s0] sm:$0xff]  ;;  %v25_v3 = vld [vmem:[%s236_s0 + $0x8] sm:$0xff] }
   0x3   :  { %v26_v4 = vpack.c.bf16 %v25_v3, %v24_v2  ;;  %v150_v5 = vld [vmem:[%s237_s3] ss:$0 sm:$0xff]  ;;  %v66_v12 = vld [vmem:[%s238_s1 + $0x8] sm:$0xff] }
   0x4   :  { %v65_v7 = vld [vmem:[%s238_s1] sm:$0xff] }
   0x5   :  { %v151_v47 = vld [vmem:[%s239_s4] ss:$0 sm:$0xff] }
   0x6   :  { %58 = vmatpush.bf16.msra.mxu0 %v147_v1  ;;  %v152_v50 = vld [vmem:[%s240_s5] ss:$0 sm:$0xff] }
   0x7   :  { %v154_v17 = vpop.eup %153 }
   0x8   :  { %v78_v18 = vmul.f32 32.0, %v154_v17  ;;  %vm82_vm1 = vweird.f32 %v154_v17 }
   0x9   :  { %146 = vmatmul.msk.bf16.vlgmr.msra.gmra.mxu0 %vm47_vm0, %v26_v4 }
   0xa   :  { %v79_v19 = vsub.f32 1.0, %v78_v18 }
   0xc   :  { %v80_v20 = vmul.f32 %v154_v17, %v79_v19 }
   0xe   :  { %v81_v21 = vadd.f32 %v154_v17, %v80_v20 }
  0x10   :  { %v83_v22 = vsel %vm82_vm1, %v154_v17, %v81_v21 }
  0x86   :  { %v60_v6 = vpop.f32.mrf.mxu0 }
  0x87   :  { %v61_v8 = vadd.f32 %v150_v5, %v60_v6 }
  0x89   :  { %v67_v9 = vadd.f32 %v65_v7, %v61_v8 }
  0x8b   :  { %v71_v10 = vsel %vm47_vm0, %v67_v9, 0.0 }
  0x8c   :  { %72 = vadd.xlane.f32.xlu0 %v71_v10 }
  0x8e   :  { %v62_v11 = vpop.f32.mrf.mxu0 }
  0x8f   :  { %v63_v13 = vadd.f32 %v150_v5, %v62_v11 }
  0x91   :  { %v68_v14 = vadd.f32 %v66_v12, %v63_v13 }
  0x93   :  { %v74_v15 = vsel %vm47_vm0, %v68_v14, 0.0 }
  0x94   :  { %75 = vadd.xlane.f32.xlu0 %v74_v15 }
  0xff   :  { %v73_v23 = vpop.xlane.xlu0 %72 }
 0x100   :  { %v84_v24 = vmul.f32 %v83_v22, %v73_v23 }
 0x102   :  { %v86_v25 = vsub.f32 %v67_v9, %v84_v24 }
 0x104   :  { %v88_v26 = vmul.f32 %v86_v25, %v86_v25 }
 0x106   :  { %v90_v27 = vsel %vm47_vm0, %v88_v26, 0.0 }
 0x107   :  { %91 = vadd.xlane.f32.xlu1 %v90_v27  ;;  %v76_v28 = vpop.xlane.xlu0 %75 }
 0x108   :  { %v85_v29 = vmul.f32 %v83_v22, %v76_v28 }
 0x10a   :  { %v87_v30 = vsub.f32 %v68_v14, %v85_v29 }
 0x10c   :  { %v89_v31 = vmul.f32 %v87_v30, %v87_v30 }
 0x10e   :  { %v93_v32 = vsel %vm47_vm0, %v89_v31, 0.0 }
 0x10f   :  { %94 = vadd.xlane.f32.xlu1 %v93_v32 }
 0x17a   :  { %v92_v33 = vpop.xlane.xlu1 %91 }
 0x17b   :  { %v96_v34 = vmul.f32 %v92_v33, %v83_v22 }
 0x17d   :  { %v98_v35 = vadd.f32 1e-12, %v96_v34 }
 0x17f   :  { %155 = vrsqrt.f32 %v98_v35  ;;  %vm106_vm3 = vweird.f32 %v98_v35 }
 0x182   :  { %v95_v36 = vpop.xlane.xlu1 %94 }
 0x183   :  { %v97_v37 = vmul.f32 %v95_v36, %v83_v22 }
 0x185   :  { %v156_v38 = vpop.eup %155  ;;  %v99_v39 = vadd.f32 1e-12, %v97_v37 }
 0x186   :  { %v101_v40 = vmul.f32 %v156_v38, %v98_v35  ;;  %vm107_vm2 = vweird.f32 %v156_v38 }
 0x187   :  { %157 = vrsqrt.f32 %v99_v39  ;;  %vm108_vm4 = vmor %vm106_vm3, %vm107_vm2  ;;  %vm116_vm6 = vweird.f32 %v99_v39 }
 0x188   :  { %v102_v41 = vmul.f32 %v156_v38, %v101_v40 }
 0x18a   :  { %v103_v42 = vmul.f32 0.5, %v102_v41 }
 0x18c   :  { %v104_v43 = vsub.f32 1.5, %v103_v42 }
 0x18d   :  { %v158_v44 = vpop.eup %157 }
 0x18e   :  { %v105_v45 = vmul.f32 %v156_v38, %v104_v43  ;;  %v111_v46 = vmul.f32 %v158_v44, %v99_v39  ;;  %vm117_vm5 = vweird.f32 %v158_v44 }
 0x18f   :  { %vm118_vm7 = vmor %vm116_vm6, %vm117_vm5 }
 0x190   :  { %v109_v48 = vsel %vm108_vm4, %v156_v38, %v105_v45  ;;  %v112_v49 = vmul.f32 %v158_v44, %v111_v46 }
 0x191   :  { %v120_v51 = vmul.f32 %v109_v48, %v86_v25 }
 0x192   :  { %v113_v52 = vmul.f32 0.5, %v112_v49 }
 0x193   :  { %v125_v53 = vmul.f32 %v151_v47, %v120_v51 }
 0x194   :  { %v114_v54 = vsub.f32 1.5, %v113_v52 }
 0x195   :  { %v130_v55 = vadd.f32 %v152_v50, %v125_v53 }
 0x196   :  { %v115_v56 = vmul.f32 %v158_v44, %v114_v54 }
 0x197   :  { %132 = vst.msk [vmem:[%s241_s6] sm:$0xff] %vm47_vm0, %v130_v55 }
 0x198   :  { %v119_v57 = vsel %vm118_vm7, %v158_v44, %v115_v56 }
 0x199   :  { %v121_v58 = vmul.f32 %v119_v57, %v87_v30 }
 0x19b   :  { %v126_v59 = vmul.f32 %v151_v47, %v121_v58 }
 0x19d   :  { %v131_v60 = vadd.f32 %v152_v50, %v126_v59 }
 0x19f   :  { %133 = vst.msk [vmem:[%s241_s6 + $0x8] sm:$0xff] %vm47_vm0, %v131_v60 }

// kernel: _decoder_jit.23
= control target key start
LH: loop header
LB: loop body
LE: loop exit
PB: predicated region body
PF: predicated region fallthrough
CT: control target
= control target key end

     0   :  { %vm31_vm0 = vcmask 261120   ;;  %v393_v58 = vmov 0.0   ;;  %s524_s1 = inlined_call_operand.vmem [shape: bf16[32,128], index: 1, kind: input, shape index: {}]   ;;  %s525_s0 = inlined_call_operand.vmem [shape: f32[16,32], index: 0, kind: input, shape index: {}]   ;;  %s526_s2 = inlined_call_operand.vmem [shape: f32[1,128], index: 2, kind: input, shape index: {}]   ;;  %s527_s3 = inlined_call_operand.vmem [shape: bf16[128,32], index: 3, kind: input, shape index: {}]   ;;  %s528_s4 = inlined_call_operand.vmem [shape: f32[1,32], index: 4, kind: input, shape index: {}]   ;;  %s529_s5 = inlined_call_operand.vmem [shape: f32[1,32], index: 5, kind: input, shape index: {}]   ;;  %s530_s6 = inlined_call_operand.vmem [shape: f32[1,32], index: 6, kind: input, shape index: {}]   ;;  %s531_s7 = inlined_call_operand.vmem [shape: f32[16,32], index: 7, kind: output, shape index: {}]  }
   0x1   :  { %v364_v0 = vld [vmem:[%s524_s1 + $0x8] sm:$0xff]  ;;  %v363_v1 = vld [vmem:[%s524_s1] sm:$0xff]  ;;  %v372_v10 = vld [vmem:[%s527_s3 + $0x38] sm:$0xff]  ;;  %32 = vst.msk [vmem:[#allocation2] sm:$0xff] %vm31_vm0, %v393_v58 }
   0x2   :  { %67 = vmatpush.bf16.msra.mxu0 %v364_v0  ;;  %v444_v2 = vld [vmem:[%s525_s0] sm:$0xff]  ;;  %v449_v3 = vld [vmem:[%s525_s0 + $0x8] sm:$0xff]  ;;  %222 = vmatpush.bf16.msra.mxu1 %v372_v10  ;;  %v371_v15 = vld [vmem:[%s527_s3 + $0x30] sm:$0xff]  ;;  %33 = vst.msk [vmem:[#allocation2 + $0x8] sm:$0xff] %vm31_vm0, %v393_v58 }
   0x3   :  { %v36_v4 = vpack.c.bf16 %v449_v3, %v444_v2  ;;  %v375_v5 = vld [vmem:[%s526_s2] ss:$0 sm:$0xff]  ;;  %v370_v18 = vld [vmem:[%s527_s3 + $0x28] sm:$0xff]  ;;  %v368_v28 = vld [vmem:[%s527_s3 + $0x18] sm:$0xff] }
   0x4   :  { %v369_v23 = vld [vmem:[%s527_s3 + $0x20] sm:$0xff]  ;;  %v367_v33 = vld [vmem:[%s527_s3 + $0x10] sm:$0xff]  ;;  %v366_v41 = vld [vmem:[%s527_s3 + $0x8] sm:$0xff] }
   0x5   :  { %v365_v49 = vld [vmem:[%s527_s3] sm:$0xff] }
   0x6   :  { %68 = vmatpush.bf16.msra.mxu0 %v363_v1  ;;  %223 = vmatpush.bf16.msra.mxu1 %v371_v15 }
   0x9   :  { %330 = vmatmul.msk.bf16.vlgmr.msra.gmra.mxu0 %vm31_vm0, %v36_v4 }
   0xa   :  { %224 = vmatpush.bf16.msra.mxu1 %v370_v18 }
   0xe   :  { %225 = vmatpush.bf16.msra.mxu1 %v369_v23 }
  0x12   :  { %226 = vmatpush.bf16.msra.mxu1 %v368_v28 }
  0x16   :  { %227 = vmatpush.bf16.msra.mxu1 %v367_v33 }
  0x1a   :  { %228 = vmatpush.bf16.msra.mxu1 %v366_v41  ;;  %v394_v41 = vmov 32.0  }
  0x1e   :  { %229 = vmatpush.bf16.msra.mxu1 %v365_v49 }
  0x86   :  { %v70_v6 = vpop.f32.mrf.mxu0 }
  0x87   :  { %v457_v7 = vadd.f32 %v375_v5, %v70_v6 }
  0x89   :  { %v460_v8 = vmul.f32 0.70710677, %v457_v7 }
  0x8b   :  { %v77_v9 = vand.u32 2147483647, %v460_v8  ;;  %vm143_vm9 = vcmp.lt.f32.partialorder %v460_v8, 0.0 }
  0x8d   :  { %v79_v11 = vmul.f32 0.3275911, %v77_v9  ;;  %v131_v35 = vsub.f32 0.0, %v77_v9 }
  0x8e   :  { %v72_v12 = vpop.f32.mrf.mxu0 }
  0x8f   :  { %v81_v13 = vadd.f32 1.0, %v79_v11  ;;  %v466_v14 = vadd.f32 %v375_v5, %v72_v12  ;;  %v133_v42 = vmul.f32 %v131_v35, %v77_v9 }
  0x91   :  { %379 = vrcp.f32 %v81_v13  ;;  %v472_v16 = vmul.f32 0.70710677, %v466_v14  ;;  %v94_v25 = vand.u32 2147483648, %v81_v13  ;;  %v92_v27 = vand.u32 2147483647, %v81_v13 }
  0x92   :  { %vm88_vm2 = vweird.f32 %v81_v13  ;;  %v135_v50 = vmul.f32 1.442695, %v133_v42 }
  0x93   :  { %v78_v17 = vand.u32 2147483647, %v472_v16  ;;  %v95_v30 = vor.u32 1.1754944e-38, %v94_v25  ;;  %vm93_vm4 = vcmp.eq.f32.partialorder %v92_v27, 8.507059e+37  ;;  %vm144_vm10 = vcmp.lt.f32.partialorder %v472_v16, 0.0 }
  0x94   :  { %v376_v16 = vld [vmem:[%s528_s4] ss:$0 sm:$0xff] }
  0x95   :  { %v80_v19 = vmul.f32 0.3275911, %v78_v17  ;;  %v132_v54 = vsub.f32 0.0, %v78_v17 }
  0x97   :  { %v380_v20 = vpop.eup %379  ;;  %v82_v22 = vadd.f32 1.0, %v80_v19  ;;  %v134_v60 = vmul.f32 %v132_v54, %v78_v17 }
  0x98   :  { %v84_v21 = vmul.f32 %v380_v20, %v81_v13  ;;  %vm89_vm1 = vweird.f32 %v380_v20 }
  0x99   :  { %381 = vrcp.f32 %v82_v22  ;;  %vm90_vm3 = vmor %vm88_vm2, %vm89_vm1  ;;  %v109_v40 = vand.u32 2147483648, %v82_v22  ;;  %v107_v44 = vand.u32 2147483647, %v82_v22  ;;  %vm103_vm6 = vweird.f32 %v82_v22 }
  0x9a   :  { %v85_v24 = vsub.f32 1.0, %v84_v21  ;;  %383 = vpow2.f32 %v135_v50  ;;  %v137_v1 = vmul.f32 1.442695, %v134_v60 }
  0x9b   :  { %v110_v48 = vor.u32 1.1754944e-38, %v109_v40  ;;  %vm108_vm8 = vcmp.eq.f32.partialorder %v107_v44, 8.507059e+37 }
  0x9c   :  { %v86_v26 = vmul.f32 %v380_v20, %v85_v24  ;;  %385 = vpow2.f32 %v137_v1 }
  0x9d   :  { %387 = vrcp.f32 %v394_v41 }
  0x9e   :  { %v87_v29 = vadd.f32 %v380_v20, %v86_v26 }
  0x9f   :  { %v382_v31 = vpop.eup %381 }
  0xa0   :  { %v91_v32 = vsel %vm90_vm3, %v380_v20, %v87_v29  ;;  %v99_v36 = vmul.f32 %v382_v31, %v82_v22  ;;  %vm104_vm5 = vweird.f32 %v382_v31  ;;  %v384_v4 = vpop.eup %383 }
  0xa1   :  { %v96_v34 = vsel %vm93_vm4, %v95_v30, %v91_v32  ;;  %vm105_vm7 = vmor %vm103_vm6, %vm104_vm5  ;;  %v155_v30 = vld [vmem:[#allocation2] sm:$0xff]  ;;  %v156_v32 = vld [vmem:[#allocation2 + $0x8] sm:$0xff] }
  0xa2   :  { %v113_v37 = vmul.f32 1.0614054, %v96_v34  ;;  %v100_v38 = vsub.f32 1.0, %v99_v36  ;;  %v386_v18 = vpop.eup %385 }
  0xa3   :  { %v388_v42 = vpop.eup %387 }
  0xa4   :  { %v115_v39 = vadd.f32 -1.4531521, %v113_v37  ;;  %v101_v43 = vmul.f32 %v382_v31, %v100_v38  ;;  %vm266_vm11 = vweird.f32 %v388_v42 }
  0xa6   :  { %v117_v45 = vmul.f32 %v115_v39, %v96_v34  ;;  %v102_v46 = vadd.f32 %v382_v31, %v101_v43  ;;  %v262_v43 = vmul.f32 32.0, %v388_v42 }
  0xa8   :  { %v119_v47 = vadd.f32 1.4214138, %v117_v45  ;;  %v106_v51 = vsel %vm105_vm7, %v382_v31, %v102_v46  ;;  %v263_v44 = vsub.f32 1.0, %v262_v43 }
  0xa9   :  { %v111_v53 = vsel %vm108_vm8, %v110_v48, %v106_v51 }
  0xaa   :  { %v121_v52 = vmul.f32 %v119_v47, %v96_v34  ;;  %v114_v55 = vmul.f32 1.0614054, %v111_v53  ;;  %v264_v45 = vmul.f32 %v388_v42, %v263_v44 }
  0xac   :  { %v123_v56 = vadd.f32 -0.28449672, %v121_v52  ;;  %v116_v57 = vadd.f32 -1.4531521, %v114_v55  ;;  %v265_v46 = vadd.f32 %v388_v42, %v264_v45 }
  0xae   :  { %v125_v59 = vmul.f32 %v123_v56, %v96_v34  ;;  %v118_v61 = vmul.f32 %v116_v57, %v111_v53  ;;  %v267_v47 = vsel %vm266_vm11, %v388_v42, %v265_v46 }
  0xb0   :  { %v127_v62 = vadd.f32 0.2548296, %v125_v59  ;;  %v120_v63 = vadd.f32 1.4214138, %v118_v61 }
  0xb2   :  { %v129_v0 = vmul.f32 %v127_v62, %v96_v34  ;;  %v122_v5 = vmul.f32 %v120_v63, %v111_v53 }
  0xb4   :  { %v139_v6 = vmul.f32 %v384_v4, %v129_v0  ;;  %v124_v9 = vadd.f32 -0.28449672, %v122_v5 }
  0xb6   :  { %v141_v10 = vsub.f32 1.0, %v139_v6  ;;  %v126_v11 = vmul.f32 %v124_v9, %v111_v53 }
  0xb8   :  { %v145_v12 = vsub.f32 0.0, %v141_v10  ;;  %v128_v13 = vadd.f32 0.2548296, %v126_v11 }
  0xba   :  { %v130_v15 = vmul.f32 %v128_v13, %v111_v53  ;;  %v147_v17 = vsel %vm143_vm9, %v145_v12, %v141_v10  ;;  %v377_v10 = vld [vmem:[%s529_s5] ss:$0 sm:$0xff] }
  0xbb   :  { %v149_v21 = vadd.f32 1.0, %v147_v17  ;;  %v378_v13 = vld [vmem:[%s530_s6] ss:$0 sm:$0xff] }
  0xbc   :  { %v140_v19 = vmul.f32 %v386_v18, %v130_v15 }
  0xbd   :  { %v151_v24 = vmul.f32 0.5, %v149_v21 }
  0xbe   :  { %v142_v20 = vsub.f32 1.0, %v140_v19 }
  0xbf   :  { %v153_v27 = vmul.f32 %v151_v24, %v457_v7 }
  0xc0   :  { %v146_v22 = vsub.f32 0.0, %v142_v20 }
  0xc2   :  { %v148_v23 = vsel %vm144_vm10, %v146_v22, %v142_v20 }
  0xc3   :  { %v150_v25 = vadd.f32 1.0, %v148_v23 }
  0xc5   :  { %v152_v26 = vmul.f32 0.5, %v150_v25 }
  0xc7   :  { %v154_v28 = vmul.f32 %v152_v26, %v466_v14 }
  0xc9   :  { %v157_v29 = vpack.c.bf16 %v154_v28, %v153_v27 }
  0xcb   :  { %230 = vmatmul.bf16.vlgmr.msra.gmra.mxu1 %v157_v29 }
 0x148   :  { %v231_v31 = vpop.f32.mrf.mxu1 }
 0x149   :  { %v236_v8 = vadd.f32 %v231_v31, %v155_v30 }
 0x14b   :  { %238 = vst.msk [vmem:[#allocation2] sm:$0xff] %vm31_vm0, %v236_v8 }
 0x150   :  { %v233_v33 = vpop.f32.mrf.mxu1 }
 0x151   :  { %v237_v34 = vadd.f32 %v233_v33, %v156_v32 }
 0x152   :  { %v243_v35 = vld [vmem:[#allocation2] sm:$0xff] }
 0x153   :  { %239 = vst.msk [vmem:[#allocation2 + $0x8] sm:$0xff] %vm31_vm0, %v237_v34  ;;  %v249_v7 = vadd.f32 %v376_v16, %v243_v35 }
 0x155   :  { %v251_v14 = vadd.f32 %v249_v7, %v444_v2 }
 0x157   :  { %v255_v36 = vsel %vm31_vm0, %v251_v14, 0.0 }
 0x158   :  { %256 = vadd.xlane.f32.xlu0 %v255_v36 }
 0x15a   :  { %v244_v37 = vld [vmem:[#allocation2 + $0x8] sm:$0xff] }
 0x15b   :  { %v250_v38 = vadd.f32 %v376_v16, %v244_v37 }
 0x15d   :  { %v252_v39 = vadd.f32 %v250_v38, %v449_v3 }
 0x15f   :  { %v258_v40 = vsel %vm31_vm0, %v252_v39, 0.0 }
 0x160   :  { %259 = vadd.xlane.f32.xlu0 %v258_v40 }
 0x1cb   :  { %v257_v2 = vpop.xlane.xlu0 %256 }
 0x1cc   :  { %v268_v48 = vmul.f32 %v267_v47, %v257_v2 }
 0x1ce   :  { %v270_v49 = vsub.f32 %v251_v14, %v268_v48 }
 0x1d0   :  { %v272_v50 = vmul.f32 %v270_v49, %v270_v49 }
 0x1d2   :  { %v274_v51 = vsel %vm31_vm0, %v272_v50, 0.0 }
 0x1d3   :  { %275 = vadd.xlane.f32.xlu1 %v274_v51  ;;  %v260_v3 = vpop.xlane.xlu0 %259 }
 0x1d4   :  { %v269_v52 = vmul.f32 %v267_v47, %v260_v3 }
 0x1d6   :  { %v271_v53 = vsub.f32 %v252_v39, %v269_v52 }
 0x1d8   :  { %v273_v54 = vmul.f32 %v271_v53, %v271_v53 }
 0x1da   :  { %v277_v55 = vsel %vm31_vm0, %v273_v54, 0.0 }
 0x1db   :  { %278 = vadd.xlane.f32.xlu1 %v277_v55 }
 0x246   :  { %v276_v56 = vpop.xlane.xlu1 %275 }
 0x247   :  { %v280_v57 = vmul.f32 %v276_v56, %v267_v47 }
 0x249   :  { %v282_v58 = vadd.f32 1e-12, %v280_v57 }
 0x24b   :  { %389 = vrsqrt.f32 %v282_v58  ;;  %vm290_vm13 = vweird.f32 %v282_v58 }
 0x24e   :  { %v279_v59 = vpop.xlane.xlu1 %278 }
 0x24f   :  { %v281_v60 = vmul.f32 %v279_v59, %v267_v47 }
 0x251   :  { %v390_v61 = vpop.eup %389  ;;  %v283_v62 = vadd.f32 1e-12, %v281_v60 }
 0x252   :  { %v285_v63 = vmul.f32 %v390_v61, %v282_v58  ;;  %vm291_vm12 = vweird.f32 %v390_v61 }
 0x253   :  { %391 = vrsqrt.f32 %v283_v62  ;;  %vm292_vm14 = vmor %vm290_vm13, %vm291_vm12  ;;  %vm300_vm1 = vweird.f32 %v283_v62 }
 0x254   :  { %v286_v0 = vmul.f32 %v390_v61, %v285_v63 }
 0x256   :  { %v287_v1 = vmul.f32 0.5, %v286_v0 }
 0x258   :  { %v288_v4 = vsub.f32 1.5, %v287_v1 }
 0x259   :  { %v392_v5 = vpop.eup %391 }
 0x25a   :  { %v289_v6 = vmul.f32 %v390_v61, %v288_v4  ;;  %v295_v9 = vmul.f32 %v392_v5, %v283_v62  ;;  %vm301_vm15 = vweird.f32 %v392_v5 }
 0x25b   :  { %vm302_vm2 = vmor %vm300_vm1, %vm301_vm15 }
 0x25c   :  { %v293_v11 = vsel %vm292_vm14, %v390_v61, %v289_v6  ;;  %v296_v12 = vmul.f32 %v392_v5, %v295_v9 }
 0x25d   :  { %v304_v15 = vmul.f32 %v293_v11, %v270_v49 }
 0x25e   :  { %v297_v18 = vmul.f32 0.5, %v296_v12 }
 0x25f   :  { %v309_v17 = vmul.f32 %v377_v10, %v304_v15 }
 0x260   :  { %v298_v19 = vsub.f32 1.5, %v297_v18 }
 0x261   :  { %v314_v20 = vadd.f32 %v378_v13, %v309_v17 }
 0x262   :  { %v299_v21 = vmul.f32 %v392_v5, %v298_v19 }
 0x263   :  { %316 = vst.msk [vmem:[%s531_s7] sm:$0xff] %vm31_vm0, %v314_v20 }
 0x264   :  { %v303_v22 = vsel %vm302_vm2, %v392_v5, %v299_v21 }
 0x265   :  { %v305_v23 = vmul.f32 %v303_v22, %v271_v53 }
 0x267   :  { %v310_v24 = vmul.f32 %v377_v10, %v305_v23 }
 0x269   :  { %v315_v25 = vadd.f32 %v378_v13, %v310_v24 }
 0x26b   :  { %317 = vst.msk [vmem:[%s531_s7 + $0x8] sm:$0xff] %vm31_vm0, %v315_v25 }

// kernel: _decoder_jit.31
= control target key start
LH: loop header
LB: loop body
LE: loop exit
PB: predicated region body
PF: predicated region fallthrough
CT: control target
= control target key end

     0   :  { %s568_s0 = inlined_call_operand.vmem [shape: f32[16,32], index: 0, kind: input, shape index: {}]   ;;  %s569_s1 = inlined_call_operand.vmem [shape: bf16[32,128], index: 1, kind: input, shape index: {}]   ;;  %s570_s2 = inlined_call_operand.vmem [shape: f32[1,128], index: 2, kind: input, shape index: {}]   ;;  %s571_s3 = inlined_call_operand.vmem [shape: bf16[128,32], index: 3, kind: input, shape index: {}]   ;;  %s572_s4 = inlined_call_operand.vmem [shape: f32[1,32], index: 4, kind: input, shape index: {}]   ;;  %s573_s5 = inlined_call_operand.vmem [shape: f32[1,32], index: 5, kind: input, shape index: {}]   ;;  %s574_s6 = inlined_call_operand.vmem [shape: f32[1,32], index: 6, kind: input, shape index: {}]   ;;  %s575_s7 = inlined_call_operand.hbm [shape: f32[16,32], index: 7, kind: output, shape index: {}]  }
   0x1   :  { %v379_v0 = vld [vmem:[%s569_s1 + $0x8] sm:$0xff]  ;;  %v378_v1 = vld [vmem:[%s569_s1] sm:$0xff] }
   0x2   :  { %v491_v2 = vld [vmem:[%s568_s0] sm:$0xff]  ;;  %v496_v3 = vld [vmem:[%s568_s0 + $0x8] sm:$0xff]  ;;  %68 = vmatpush.bf16.msra.mxu0 %v379_v0 }
   0x3   :  { %12 = vsyncpa [#allocation4], 0  ;;  %v37_v4 = vpack.c.bf16 %v496_v3, %v491_v2  ;;  %vm32_vm0 = vcmask 261120   ;;  %v393_v5 = vld [vmem:[%s570_s2] ss:$0 sm:$0xff]  ;;  %v387_v10 = vld [vmem:[%s571_s3 + $0x38] sm:$0xff] }
   0x4   :  { %223 = vmatpush.bf16.msra.mxu1 %v387_v10  ;;  %v386_v15 = vld [vmem:[%s571_s3 + $0x30] sm:$0xff]  ;;  %v385_v18 = vld [vmem:[%s571_s3 + $0x28] sm:$0xff]  ;;  %v384_v23 = vld [vmem:[%s571_s3 + $0x20] sm:$0xff]  ;;  %v437_v58 = vmov 0.0   ;;  %s325_s8 = sshll.u32 %s575_s7, 4  ;;  %s441_s1 = smov 8   ;;  %s326_s8 = int_to_ptr.hbm [resolvable:$true] %s325_s8 }
   0x5   :  { %v383_v28 = vld [vmem:[%s571_s3 + $0x18] sm:$0xff]  ;;  %v382_v33 = vld [vmem:[%s571_s3 + $0x10] sm:$0xff]  ;;  %v381_v41 = vld [vmem:[%s571_s3 + $0x8] sm:$0xff]  ;;  %33 = vst.msk [vmem:[#allocation2] sm:$0xff] %vm32_vm0, %v437_v58 }
   0x6   :  { %69 = vmatpush.bf16.msra.mxu0 %v378_v1  ;;  %v380_v49 = vld [vmem:[%s571_s3] sm:$0xff]  ;;  %34 = vst.msk [vmem:[#allocation2 + $0x8] sm:$0xff] %vm32_vm0, %v437_v58 }
   0x8   :  { %224 = vmatpush.bf16.msra.mxu1 %v386_v15 }
   0x9   :  { %345 = vmatmul.msk.bf16.vlgmr.msra.gmra.mxu0 %vm32_vm0, %v37_v4 }
   0xc   :  { %225 = vmatpush.bf16.msra.mxu1 %v385_v18 }
  0x10   :  { %226 = vmatpush.bf16.msra.mxu1 %v384_v23 }
  0x14   :  { %227 = vmatpush.bf16.msra.mxu1 %v383_v28 }
  0x18   :  { %228 = vmatpush.bf16.msra.mxu1 %v382_v33 }
  0x1c   :  { %229 = vmatpush.bf16.msra.mxu1 %v381_v41  ;;  %v438_v41 = vmov 32.0  }
  0x20   :  { %230 = vmatpush.bf16.msra.mxu1 %v380_v49 }
  0x86   :  { %v71_v6 = vpop.f32.mrf.mxu0 }
  0x87   :  { %v504_v7 = vadd.f32 %v393_v5, %v71_v6 }
  0x89   :  { %v507_v8 = vmul.f32 0.70710677, %v504_v7 }
  0x8b   :  { %v78_v9 = vand.u32 2147483647, %v507_v8  ;;  %vm144_vm9 = vcmp.lt.f32.partialorder %v507_v8, 0.0 }
  0x8d   :  { %v80_v11 = vmul.f32 0.3275911, %v78_v9  ;;  %v132_v35 = vsub.f32 0.0, %v78_v9 }
  0x8e   :  { %v73_v12 = vpop.f32.mrf.mxu0 }
  0x8f   :  { %v82_v13 = vadd.f32 1.0, %v80_v11  ;;  %v513_v14 = vadd.f32 %v393_v5, %v73_v12  ;;  %v134_v42 = vmul.f32 %v132_v35, %v78_v9 }
  0x91   :  { %397 = vrcp.f32 %v82_v13  ;;  %v519_v16 = vmul.f32 0.70710677, %v513_v14  ;;  %v95_v25 = vand.u32 2147483648, %v82_v13  ;;  %v93_v27 = vand.u32 2147483647, %v82_v13 }
  0x92   :  { %vm89_vm2 = vweird.f32 %v82_v13  ;;  %v136_v50 = vmul.f32 1.442695, %v134_v42 }
  0x93   :  { %v79_v17 = vand.u32 2147483647, %v519_v16  ;;  %v96_v30 = vor.u32 1.1754944e-38, %v95_v25  ;;  %vm94_vm4 = vcmp.eq.f32.partialorder %v93_v27, 8.507059e+37  ;;  %vm145_vm10 = vcmp.lt.f32.partialorder %v519_v16, 0.0 }
  0x94   :  { %v394_v16 = vld [vmem:[%s572_s4] ss:$0 sm:$0xff] }
  0x95   :  { %v81_v19 = vmul.f32 0.3275911, %v79_v17  ;;  %v133_v54 = vsub.f32 0.0, %v79_v17 }
  0x97   :  { %v398_v20 = vpop.eup %397  ;;  %v83_v22 = vadd.f32 1.0, %v81_v19  ;;  %v135_v60 = vmul.f32 %v133_v54, %v79_v17 }
  0x98   :  { %v85_v21 = vmul.f32 %v398_v20, %v82_v13  ;;  %vm90_vm1 = vweird.f32 %v398_v20 }
  0x99   :  { %399 = vrcp.f32 %v83_v22  ;;  %vm91_vm3 = vmor %vm89_vm2, %vm90_vm1  ;;  %v110_v40 = vand.u32 2147483648, %v83_v22  ;;  %v108_v44 = vand.u32 2147483647, %v83_v22  ;;  %vm104_vm6 = vweird.f32 %v83_v22 }
  0x9a   :  { %v86_v24 = vsub.f32 1.0, %v85_v21  ;;  %401 = vpow2.f32 %v136_v50  ;;  %v138_v1 = vmul.f32 1.442695, %v135_v60 }
  0x9b   :  { %v111_v48 = vor.u32 1.1754944e-38, %v110_v40  ;;  %vm109_vm8 = vcmp.eq.f32.partialorder %v108_v44, 8.507059e+37 }
  0x9c   :  { %v87_v26 = vmul.f32 %v398_v20, %v86_v24  ;;  %403 = vpow2.f32 %v138_v1 }
  0x9d   :  { %405 = vrcp.f32 %v438_v41 }
  0x9e   :  { %v88_v29 = vadd.f32 %v398_v20, %v87_v26 }
  0x9f   :  { %v400_v31 = vpop.eup %399 }
  0xa0   :  { %v92_v32 = vsel %vm91_vm3, %v398_v20, %v88_v29  ;;  %v100_v36 = vmul.f32 %v400_v31, %v83_v22  ;;  %vm105_vm5 = vweird.f32 %v400_v31  ;;  %v402_v4 = vpop.eup %401 }
  0xa1   :  { %v97_v34 = vsel %vm94_vm4, %v96_v30, %v92_v32  ;;  %vm106_vm7 = vmor %vm104_vm6, %vm105_vm5  ;;  %v156_v30 = vld [vmem:[#allocation2] sm:$0xff]  ;;  %v157_v32 = vld [vmem:[#allocation2 + $0x8] sm:$0xff] }
  0xa2   :  { %v114_v37 = vmul.f32 1.0614054, %v97_v34  ;;  %v101_v38 = vsub.f32 1.0, %v100_v36  ;;  %v404_v18 = vpop.eup %403 }
  0xa3   :  { %v406_v42 = vpop.eup %405 }
  0xa4   :  { %v116_v39 = vadd.f32 -1.4531521, %v114_v37  ;;  %v102_v43 = vmul.f32 %v400_v31, %v101_v38  ;;  %vm267_vm11 = vweird.f32 %v406_v42 }
  0xa6   :  { %v118_v45 = vmul.f32 %v116_v39, %v97_v34  ;;  %v103_v46 = vadd.f32 %v400_v31, %v102_v43  ;;  %v263_v43 = vmul.f32 32.0, %v406_v42 }
  0xa8   :  { %v120_v47 = vadd.f32 1.4214138, %v118_v45  ;;  %v107_v51 = vsel %vm106_vm7, %v400_v31, %v103_v46  ;;  %v264_v44 = vsub.f32 1.0, %v263_v43 }
  0xa9   :  { %v112_v53 = vsel %vm109_vm8, %v111_v48, %v107_v51 }
  0xaa   :  { %v122_v52 = vmul.f32 %v120_v47, %v97_v34  ;;  %v115_v55 = vmul.f32 1.0614054, %v112_v53  ;;  %v265_v45 = vmul.f32 %v406_v42, %v264_v44 }
  0xac   :  { %v124_v56 = vadd.f32 -0.28449672, %v122_v52  ;;  %v117_v57 = vadd.f32 -1.4531521, %v115_v55  ;;  %v266_v46 = vadd.f32 %v406_v42, %v265_v45 }
  0xae   :  { %v126_v59 = vmul.f32 %v124_v56, %v97_v34  ;;  %v119_v61 = vmul.f32 %v117_v57, %v112_v53  ;;  %v268_v47 = vsel %vm267_vm11, %v406_v42, %v266_v46 }
  0xb0   :  { %v128_v62 = vadd.f32 0.2548296, %v126_v59  ;;  %v121_v63 = vadd.f32 1.4214138, %v119_v61 }
  0xb2   :  { %v130_v0 = vmul.f32 %v128_v62, %v97_v34  ;;  %v123_v5 = vmul.f32 %v121_v63, %v112_v53 }
  0xb4   :  { %v140_v6 = vmul.f32 %v402_v4, %v130_v0  ;;  %v125_v9 = vadd.f32 -0.28449672, %v123_v5 }
  0xb6   :  { %v142_v10 = vsub.f32 1.0, %v140_v6  ;;  %v127_v11 = vmul.f32 %v125_v9, %v112_v53 }
  0xb8   :  { %v146_v12 = vsub.f32 0.0, %v142_v10  ;;  %v129_v13 = vadd.f32 0.2548296, %v127_v11 }
  0xba   :  { %v131_v15 = vmul.f32 %v129_v13, %v112_v53  ;;  %v148_v17 = vsel %vm144_vm9, %v146_v12, %v142_v10  ;;  %v395_v10 = vld [vmem:[%s573_s5] ss:$0 sm:$0xff]  ;;  %s439_s5 = smov [#allocation3]  }
  0xbb   :  { %v150_v21 = vadd.f32 1.0, %v148_v17  ;;  %s323_s28 = sshll.u32 %s439_s5, 4  ;;  %s324_s28 = int_to_ptr.vmem [resolvable:$true] %s323_s28 }
  0xbc   :  { %v141_v19 = vmul.f32 %v404_v18, %v131_v15  ;;  %v396_v15 = vld [vmem:[%s574_s6] ss:$0 sm:$0xff]  ;;  %s440_s6 = smov 128  }
  0xbd   :  { %v152_v24 = vmul.f32 0.5, %v150_v21 }
  0xbe   :  { %v143_v20 = vsub.f32 1.0, %v141_v19 }
  0xbf   :  { %v154_v27 = vmul.f32 %v152_v24, %v504_v7 }
  0xc0   :  { %v147_v22 = vsub.f32 0.0, %v143_v20 }
  0xc2   :  { %v149_v23 = vsel %vm145_vm10, %v147_v22, %v143_v20 }
  0xc3   :  { %v151_v25 = vadd.f32 1.0, %v149_v23 }
  0xc5   :  { %v153_v26 = vmul.f32 0.5, %v151_v25 }
  0xc7   :  { %v155_v28 = vmul.f32 %v153_v26, %v513_v14 }
  0xc9   :  { %v158_v29 = vpack.c.bf16 %v155_v28, %v154_v27 }
  0xcb   :  { %231 = vmatmul.bf16.vlgmr.msra.gmra.mxu1 %v158_v29 }
 0x148   :  { %v232_v31 = vpop.f32.mrf.mxu1 }
 0x149   :  { %v237_v8 = vadd.f32 %v232_v31, %v156_v30 }
 0x14b   :  { %239 = vst.msk [vmem:[#allocation2] sm:$0xff] %vm32_vm0, %v237_v8 }
 0x150   :  { %v234_v33 = vpop.f32.mrf.mxu1 }
 0x151   :  { %v238_v34 = vadd.f32 %v234_v33, %v157_v32 }
 0x152   :  { %v244_v35 = vld [vmem:[#allocation2] sm:$0xff] }
 0x153   :  { %240 = vst.msk [vmem:[#allocation2 + $0x8] sm:$0xff] %vm32_vm0, %v238_v34  ;;  %v250_v7 = vadd.f32 %v394_v16, %v244_v35 }
 0x155   :  { %v252_v14 = vadd.f32 %v250_v7, %v491_v2 }
 0x157   :  { %v256_v36 = vsel %vm32_vm0, %v252_v14, 0.0 }
 0x158   :  { %257 = vadd.xlane.f32.xlu0 %v256_v36 }
 0x15a   :  { %v245_v37 = vld [vmem:[#allocation2 + $0x8] sm:$0xff] }
 0x15b   :  { %v251_v38 = vadd.f32 %v394_v16, %v245_v37 }
 0x15d   :  { %v253_v39 = vadd.f32 %v251_v38, %v496_v3 }
 0x15f   :  { %v259_v40 = vsel %vm32_vm0, %v253_v39, 0.0 }
 0x160   :  { %260 = vadd.xlane.f32.xlu0 %v259_v40 }
 0x1cb   :  { %v258_v2 = vpop.xlane.xlu0 %257 }
 0x1cc   :  { %v269_v48 = vmul.f32 %v268_v47, %v258_v2 }
 0x1ce   :  { %v271_v49 = vsub.f32 %v252_v14, %v269_v48 }
 0x1d0   :  { %v273_v50 = vmul.f32 %v271_v49, %v271_v49 }
 0x1d2   :  { %v275_v51 = vsel %vm32_vm0, %v273_v50, 0.0 }
 0x1d3   :  { %276 = vadd.xlane.f32.xlu1 %v275_v51  ;;  %v261_v3 = vpop.xlane.xlu0 %260 }
 0x1d4   :  { %v270_v52 = vmul.f32 %v268_v47, %v261_v3 }
 0x1d6   :  { %v272_v53 = vsub.f32 %v253_v39, %v270_v52 }
 0x1d8   :  { %v274_v54 = vmul.f32 %v272_v53, %v272_v53 }
 0x1da   :  { %v278_v55 = vsel %vm32_vm0, %v274_v54, 0.0 }
 0x1db   :  { %279 = vadd.xlane.f32.xlu1 %v278_v55 }
 0x246   :  { %v277_v56 = vpop.xlane.xlu1 %276 }
 0x247   :  { %v281_v57 = vmul.f32 %v277_v56, %v268_v47 }
 0x249   :  { %v283_v58 = vadd.f32 1e-12, %v281_v57 }
 0x24b   :  { %407 = vrsqrt.f32 %v283_v58  ;;  %vm291_vm13 = vweird.f32 %v283_v58 }
 0x24e   :  { %v280_v59 = vpop.xlane.xlu1 %279 }
 0x24f   :  { %v282_v60 = vmul.f32 %v280_v59, %v268_v47 }
 0x251   :  { %v408_v61 = vpop.eup %407  ;;  %v284_v62 = vadd.f32 1e-12, %v282_v60 }
 0x252   :  { %v286_v63 = vmul.f32 %v408_v61, %v283_v58  ;;  %vm292_vm12 = vweird.f32 %v408_v61 }
 0x253   :  { %409 = vrsqrt.f32 %v284_v62  ;;  %vm293_vm14 = vmor %vm291_vm13, %vm292_vm12  ;;  %vm301_vm1 = vweird.f32 %v284_v62 }
 0x254   :  { %v287_v0 = vmul.f32 %v408_v61, %v286_v63 }
 0x256   :  { %v288_v1 = vmul.f32 0.5, %v287_v0 }
 0x258   :  { %v289_v4 = vsub.f32 1.5, %v288_v1 }
 0x259   :  { %v410_v5 = vpop.eup %409 }
 0x25a   :  { %v290_v6 = vmul.f32 %v408_v61, %v289_v4  ;;  %v296_v9 = vmul.f32 %v410_v5, %v284_v62  ;;  %vm302_vm15 = vweird.f32 %v410_v5 }
 0x25b   :  { %vm303_vm2 = vmor %vm301_vm1, %vm302_vm15 }
 0x25c   :  { %v294_v11 = vsel %vm293_vm14, %v408_v61, %v290_v6  ;;  %v297_v12 = vmul.f32 %v410_v5, %v296_v9 }
 0x25d   :  { %v305_v13 = vmul.f32 %v294_v11, %v271_v49 }
 0x25e   :  { %v298_v18 = vmul.f32 0.5, %v297_v12 }
 0x25f   :  { %v310_v17 = vmul.f32 %v395_v10, %v305_v13 }
 0x260   :  { %v299_v19 = vsub.f32 1.5, %v298_v18 }
 0x261   :  { %v315_v20 = vadd.f32 %v396_v15, %v310_v17 }
 0x262   :  { %v300_v21 = vmul.f32 %v410_v5, %v299_v19 }
 0x263   :  { %317 = vst.msk [vmem:[#allocation3] sm:$0xff] %vm32_vm0, %v315_v20 }
 0x264   :  { %v304_v22 = vsel %vm303_vm2, %v410_v5, %v300_v21 }
 0x265   :  { %v306_v23 = vmul.f32 %v304_v22, %v272_v53 }
 0x267   :  { %v311_v24 = vmul.f32 %v395_v10, %v306_v23 }
 0x269   :  { %v316_v25 = vadd.f32 %v396_v15, %v311_v24 }
 0x26b   :  { %318 = vst.msk [vmem:[#allocation3 + $0x8] sm:$0xff] %vm32_vm0, %v316_v25 }
 0x26c   :  { %331 = dma.vmem_to_hbm [thread:$0]  %s324_s28, 256, %s326_s8, [#allocation4], %s440_s6, %s440_s6, %s441_s1  }
 0x26d   :  { %435 = dma.done.wait [#allocation4], 256  }
 0x26e   :  { %436 = vsyncadd [#allocation4], 4294967040 }
 0x26f   :  { %336 = vsyncpa [#allocation4], 1 }

</bundles_post_ra>
